<compile_context>
chip_gen: v7x
topology: tpu7x:2x2x1
jax: 0.10.0
libtpu: 0.0.40
codegen_flags: <defaults>
</compile_context>

<pallas_src>
import math

import jax
import jax.numpy as jnp
from jax import lax
from jax.experimental import pallas as pl

# ----- model / problem sizes (small, consistent with the module) -------------
DIM = 32          # decoder_layer.dim
NUM_HEADS = 4     # decoder_layer.num_heads
HEAD_DIM = DIM // NUM_HEADS
FF_DIM = 64       # decoder_layer feed-forward dim
NUM_LAYERS = 2
TGT_LEN = 8       # query length (T)
MEM_LEN = 8       # self.mem_length (M)
SRC_LEN = TGT_LEN + MEM_LEN   # key/value length (S)
MAX_LEN = 64      # PositionalEncoding max_length
BATCH = 2
LN_EPS = 1e-5

BT = BATCH * TGT_LEN          # flattened query rows  (b*T + t)
BS = BATCH * SRC_LEN          # flattened key rows    (b*S + s)
SMALL_W = max(DIM, FF_DIM)    # width of the packed small-parameter rows
NEG_BIG = -1e30               # finite "minus infinity" for additive masking


# ----------------------------- Pallas kernel ---------------------------------
def txl_kernel(xb_ref, mems_ref, pos_ref, mask_ref,
               wqkv_ref, wpos_ref, wout_ref, w1_ref, w2_ref,
               smallp_ref, uv_ref, out_ref):
    f32 = jnp.float32

    h = xb_ref[...]                                   # (B*T, D), rows b*T + t
    pos = pos_ref[...]                                # (S, D)
    maskadd = mask_ref[...]                           # (B*T, B*S) additive mask
    scale = f32(1.0 / math.sqrt(HEAD_DIM))

    # u/v biases, flattened head-major and pre-scaled (folds 1/sqrt(dh)).
    uv = uv_ref[...] * scale                          # (2, D)
    u_row = uv[0:1, :]
    v_row = uv[1:2, :]

    # rel-shift stage selectors (shared across layers, heads, batches).
    # row r = b*T + t must be circularly left-shifted by amt = T-1-t.
    rowi = lax.broadcasted_iota(jnp.int32, (BT, SRC_LEN), 0)
    t_idx = rowi & (TGT_LEN - 1)                      # T is a power of two
    amt = (TGT_LEN - 1) - t_idx
    n_stages = max(1, (TGT_LEN - 1).bit_length())
    stage_sel = [((amt >> k) & 1) == 1 for k in range(n_stages)]

    def rel_shift(ps):                                # (B*T, S) -> (B*T, S)
        x = ps
        for k in range(n_stages):
            sh = 1 << k
            rolled = jnp.concatenate([x[:, sh:], x[:, :sh]], axis=1)
            x = jnp.where(stage_sel[k], rolled, x)
        return x

    def layer_norm(x, g, b):
        mu = jnp.mean(x, axis=-1, keepdims=True)
        var = jnp.mean((x - mu) * (x - mu), axis=-1, keepdims=True)
        return (x - mu) * lax.rsqrt(var + LN_EPS) * g + b

    dn = (((1,), (1,)), ((), ()))                     # a @ b.T without transpose

    for l in range(NUM_LAYERS):                       # layers fully unrolled
        meml = mems_ref[l]                            # (B, M, D)
        # batch-major concat [mem_b ; h_b] for every batch -> (B*S, D)
        cat = jnp.concatenate(
            [p for b in range(BATCH)
             for p in (meml[b], h[b * TGT_LEN:(b + 1) * TGT_LEN, :])],
            axis=0)

        qkv = jnp.dot(cat, wqkv_ref[l], preferred_element_type=f32)    # (B*S, 3D)
        posp = jnp.dot(pos, wpos_ref[l], preferred_element_type=f32)   # (S, D)

        # query rows = last T rows of each batch's slab, pre-scaled.
        q = jnp.concatenate(
            [qkv[b * SRC_LEN + MEM_LEN:(b + 1) * SRC_LEN, 0:DIM]
             for b in range(BATCH)], axis=0) * scale                   # (B*T, D)
        k = qkv[:, DIM:2 * DIM]                                        # (B*S, D)
        v = qkv[:, 2 * DIM:3 * DIM]                                    # (B*S, D)
        q_u = q + u_row
        q_v = q + v_row

        ctx_heads = []
        for hd in range(NUM_HEADS):
            lo, hi = hd * HEAD_DIM, (hd + 1) * HEAD_DIM
            content = lax.dot_general(q_u[:, lo:hi], k[:, lo:hi], dn,
                                      preferred_element_type=f32)      # (B*T, B*S)
            ps = lax.dot_general(q_v[:, lo:hi], posp[:, lo:hi], dn,
                                 preferred_element_type=f32)           # (B*T, S)
            ps = rel_shift(ps)
            ps = jnp.concatenate([ps] * BATCH, axis=1)                 # (B*T, B*S)

            score = content + ps + maskadd
            m = jnp.max(score, axis=-1, keepdims=True)
            e = jnp.exp(score - m)
            r = pl.reciprocal(jnp.sum(e, axis=-1, keepdims=True), approx=True)
            attn = e * r                                               # (B*T, B*S)
            ctx_heads.append(jnp.dot(attn, v[:, lo:hi],
                                     preferred_element_type=f32))      # (B*T, dh)

        ctx = jnp.concatenate(ctx_heads, axis=1)                       # (B*T, D)
        attn_out = jnp.dot(ctx, wout_ref[l], preferred_element_type=f32)

        sp = smallp_ref[l]                                             # (6, 64)
        ln1_g = sp[0:1, 0:DIM]
        ln1_b = sp[1:2, 0:DIM]
        ln2_g = sp[2:3, 0:DIM]
        ln2_b = sp[3:4, 0:DIM]
        b2 = sp[4:5, 0:DIM]
        b1 = sp[5:6, :]                                                # (1, FF)

        h1 = layer_norm(h + attn_out, ln1_g, ln1_b)                    # (B*T, D)
        ff = jnp.maximum(jnp.dot(h1, w1_ref[l], preferred_element_type=f32) + b1,
                         0.0)                                          # (B*T, FF)
        ff = jnp.dot(ff, w2_ref[l], preferred_element_type=f32) + b2
        h = layer_norm(h1 + ff, ln2_g, ln2_b)                          # (B*T, D)

        out_ref[l, :, :] = h


# ----------------------------- plain JAX glue ---------------------------------
def positional_encoding_table(max_length, dim):
    position = jnp.arange(max_length, dtype=jnp.float32)[:, None]
    div_term = jnp.exp(jnp.arange(0, dim, 2, dtype=jnp.float32)
                       * (-math.log(10000.0) / dim))
    enc = jnp.zeros((max_length, dim), jnp.float32)
    enc = enc.at[:, 0::2].set(jnp.sin(position * div_term))
    enc = enc.at[:, 1::2].set(jnp.cos(position * div_term))
    return enc


def _pack_small(lp):
    def pad_row(vec):
        row = vec.reshape(1, -1).astype(jnp.float32)
        return jnp.pad(row, ((0, 0), (0, SMALL_W - row.shape[1])))
    return jnp.concatenate(
        [pad_row(lp["ln1_g"]), pad_row(lp["ln1_b"]),
         pad_row(lp["ln2_g"]), pad_row(lp["ln2_b"]),
         pad_row(lp["b2"]), pad_row(lp["b1"])], axis=0)          # (6, SMALL_W)


def transformer_xl_forward(x, positions, attn_mask, mems, layer_params,
                           u_bias, v_bias):
    """x: (T, B, D); positions: (S,); attn_mask: (T, S) bool;
    mems: tuple of NUM_LAYERS+1 arrays (M, B, D). Returns (out, new_mems)."""
    pos_enc = positional_encoding_table(MAX_LEN, DIM)[positions]        # (S, D)

    # Additive mask over the flattened (B*T, B*S) score matrix: the given
    # causal+memory mask plus -1e30 on every cross-batch entry.
    neg = jnp.float32(NEG_BIG)
    madd = jnp.where(attn_mask, neg, jnp.float32(0.0))                  # (T, S)
    big = jnp.tile(madd, (BATCH, BATCH))                                # (BT, BS)
    rb = jnp.repeat(jnp.arange(BATCH), TGT_LEN)
    cb = jnp.repeat(jnp.arange(BATCH), SRC_LEN)
    mask_add = jnp.where(rb[:, None] == cb[None, :], big, neg)          # (BT, BS)

    # one-time layout changes (time-major -> batch-major flat rows)
    xb = jnp.transpose(x, (1, 0, 2)).reshape(BT, DIM)                   # (B*T, D)
    mems_bm = jnp.transpose(jnp.stack(mems[:NUM_LAYERS]), (0, 2, 1, 3)) # (L,B,M,D)

    wqkv_all = jnp.stack([lp["wqkv"] for lp in layer_params])           # (L,D,3D)
    wpos_all = jnp.stack([lp["wpos"] for lp in layer_params])           # (L,D,D)
    wout_all = jnp.stack([lp["wout"] for lp in layer_params])           # (L,D,D)
    w1_all = jnp.stack([lp["w1"] for lp in layer_params])               # (L,D,FF)
    w2_all = jnp.stack([lp["w2"] for lp in layer_params])               # (L,FF,D)
    smallp = jnp.stack([_pack_small(lp) for lp in layer_params])        # (L,6,64)
    uv = jnp.concatenate([u_bias.reshape(1, DIM), v_bias.reshape(1, DIM)],
                         axis=0)                                        # (2, D)

    hid = pl.pallas_call(
        txl_kernel,
        out_shape=jax.ShapeDtypeStruct((NUM_LAYERS, BT, DIM), jnp.float32),
    )(xb, mems_bm, pos_enc, mask_add,
      wqkv_all, wpos_all, wout_all, w1_all, w2_all, smallp, uv)

    # back to the module's time-major layout
    hid = jnp.transpose(hid.reshape(NUM_LAYERS, BATCH, TGT_LEN, DIM),
                        (0, 2, 1, 3))                                   # (L,T,B,D)
    hiddens = [x] + [hid[i] for i in range(NUM_LAYERS)]

    out = hiddens[-1][-TGT_LEN:]
    new_mems = tuple(
        jnp.concatenate([mems[i], hiddens[i]], axis=0)[-MEM_LEN:]
        for i in range(len(hiddens)))
    return out, new_mems


# ---------------------- pure-JAX reference (for checking) --------------------
def _rel_shift_exact(x):       # exact PyTorch pad/reshape trick, (T, P) -> (T, P)
    t, p = x.shape
    xp = jnp.concatenate([jnp.zeros((t, 1), x.dtype), x], axis=1)
    xp = xp.reshape(p + 1, t)[1:, :]
    return xp.reshape(t, p)


def _ref_layer(cat, pos_enc, mask_bool, u_bias, v_bias, lp):
    hp = lax.Precision.HIGHEST
    s, b, _ = cat.shape
    qkv = jnp.einsum('sbd,de->sbe', cat, lp["wqkv"], precision=hp)
    q = qkv[s - TGT_LEN:, :, :DIM].reshape(TGT_LEN, b, NUM_HEADS, HEAD_DIM)
    k = qkv[:, :, DIM:2 * DIM].reshape(s, b, NUM_HEADS, HEAD_DIM)
    v = qkv[:, :, 2 * DIM:].reshape(s, b, NUM_HEADS, HEAD_DIM)
    posp = jnp.einsum('sd,de->se', pos_enc, lp["wpos"],
                      precision=hp).reshape(s, NUM_HEADS, HEAD_DIM)

    content = jnp.einsum('ibnd,jbnd->ijbn', q + u_bias, k, precision=hp)
    pos_sc = jnp.einsum('ibnd,jnd->ijbn', q + v_bias, posp, precision=hp)
    ps = jnp.transpose(pos_sc, (2, 3, 0, 1))
    ps = jax.vmap(jax.vmap(_rel_shift_exact))(ps)
    pos_sc = jnp.transpose(ps, (2, 3, 0, 1))

    score = (content + pos_sc) / math.sqrt(HEAD_DIM)
    score = jnp.where(mask_bool[:, :, None, None], -jnp.inf, score)
    attn = jax.nn.softmax(score, axis=1)
    ctx = jnp.einsum('ijbn,jbnd->ibnd', attn, v,
                     precision=hp).reshape(TGT_LEN, b, DIM)
    attn_out = jnp.einsum('ibd,de->ibe', ctx, lp["wout"], precision=hp)

    def ln(x, g, bta):
        mu = jnp.mean(x, axis=-1, keepdims=True)
        var = jnp.mean((x - mu) ** 2, axis=-1, keepdims=True)
        return (x - mu) * lax.rsqrt(var + LN_EPS) * g + bta

    x_tgt = cat[s - TGT_LEN:]
    h1 = ln(x_tgt + attn_out, lp["ln1_g"][0], lp["ln1_b"][0])
    ff = jnp.maximum(jnp.einsum('ibd,df->ibf', h1, lp["w1"], precision=hp)
                     + lp["b1"][0], 0.0)
    ff = jnp.einsum('ibf,fd->ibd', ff, lp["w2"], precision=hp) + lp["b2"][0]
    return ln(h1 + ff, lp["ln2_g"][0], lp["ln2_b"][0])


def ref_forward(x, positions, attn_mask, mems, layer_params, u_bias, v_bias):
    pos_enc = positional_encoding_table(MAX_LEN, DIM)[positions]
    hiddens = [x]
    out = x
    for i, lp in enumerate(layer_params):
        cat = jnp.concatenate([mems[i], out], axis=0)
        out = _ref_layer(cat, pos_enc, attn_mask, u_bias, v_bias, lp)
        hiddens.append(out)
    out = out[-TGT_LEN:]
    new_mems = tuple(
        jnp.concatenate([mems[i], hiddens[i]], axis=0)[-MEM_LEN:]
        for i in range(len(hiddens)))
    return out, new_mems


# ------------------------------ parameter init --------------------------------
def _xavier(key, fan_in, fan_out):
    bound = math.sqrt(6.0 / (fan_in + fan_out))
    return jax.random.uniform(key, (fan_in, fan_out), jnp.float32, -bound, bound)


def init_layer_params(key):
    ks = jax.random.split(key, 5)
    return {
        "wqkv": _xavier(ks[0], DIM, 3 * DIM),
        "wpos": _xavier(ks[1], DIM, DIM),
        "wout": _xavier(ks[2], DIM, DIM),
        "w1": _xavier(ks[3], DIM, FF_DIM),
        "b1": jnp.zeros((1, FF_DIM), jnp.float32),
        "w2": _xavier(ks[4], FF_DIM, DIM),
        "b2": jnp.zeros((1, DIM), jnp.float32),
        "ln1_g": jnp.ones((1, DIM), jnp.float32),
        "ln1_b": jnp.zeros((1, DIM), jnp.float32),
        "ln2_g": jnp.ones((1, DIM), jnp.float32),
        "ln2_b": jnp.zeros((1, DIM), jnp.float32),
    }


# ------------------------------------ main -------------------------------------
if __name__ == "__main__":
    key = jax.random.PRNGKey(0)
    k_x, k_mem, k_u, k_v, k_layers = jax.random.split(key, 5)

    # module inputs (batch_first=False): x is (T, B, D), mems are (M, B, D)
    x = jax.random.normal(k_x, (TGT_LEN, BATCH, DIM), jnp.float32)
    mem_keys = jax.random.split(k_mem, NUM_LAYERS + 1)
    mems = tuple(jax.random.normal(mk, (MEM_LEN, BATCH, DIM), jnp.float32)
                 for mk in mem_keys)

    # Transformer-XL convention: positions count down over the key length.
    positions = jnp.arange(SRC_LEN - 1, -1, -1, dtype=jnp.int32)          # (S,)
    # causal mask with memory: query i may attend to keys j <= MEM_LEN + i
    rows = jnp.arange(TGT_LEN)[:, None]
    cols = jnp.arange(SRC_LEN)[None, :]
    attn_mask = cols > (MEM_LEN + rows)                                    # (T, S)

    u_bias = _xavier(k_u, NUM_HEADS, HEAD_DIM)
    v_bias = _xavier(k_v, NUM_HEADS, HEAD_DIM)
    layer_params = tuple(init_layer_params(k)
                         for k in jax.random.split(k_layers, NUM_LAYERS))

    fwd = jax.jit(transformer_xl_forward)
    out, new_mems = fwd(x, positions, attn_mask, mems, layer_params,
                        u_bias, v_bias)
    out = jax.block_until_ready(out)
    new_mems = jax.block_until_ready(new_mems)

    # sanity check against a pure-JAX reference of the same module
    out_r, new_mems_r = ref_forward(x, positions, attn_mask, mems,
                                    layer_params, u_bias, v_bias)
    assert out.shape == (TGT_LEN, BATCH, DIM)
    assert jnp.all(jnp.isfinite(out))
    assert jnp.allclose(out, out_r, atol=1e-2, rtol=1e-2)
    for a, b in zip(new_mems, new_mems_r):
        assert a.shape == (MEM_LEN, BATCH, DIM)
        assert jnp.allclose(a, b, atol=1e-2, rtol=1e-2)

    print("KERNEL_OK")
</pallas_src>

<mosaic_0001>
module attributes {stable_mosaic.version = 11 : i64} {
  func.func @txl_kernel(%arg0: memref<16x32xf32, #tpu.memory_space<vmem>>, %arg1: memref<2x2x8x32xf32, #tpu.memory_space<vmem>>, %arg2: memref<16x32xf32, #tpu.memory_space<vmem>>, %arg3: memref<16x32xf32, #tpu.memory_space<vmem>>, %arg4: memref<2x32x96xf32, #tpu.memory_space<vmem>>, %arg5: memref<2x32x32xf32, #tpu.memory_space<vmem>>, %arg6: memref<2x32x32xf32, #tpu.memory_space<vmem>>, %arg7: memref<2x32x64xf32, #tpu.memory_space<vmem>>, %arg8: memref<2x64x32xf32, #tpu.memory_space<vmem>>, %arg9: memref<2x6x64xf32, #tpu.memory_space<vmem>>, %arg10: memref<2x32xf32, #tpu.memory_space<vmem>>, %arg11: memref<2x16x32xf32, #tpu.memory_space<vmem>>) attributes {dimension_semantics = [], scalar_prefetch = 0 : i64, scratch_operands = 0 : i64, tpu.core_type = #tpu.core_type<tc>} {
    %c0 = arith.constant 0 : index
    %c0_0 = arith.constant 0 : index
    %0 = vector.load %arg0[%c0, %c0_0] : memref<16x32xf32, #tpu.memory_space<vmem>>, vector<16x32xf32>
    %c0_1 = arith.constant 0 : index
    %c0_2 = arith.constant 0 : index
    %1 = vector.load %arg2[%c0_1, %c0_2] : memref<16x32xf32, #tpu.memory_space<vmem>>, vector<16x32xf32>
    %c0_3 = arith.constant 0 : index
    %c0_4 = arith.constant 0 : index
    %2 = vector.load %arg3[%c0_3, %c0_4] : memref<16x32xf32, #tpu.memory_space<vmem>>, vector<16x32xf32>
    %c0_5 = arith.constant 0 : index
    %c0_6 = arith.constant 0 : index
    %3 = vector.load %arg10[%c0_5, %c0_6] : memref<2x32xf32, #tpu.memory_space<vmem>>, vector<2x32xf32>
    %cst = arith.constant 0.353553385 : f32
    %4 = vector.broadcast %cst : f32 to vector<2x32xf32>
    %5 = arith.mulf %3, %4 : vector<2x32xf32>
    %6 = vector.extract_strided_slice %5 {offsets = [0, 0], sizes = [1, 32], strides = [1, 1]} : vector<2x32xf32> to vector<1x32xf32>
    %7 = vector.extract_strided_slice %5 {offsets = [1, 0], sizes = [1, 32], strides = [1, 1]} : vector<2x32xf32> to vector<1x32xf32>
    %8 = tpu.iota {dimensions = array<i32: 0>} : vector<16x16xi32>
    %c7_i32 = arith.constant 7 : i32
    %9 = vector.broadcast %c7_i32 : i32 to vector<16x16xi32>
    %10 = arith.andi %8, %9 : vector<16x16xi32>
    %c7_i32_7 = arith.constant 7 : i32
    %11 = vector.broadcast %c7_i32_7 : i32 to vector<16x16xi32>
    %12 = arith.subi %11, %10 : vector<16x16xi32>
    %c0_i32 = arith.constant 0 : i32
    %13 = vector.broadcast %c0_i32 : i32 to vector<16x16xi32>
    %14 = arith.shrsi %12, %13 : vector<16x16xi32>
    %c1_i32 = arith.constant 1 : i32
    %15 = vector.broadcast %c1_i32 : i32 to vector<16x16xi32>
    %16 = arith.andi %14, %15 : vector<16x16xi32>
    %c1_i32_8 = arith.constant 1 : i32
    %17 = vector.broadcast %c1_i32_8 : i32 to vector<16x16xi32>
    %18 = arith.cmpi eq, %16, %17 : vector<16x16xi32>
    %c1_i32_9 = arith.constant 1 : i32
    %19 = vector.broadcast %c1_i32_9 : i32 to vector<16x16xi32>
    %20 = arith.shrsi %12, %19 : vector<16x16xi32>
    %c1_i32_10 = arith.constant 1 : i32
    %21 = vector.broadcast %c1_i32_10 : i32 to vector<16x16xi32>
    %22 = arith.andi %20, %21 : vector<16x16xi32>
    %c1_i32_11 = arith.constant 1 : i32
    %23 = vector.broadcast %c1_i32_11 : i32 to vector<16x16xi32>
    %24 = arith.cmpi eq, %22, %23 : vector<16x16xi32>
    %c2_i32 = arith.constant 2 : i32
    %25 = vector.broadcast %c2_i32 : i32 to vector<16x16xi32>
    %26 = arith.shrsi %12, %25 : vector<16x16xi32>
    %c1_i32_12 = arith.constant 1 : i32
    %27 = vector.broadcast %c1_i32_12 : i32 to vector<16x16xi32>
    %28 = arith.andi %26, %27 : vector<16x16xi32>
    %c1_i32_13 = arith.constant 1 : i32
    %29 = vector.broadcast %c1_i32_13 : i32 to vector<16x16xi32>
    %30 = arith.cmpi eq, %28, %29 : vector<16x16xi32>
    %c0_14 = arith.constant 0 : index
    %c0_15 = arith.constant 0 : index
    %c0_16 = arith.constant 0 : index
    %c0_17 = arith.constant 0 : index
    %31 = vector.load %arg1[%c0_14, %c0_15, %c0_16, %c0_17] : memref<2x2x8x32xf32, #tpu.memory_space<vmem>>, vector<1x2x8x32xf32>
    %32 = vector.shape_cast %31 : vector<1x2x8x32xf32> to vector<2x8x32xf32>
    %33 = vector.extract_strided_slice %32 {offsets = [0, 0, 0], sizes = [1, 8, 32], strides = [1, 1, 1]} : vector<2x8x32xf32> to vector<1x8x32xf32>
    %34 = vector.shape_cast %33 : vector<1x8x32xf32> to vector<8x32xf32>
    %35 = vector.extract_strided_slice %0 {offsets = [0, 0], sizes = [8, 32], strides = [1, 1]} : vector<16x32xf32> to vector<8x32xf32>
    %36 = vector.extract_strided_slice %32 {offsets = [1, 0, 0], sizes = [1, 8, 32], strides = [1, 1, 1]} : vector<2x8x32xf32> to vector<1x8x32xf32>
    %37 = vector.shape_cast %36 : vector<1x8x32xf32> to vector<8x32xf32>
    %38 = vector.extract_strided_slice %0 {offsets = [8, 0], sizes = [8, 32], strides = [1, 1]} : vector<16x32xf32> to vector<8x32xf32>
    %39 = tpu.concatenate %34, %35, %37, %38 in 0 : vector<8x32xf32>, vector<8x32xf32>, vector<8x32xf32>, vector<8x32xf32> -> vector<32x32xf32>
    %c0_18 = arith.constant 0 : index
    %c0_19 = arith.constant 0 : index
    %c0_20 = arith.constant 0 : index
    %40 = vector.load %arg4[%c0_18, %c0_19, %c0_20] : memref<2x32x96xf32, #tpu.memory_space<vmem>>, vector<1x32x96xf32>
    %41 = vector.shape_cast %40 : vector<1x32x96xf32> to vector<32x96xf32>
    %cst_21 = arith.constant dense<0.000000e+00> : vector<32x96xf32>
    %42 = tpu.matmul %39, %41, %cst_21 {dimension_numbers = #tpu.dot_dimension_numbers<[1], [0], [0], [1], [0, 0, 1, 1], [], []>} : vector<32x32xf32>, vector<32x96xf32>, vector<32x96xf32> -> vector<32x96xf32>
    %c0_22 = arith.constant 0 : index
    %c0_23 = arith.constant 0 : index
    %c0_24 = arith.constant 0 : index
    %43 = vector.load %arg5[%c0_22, %c0_23, %c0_24] : memref<2x32x32xf32, #tpu.memory_space<vmem>>, vector<1x32x32xf32>
    %44 = vector.shape_cast %43 : vector<1x32x32xf32> to vector<32x32xf32>
    %cst_25 = arith.constant dense<0.000000e+00> : vector<16x32xf32>
    %45 = tpu.matmul %1, %44, %cst_25 {dimension_numbers = #tpu.dot_dimension_numbers<[1], [0], [0], [1], [0, 0, 1, 1], [], []>} : vector<16x32xf32>, vector<32x32xf32>, vector<16x32xf32> -> vector<16x32xf32>
    %46 = vector.extract_strided_slice %42 {offsets = [8, 0], sizes = [8, 32], strides = [1, 1]} : vector<32x96xf32> to vector<8x32xf32>
    %47 = vector.extract_strided_slice %42 {offsets = [24, 0], sizes = [8, 32], strides = [1, 1]} : vector<32x96xf32> to vector<8x32xf32>
    %48 = tpu.concatenate %46, %47 in 0 : vector<8x32xf32>, vector<8x32xf32> -> vector<16x32xf32>
    %cst_26 = arith.constant 0.353553385 : f32
    %49 = vector.broadcast %cst_26 : f32 to vector<16x32xf32>
    %50 = arith.mulf %48, %49 : vector<16x32xf32>
    %51 = vector.extract_strided_slice %42 {offsets = [0, 32], sizes = [32, 32], strides = [1, 1]} : vector<32x96xf32> to vector<32x32xf32>
    %52 = vector.extract_strided_slice %42 {offsets = [0, 64], sizes = [32, 32], strides = [1, 1]} : vector<32x96xf32> to vector<32x32xf32>
    %53 = vector.broadcast %6 : vector<1x32xf32> to vector<16x32xf32>
    %54 = arith.addf %50, %53 : vector<16x32xf32>
    %55 = vector.broadcast %7 : vector<1x32xf32> to vector<16x32xf32>
    %56 = arith.addf %50, %55 : vector<16x32xf32>
    %57 = vector.extract_strided_slice %54 {offsets = [0, 0], sizes = [16, 8], strides = [1, 1]} : vector<16x32xf32> to vector<16x8xf32>
    %58 = vector.extract_strided_slice %51 {offsets = [0, 0], sizes = [32, 8], strides = [1, 1]} : vector<32x32xf32> to vector<32x8xf32>
    %cst_27 = arith.constant dense<0.000000e+00> : vector<16x32xf32>
    %59 = tpu.matmul %57, %58, %cst_27 {dimension_numbers = #tpu.dot_dimension_numbers<[1], [1], [0], [0], [0, 0, 1, 0], [], []>} : vector<16x8xf32>, vector<32x8xf32>, vector<16x32xf32> -> vector<16x32xf32>
    %60 = vector.extract_strided_slice %56 {offsets = [0, 0], sizes = [16, 8], strides = [1, 1]} : vector<16x32xf32> to vector<16x8xf32>
    %61 = vector.extract_strided_slice %45 {offsets = [0, 0], sizes = [16, 8], strides = [1, 1]} : vector<16x32xf32> to vector<16x8xf32>
    %cst_28 = arith.constant dense<0.000000e+00> : vector<16x16xf32>
    %62 = tpu.matmul %60, %61, %cst_28 {dimension_numbers = #tpu.dot_dimension_numbers<[1], [1], [0], [0], [0, 0, 1, 0], [], []>} : vector<16x8xf32>, vector<16x8xf32>, vector<16x16xf32> -> vector<16x16xf32>
    %63 = vector.extract_strided_slice %62 {offsets = [0, 1], sizes = [16, 15], strides = [1, 1]} : vector<16x16xf32> to vector<16x15xf32>
    %64 = vector.extract_strided_slice %62 {offsets = [0, 0], sizes = [16, 1], strides = [1, 1]} : vector<16x16xf32> to vector<16x1xf32>
    %65 = tpu.concatenate %63, %64 in 1 : vector<16x15xf32>, vector<16x1xf32> -> vector<16x16xf32>
    %66 = arith.select %18, %65, %62 : vector<16x16xi1>, vector<16x16xf32>
    %67 = vector.extract_strided_slice %66 {offsets = [0, 2], sizes = [16, 14], strides = [1, 1]} : vector<16x16xf32> to vector<16x14xf32>
    %68 = vector.extract_strided_slice %66 {offsets = [0, 0], sizes = [16, 2], strides = [1, 1]} : vector<16x16xf32> to vector<16x2xf32>
    %69 = tpu.concatenate %67, %68 in 1 : vector<16x14xf32>, vector<16x2xf32> -> vector<16x16xf32>
    %70 = arith.select %24, %69, %66 : vector<16x16xi1>, vector<16x16xf32>
    %71 = vector.extract_strided_slice %70 {offsets = [0, 4], sizes = [16, 12], strides = [1, 1]} : vector<16x16xf32> to vector<16x12xf32>
    %72 = vector.extract_strided_slice %70 {offsets = [0, 0], sizes = [16, 4], strides = [1, 1]} : vector<16x16xf32> to vector<16x4xf32>
    %73 = tpu.concatenate %71, %72 in 1 : vector<16x12xf32>, vector<16x4xf32> -> vector<16x16xf32>
    %74 = arith.select %30, %73, %70 : vector<16x16xi1>, vector<16x16xf32>
    %75 = tpu.concatenate %74, %74 in 1 : vector<16x16xf32>, vector<16x16xf32> -> vector<16x32xf32>
    %76 = arith.addf %59, %75 : vector<16x32xf32>
    %77 = arith.addf %76, %2 : vector<16x32xf32>
    %cst_29 = arith.constant dense<0xFF800000> : vector<16xf32>
    %78 = vector.multi_reduction <maximumf>, %77, %cst_29 [1] : vector<16x32xf32> to vector<16xf32>
    %79 = vector.shape_cast %78 : vector<16xf32> to vector<16x1xf32>
    %80 = vector.broadcast %79 : vector<16x1xf32> to vector<16x32xf32>
    %81 = arith.subf %77, %80 : vector<16x32xf32>
    %82 = math.exp %81 : vector<16x32xf32>
    %cst_30 = arith.constant dense<0.000000e+00> : vector<16xf32>
    %83 = vector.multi_reduction <add>, %82, %cst_30 [1] : vector<16x32xf32> to vector<16xf32>
    %84 = vector.shape_cast %83 : vector<16xf32> to vector<16x1xf32>
    %85 = tpu.reciprocal %84 {approx = true} : vector<16x1xf32> -> vector<16x1xf32>
    %86 = vector.broadcast %85 : vector<16x1xf32> to vector<16x32xf32>
    %87 = arith.mulf %82, %86 : vector<16x32xf32>
    %88 = vector.extract_strided_slice %52 {offsets = [0, 0], sizes = [32, 8], strides = [1, 1]} : vector<32x32xf32> to vector<32x8xf32>
    %cst_31 = arith.constant dense<0.000000e+00> : vector<16x8xf32>
    %89 = tpu.matmul %87, %88, %cst_31 {dimension_numbers = #tpu.dot_dimension_numbers<[1], [0], [0], [1], [0, 0, 1, 1], [], []>} : vector<16x32xf32>, vector<32x8xf32>, vector<16x8xf32> -> vector<16x8xf32>
    %90 = vector.extract_strided_slice %54 {offsets = [0, 8], sizes = [16, 8], strides = [1, 1]} : vector<16x32xf32> to vector<16x8xf32>
    %91 = vector.extract_strided_slice %51 {offsets = [0, 8], sizes = [32, 8], strides = [1, 1]} : vector<32x32xf32> to vector<32x8xf32>
    %cst_32 = arith.constant dense<0.000000e+00> : vector<16x32xf32>
    %92 = tpu.matmul %90, %91, %cst_32 {dimension_numbers = #tpu.dot_dimension_numbers<[1], [1], [0], [0], [0, 0, 1, 0], [], []>} : vector<16x8xf32>, vector<32x8xf32>, vector<16x32xf32> -> vector<16x32xf32>
    %93 = vector.extract_strided_slice %56 {offsets = [0, 8], sizes = [16, 8], strides = [1, 1]} : vector<16x32xf32> to vector<16x8xf32>
    %94 = vector.extract_strided_slice %45 {offsets = [0, 8], sizes = [16, 8], strides = [1, 1]} : vector<16x32xf32> to vector<16x8xf32>
    %cst_33 = arith.constant dense<0.000000e+00> : vector<16x16xf32>
    %95 = tpu.matmul %93, %94, %cst_33 {dimension_numbers = #tpu.dot_dimension_numbers<[1], [1], [0], [0], [0, 0, 1, 0], [], []>} : vector<16x8xf32>, vector<16x8xf32>, vector<16x16xf32> -> vector<16x16xf32>
    %96 = vector.extract_strided_slice %95 {offsets = [0, 1], sizes = [16, 15], strides = [1, 1]} : vector<16x16xf32> to vector<16x15xf32>
    %97 = vector.extract_strided_slice %95 {offsets = [0, 0], sizes = [16, 1], strides = [1, 1]} : vector<16x16xf32> to vector<16x1xf32>
    %98 = tpu.concatenate %96, %97 in 1 : vector<16x15xf32>, vector<16x1xf32> -> vector<16x16xf32>
    %99 = arith.select %18, %98, %95 : vector<16x16xi1>, vector<16x16xf32>
    %100 = vector.extract_strided_slice %99 {offsets = [0, 2], sizes = [16, 14], strides = [1, 1]} : vector<16x16xf32> to vector<16x14xf32>
    %101 = vector.extract_strided_slice %99 {offsets = [0, 0], sizes = [16, 2], strides = [1, 1]} : vector<16x16xf32> to vector<16x2xf32>
    %102 = tpu.concatenate %100, %101 in 1 : vector<16x14xf32>, vector<16x2xf32> -> vector<16x16xf32>
    %103 = arith.select %24, %102, %99 : vector<16x16xi1>, vector<16x16xf32>
    %104 = vector.extract_strided_slice %103 {offsets = [0, 4], sizes = [16, 12], strides = [1, 1]} : vector<16x16xf32> to vector<16x12xf32>
    %105 = vector.extract_strided_slice %103 {offsets = [0, 0], sizes = [16, 4], strides = [1, 1]} : vector<16x16xf32> to vector<16x4xf32>
    %106 = tpu.concatenate %104, %105 in 1 : vector<16x12xf32>, vector<16x4xf32> -> vector<16x16xf32>
    %107 = arith.select %30, %106, %103 : vector<16x16xi1>, vector<16x16xf32>
    %108 = tpu.concatenate %107, %107 in 1 : vector<16x16xf32>, vector<16x16xf32> -> vector<16x32xf32>
    %109 = arith.addf %92, %108 : vector<16x32xf32>
    %110 = arith.addf %109, %2 : vector<16x32xf32>
    %cst_34 = arith.constant dense<0xFF800000> : vector<16xf32>
    %111 = vector.multi_reduction <maximumf>, %110, %cst_34 [1] : vector<16x32xf32> to vector<16xf32>
    %112 = vector.shape_cast %111 : vector<16xf32> to vector<16x1xf32>
    %113 = vector.broadcast %112 : vector<16x1xf32> to vector<16x32xf32>
    %114 = arith.subf %110, %113 : vector<16x32xf32>
    %115 = math.exp %114 : vector<16x32xf32>
    %cst_35 = arith.constant dense<0.000000e+00> : vector<16xf32>
    %116 = vector.multi_reduction <add>, %115, %cst_35 [1] : vector<16x32xf32> to vector<16xf32>
    %117 = vector.shape_cast %116 : vector<16xf32> to vector<16x1xf32>
    %118 = tpu.reciprocal %117 {approx = true} : vector<16x1xf32> -> vector<16x1xf32>
    %119 = vector.broadcast %118 : vector<16x1xf32> to vector<16x32xf32>
    %120 = arith.mulf %115, %119 : vector<16x32xf32>
    %121 = vector.extract_strided_slice %52 {offsets = [0, 8], sizes = [32, 8], strides = [1, 1]} : vector<32x32xf32> to vector<32x8xf32>
    %cst_36 = arith.constant dense<0.000000e+00> : vector<16x8xf32>
    %122 = tpu.matmul %120, %121, %cst_36 {dimension_numbers = #tpu.dot_dimension_numbers<[1], [0], [0], [1], [0, 0, 1, 1], [], []>} : vector<16x32xf32>, vector<32x8xf32>, vector<16x8xf32> -> vector<16x8xf32>
    %123 = vector.extract_strided_slice %54 {offsets = [0, 16], sizes = [16, 8], strides = [1, 1]} : vector<16x32xf32> to vector<16x8xf32>
    %124 = vector.extract_strided_slice %51 {offsets = [0, 16], sizes = [32, 8], strides = [1, 1]} : vector<32x32xf32> to vector<32x8xf32>
    %cst_37 = arith.constant dense<0.000000e+00> : vector<16x32xf32>
    %125 = tpu.matmul %123, %124, %cst_37 {dimension_numbers = #tpu.dot_dimension_numbers<[1], [1], [0], [0], [0, 0, 1, 0], [], []>} : vector<16x8xf32>, vector<32x8xf32>, vector<16x32xf32> -> vector<16x32xf32>
    %126 = vector.extract_strided_slice %56 {offsets = [0, 16], sizes = [16, 8], strides = [1, 1]} : vector<16x32xf32> to vector<16x8xf32>
    %127 = vector.extract_strided_slice %45 {offsets = [0, 16], sizes = [16, 8], strides = [1, 1]} : vector<16x32xf32> to vector<16x8xf32>
    %cst_38 = arith.constant dense<0.000000e+00> : vector<16x16xf32>
    %128 = tpu.matmul %126, %127, %cst_38 {dimension_numbers = #tpu.dot_dimension_numbers<[1], [1], [0], [0], [0, 0, 1, 0], [], []>} : vector<16x8xf32>, vector<16x8xf32>, vector<16x16xf32> -> vector<16x16xf32>
    %129 = vector.extract_strided_slice %128 {offsets = [0, 1], sizes = [16, 15], strides = [1, 1]} : vector<16x16xf32> to vector<16x15xf32>
    %130 = vector.extract_strided_slice %128 {offsets = [0, 0], sizes = [16, 1], strides = [1, 1]} : vector<16x16xf32> to vector<16x1xf32>
    %131 = tpu.concatenate %129, %130 in 1 : vector<16x15xf32>, vector<16x1xf32> -> vector<16x16xf32>
    %132 = arith.select %18, %131, %128 : vector<16x16xi1>, vector<16x16xf32>
    %133 = vector.extract_strided_slice %132 {offsets = [0, 2], sizes = [16, 14], strides = [1, 1]} : vector<16x16xf32> to vector<16x14xf32>
    %134 = vector.extract_strided_slice %132 {offsets = [0, 0], sizes = [16, 2], strides = [1, 1]} : vector<16x16xf32> to vector<16x2xf32>
    %135 = tpu.concatenate %133, %134 in 1 : vector<16x14xf32>, vector<16x2xf32> -> vector<16x16xf32>
    %136 = arith.select %24, %135, %132 : vector<16x16xi1>, vector<16x16xf32>
    %137 = vector.extract_strided_slice %136 {offsets = [0, 4], sizes = [16, 12], strides = [1, 1]} : vector<16x16xf32> to vector<16x12xf32>
    %138 = vector.extract_strided_slice %136 {offsets = [0, 0], sizes = [16, 4], strides = [1, 1]} : vector<16x16xf32> to vector<16x4xf32>
    %139 = tpu.concatenate %137, %138 in 1 : vector<16x12xf32>, vector<16x4xf32> -> vector<16x16xf32>
    %140 = arith.select %30, %139, %136 : vector<16x16xi1>, vector<16x16xf32>
    %141 = tpu.concatenate %140, %140 in 1 : vector<16x16xf32>, vector<16x16xf32> -> vector<16x32xf32>
    %142 = arith.addf %125, %141 : vector<16x32xf32>
    %143 = arith.addf %142, %2 : vector<16x32xf32>
    %cst_39 = arith.constant dense<0xFF800000> : vector<16xf32>
    %144 = vector.multi_reduction <maximumf>, %143, %cst_39 [1] : vector<16x32xf32> to vector<16xf32>
    %145 = vector.shape_cast %144 : vector<16xf32> to vector<16x1xf32>
    %146 = vector.broadcast %145 : vector<16x1xf32> to vector<16x32xf32>
    %147 = arith.subf %143, %146 : vector<16x32xf32>
    %148 = math.exp %147 : vector<16x32xf32>
    %cst_40 = arith.constant dense<0.000000e+00> : vector<16xf32>
    %149 = vector.multi_reduction <add>, %148, %cst_40 [1] : vector<16x32xf32> to vector<16xf32>
    %150 = vector.shape_cast %149 : vector<16xf32> to vector<16x1xf32>
    %151 = tpu.reciprocal %150 {approx = true} : vector<16x1xf32> -> vector<16x1xf32>
    %152 = vector.broadcast %151 : vector<16x1xf32> to vector<16x32xf32>
    %153 = arith.mulf %148, %152 : vector<16x32xf32>
    %154 = vector.extract_strided_slice %52 {offsets = [0, 16], sizes = [32, 8], strides = [1, 1]} : vector<32x32xf32> to vector<32x8xf32>
    %cst_41 = arith.constant dense<0.000000e+00> : vector<16x8xf32>
    %155 = tpu.matmul %153, %154, %cst_41 {dimension_numbers = #tpu.dot_dimension_numbers<[1], [0], [0], [1], [0, 0, 1, 1], [], []>} : vector<16x32xf32>, vector<32x8xf32>, vector<16x8xf32> -> vector<16x8xf32>
    %156 = vector.extract_strided_slice %54 {offsets = [0, 24], sizes = [16, 8], strides = [1, 1]} : vector<16x32xf32> to vector<16x8xf32>
    %157 = vector.extract_strided_slice %51 {offsets = [0, 24], sizes = [32, 8], strides = [1, 1]} : vector<32x32xf32> to vector<32x8xf32>
    %cst_42 = arith.constant dense<0.000000e+00> : vector<16x32xf32>
    %158 = tpu.matmul %156, %157, %cst_42 {dimension_numbers = #tpu.dot_dimension_numbers<[1], [1], [0], [0], [0, 0, 1, 0], [], []>} : vector<16x8xf32>, vector<32x8xf32>, vector<16x32xf32> -> vector<16x32xf32>
    %159 = vector.extract_strided_slice %56 {offsets = [0, 24], sizes = [16, 8], strides = [1, 1]} : vector<16x32xf32> to vector<16x8xf32>
    %160 = vector.extract_strided_slice %45 {offsets = [0, 24], sizes = [16, 8], strides = [1, 1]} : vector<16x32xf32> to vector<16x8xf32>
    %cst_43 = arith.constant dense<0.000000e+00> : vector<16x16xf32>
    %161 = tpu.matmul %159, %160, %cst_43 {dimension_numbers = #tpu.dot_dimension_numbers<[1], [1], [0], [0], [0, 0, 1, 0], [], []>} : vector<16x8xf32>, vector<16x8xf32>, vector<16x16xf32> -> vector<16x16xf32>
    %162 = vector.extract_strided_slice %161 {offsets = [0, 1], sizes = [16, 15], strides = [1, 1]} : vector<16x16xf32> to vector<16x15xf32>
    %163 = vector.extract_strided_slice %161 {offsets = [0, 0], sizes = [16, 1], strides = [1, 1]} : vector<16x16xf32> to vector<16x1xf32>
    %164 = tpu.concatenate %162, %163 in 1 : vector<16x15xf32>, vector<16x1xf32> -> vector<16x16xf32>
    %165 = arith.select %18, %164, %161 : vector<16x16xi1>, vector<16x16xf32>
    %166 = vector.extract_strided_slice %165 {offsets = [0, 2], sizes = [16, 14], strides = [1, 1]} : vector<16x16xf32> to vector<16x14xf32>
    %167 = vector.extract_strided_slice %165 {offsets = [0, 0], sizes = [16, 2], strides = [1, 1]} : vector<16x16xf32> to vector<16x2xf32>
    %168 = tpu.concatenate %166, %167 in 1 : vector<16x14xf32>, vector<16x2xf32> -> vector<16x16xf32>
    %169 = arith.select %24, %168, %165 : vector<16x16xi1>, vector<16x16xf32>
    %170 = vector.extract_strided_slice %169 {offsets = [0, 4], sizes = [16, 12], strides = [1, 1]} : vector<16x16xf32> to vector<16x12xf32>
    %171 = vector.extract_strided_slice %169 {offsets = [0, 0], sizes = [16, 4], strides = [1, 1]} : vector<16x16xf32> to vector<16x4xf32>
    %172 = tpu.concatenate %170, %171 in 1 : vector<16x12xf32>, vector<16x4xf32> -> vector<16x16xf32>
    %173 = arith.select %30, %172, %169 : vector<16x16xi1>, vector<16x16xf32>
    %174 = tpu.concatenate %173, %173 in 1 : vector<16x16xf32>, vector<16x16xf32> -> vector<16x32xf32>
    %175 = arith.addf %158, %174 : vector<16x32xf32>
    %176 = arith.addf %175, %2 : vector<16x32xf32>
    %cst_44 = arith.constant dense<0xFF800000> : vector<16xf32>
    %177 = vector.multi_reduction <maximumf>, %176, %cst_44 [1] : vector<16x32xf32> to vector<16xf32>
    %178 = vector.shape_cast %177 : vector<16xf32> to vector<16x1xf32>
    %179 = vector.broadcast %178 : vector<16x1xf32> to vector<16x32xf32>
    %180 = arith.subf %176, %179 : vector<16x32xf32>
    %181 = math.exp %180 : vector<16x32xf32>
    %cst_45 = arith.constant dense<0.000000e+00> : vector<16xf32>
    %182 = vector.multi_reduction <add>, %181, %cst_45 [1] : vector<16x32xf32> to vector<16xf32>
    %183 = vector.shape_cast %182 : vector<16xf32> to vector<16x1xf32>
    %184 = tpu.reciprocal %183 {approx = true} : vector<16x1xf32> -> vector<16x1xf32>
    %185 = vector.broadcast %184 : vector<16x1xf32> to vector<16x32xf32>
    %186 = arith.mulf %181, %185 : vector<16x32xf32>
    %187 = vector.extract_strided_slice %52 {offsets = [0, 24], sizes = [32, 8], strides = [1, 1]} : vector<32x32xf32> to vector<32x8xf32>
    %cst_46 = arith.constant dense<0.000000e+00> : vector<16x8xf32>
    %188 = tpu.matmul %186, %187, %cst_46 {dimension_numbers = #tpu.dot_dimension_numbers<[1], [0], [0], [1], [0, 0, 1, 1], [], []>} : vector<16x32xf32>, vector<32x8xf32>, vector<16x8xf32> -> vector<16x8xf32>
    %189 = tpu.concatenate %89, %122, %155, %188 in 1 : vector<16x8xf32>, vector<16x8xf32>, vector<16x8xf32>, vector<16x8xf32> -> vector<16x32xf32>
    %c0_47 = arith.constant 0 : index
    %c0_48 = arith.constant 0 : index
    %c0_49 = arith.constant 0 : index
    %190 = vector.load %arg6[%c0_47, %c0_48, %c0_49] : memref<2x32x32xf32, #tpu.memory_space<vmem>>, vector<1x32x32xf32>
    %191 = vector.shape_cast %190 : vector<1x32x32xf32> to vector<32x32xf32>
    %cst_50 = arith.constant dense<0.000000e+00> : vector<16x32xf32>
    %192 = tpu.matmul %189, %191, %cst_50 {dimension_numbers = #tpu.dot_dimension_numbers<[1], [0], [0], [1], [0, 0, 1, 1], [], []>} : vector<16x32xf32>, vector<32x32xf32>, vector<16x32xf32> -> vector<16x32xf32>
    %c0_51 = arith.constant 0 : index
    %c0_52 = arith.constant 0 : index
    %c0_53 = arith.constant 0 : index
    %193 = vector.load %arg9[%c0_51, %c0_52, %c0_53] : memref<2x6x64xf32, #tpu.memory_space<vmem>>, vector<1x6x64xf32>
    %194 = vector.shape_cast %193 : vector<1x6x64xf32> to vector<6x64xf32>
    %195 = vector.extract_strided_slice %194 {offsets = [0, 0], sizes = [1, 32], strides = [1, 1]} : vector<6x64xf32> to vector<1x32xf32>
    %196 = vector.extract_strided_slice %194 {offsets = [1, 0], sizes = [1, 32], strides = [1, 1]} : vector<6x64xf32> to vector<1x32xf32>
    %197 = vector.extract_strided_slice %194 {offsets = [2, 0], sizes = [1, 32], strides = [1, 1]} : vector<6x64xf32> to vector<1x32xf32>
    %198 = vector.extract_strided_slice %194 {offsets = [3, 0], sizes = [1, 32], strides = [1, 1]} : vector<6x64xf32> to vector<1x32xf32>
    %199 = vector.extract_strided_slice %194 {offsets = [4, 0], sizes = [1, 32], strides = [1, 1]} : vector<6x64xf32> to vector<1x32xf32>
    %200 = vector.extract_strided_slice %194 {offsets = [5, 0], sizes = [1, 64], strides = [1, 1]} : vector<6x64xf32> to vector<1x64xf32>
    %201 = arith.addf %0, %192 : vector<16x32xf32>
    %cst_54 = arith.constant dense<0.000000e+00> : vector<16xf32>
    %202 = vector.multi_reduction <add>, %201, %cst_54 [1] : vector<16x32xf32> to vector<16xf32>
    %203 = vector.shape_cast %202 : vector<16xf32> to vector<16x1xf32>
    %cst_55 = arith.constant 3.200000e+01 : f32
    %204 = vector.broadcast %cst_55 : f32 to vector<16x1xf32>
    %205 = arith.divf %203, %204 : vector<16x1xf32>
    %206 = vector.broadcast %205 : vector<16x1xf32> to vector<16x32xf32>
    %207 = arith.subf %201, %206 : vector<16x32xf32>
    %208 = vector.broadcast %205 : vector<16x1xf32> to vector<16x32xf32>
    %209 = arith.subf %201, %208 : vector<16x32xf32>
    %210 = arith.mulf %207, %209 : vector<16x32xf32>
    %cst_56 = arith.constant dense<0.000000e+00> : vector<16xf32>
    %211 = vector.multi_reduction <add>, %210, %cst_56 [1] : vector<16x32xf32> to vector<16xf32>
    %212 = vector.shape_cast %211 : vector<16xf32> to vector<16x1xf32>
    %cst_57 = arith.constant 3.200000e+01 : f32
    %213 = vector.broadcast %cst_57 : f32 to vector<16x1xf32>
    %214 = arith.divf %212, %213 : vector<16x1xf32>
    %215 = vector.broadcast %205 : vector<16x1xf32> to vector<16x32xf32>
    %216 = arith.subf %201, %215 : vector<16x32xf32>
    %cst_58 = arith.constant 9.99999974E-6 : f32
    %217 = vector.broadcast %cst_58 : f32 to vector<16x1xf32>
    %218 = arith.addf %214, %217 : vector<16x1xf32>
    %219 = math.rsqrt %218 : vector<16x1xf32>
    %220 = vector.broadcast %219 : vector<16x1xf32> to vector<16x32xf32>
    %221 = arith.mulf %216, %220 : vector<16x32xf32>
    %222 = vector.broadcast %195 : vector<1x32xf32> to vector<16x32xf32>
    %223 = arith.mulf %221, %222 : vector<16x32xf32>
    %224 = vector.broadcast %196 : vector<1x32xf32> to vector<16x32xf32>
    %225 = arith.addf %223, %224 : vector<16x32xf32>
    %c0_59 = arith.constant 0 : index
    %c0_60 = arith.constant 0 : index
    %c0_61 = arith.constant 0 : index
    %226 = vector.load %arg7[%c0_59, %c0_60, %c0_61] : memref<2x32x64xf32, #tpu.memory_space<vmem>>, vector<1x32x64xf32>
    %227 = vector.shape_cast %226 : vector<1x32x64xf32> to vector<32x64xf32>
    %cst_62 = arith.constant dense<0.000000e+00> : vector<16x64xf32>
    %228 = tpu.matmul %225, %227, %cst_62 {dimension_numbers = #tpu.dot_dimension_numbers<[1], [0], [0], [1], [0, 0, 1, 1], [], []>} : vector<16x32xf32>, vector<32x64xf32>, vector<16x64xf32> -> vector<16x64xf32>
    %229 = vector.broadcast %200 : vector<1x64xf32> to vector<16x64xf32>
    %230 = arith.addf %228, %229 : vector<16x64xf32>
    %cst_63 = arith.constant 0.000000e+00 : f32
    %231 = vector.broadcast %cst_63 : f32 to vector<16x64xf32>
    %232 = arith.maximumf %230, %231 : vector<16x64xf32>
    %c0_64 = arith.constant 0 : index
    %c0_65 = arith.constant 0 : index
    %c0_66 = arith.constant 0 : index
    %233 = vector.load %arg8[%c0_64, %c0_65, %c0_66] : memref<2x64x32xf32, #tpu.memory_space<vmem>>, vector<1x64x32xf32>
    %234 = vector.shape_cast %233 : vector<1x64x32xf32> to vector<64x32xf32>
    %cst_67 = arith.constant dense<0.000000e+00> : vector<16x32xf32>
    %235 = tpu.matmul %232, %234, %cst_67 {dimension_numbers = #tpu.dot_dimension_numbers<[1], [0], [0], [1], [0, 0, 1, 1], [], []>} : vector<16x64xf32>, vector<64x32xf32>, vector<16x32xf32> -> vector<16x32xf32>
    %236 = vector.broadcast %199 : vector<1x32xf32> to vector<16x32xf32>
    %237 = arith.addf %235, %236 : vector<16x32xf32>
    %238 = arith.addf %225, %237 : vector<16x32xf32>
    %cst_68 = arith.constant dense<0.000000e+00> : vector<16xf32>
    %239 = vector.multi_reduction <add>, %238, %cst_68 [1] : vector<16x32xf32> to vector<16xf32>
    %240 = vector.shape_cast %239 : vector<16xf32> to vector<16x1xf32>
    %cst_69 = arith.constant 3.200000e+01 : f32
    %241 = vector.broadcast %cst_69 : f32 to vector<16x1xf32>
    %242 = arith.divf %240, %241 : vector<16x1xf32>
    %243 = vector.broadcast %242 : vector<16x1xf32> to vector<16x32xf32>
    %244 = arith.subf %238, %243 : vector<16x32xf32>
    %245 = vector.broadcast %242 : vector<16x1xf32> to vector<16x32xf32>
    %246 = arith.subf %238, %245 : vector<16x32xf32>
    %247 = arith.mulf %244, %246 : vector<16x32xf32>
    %cst_70 = arith.constant dense<0.000000e+00> : vector<16xf32>
    %248 = vector.multi_reduction <add>, %247, %cst_70 [1] : vector<16x32xf32> to vector<16xf32>
    %249 = vector.shape_cast %248 : vector<16xf32> to vector<16x1xf32>
    %cst_71 = arith.constant 3.200000e+01 : f32
    %250 = vector.broadcast %cst_71 : f32 to vector<16x1xf32>
    %251 = arith.divf %249, %250 : vector<16x1xf32>
    %252 = vector.broadcast %242 : vector<16x1xf32> to vector<16x32xf32>
    %253 = arith.subf %238, %252 : vector<16x32xf32>
    %cst_72 = arith.constant 9.99999974E-6 : f32
    %254 = vector.broadcast %cst_72 : f32 to vector<16x1xf32>
    %255 = arith.addf %251, %254 : vector<16x1xf32>
    %256 = math.rsqrt %255 : vector<16x1xf32>
    %257 = vector.broadcast %256 : vector<16x1xf32> to vector<16x32xf32>
    %258 = arith.mulf %253, %257 : vector<16x32xf32>
    %259 = vector.broadcast %197 : vector<1x32xf32> to vector<16x32xf32>
    %260 = arith.mulf %258, %259 : vector<16x32xf32>
    %261 = vector.broadcast %198 : vector<1x32xf32> to vector<16x32xf32>
    %262 = arith.addf %260, %261 : vector<16x32xf32>
    %c0_73 = arith.constant 0 : index
    %c0_74 = arith.constant 0 : index
    %c0_75 = arith.constant 0 : index
    %263 = vector.load %arg11[%c0_73, %c0_74, %c0_75] : memref<2x16x32xf32, #tpu.memory_space<vmem>>, vector<1x16x32xf32>
    %264 = vector.shape_cast %263 : vector<1x16x32xf32> to vector<16x32xf32>
    %265 = vector.shape_cast %262 : vector<16x32xf32> to vector<1x16x32xf32>
    tpu.vector_store %arg11[%c0_73, %c0_74, %c0_75], %265 {strides = array<i32>} : memref<2x16x32xf32, #tpu.memory_space<vmem>>, vector<1x16x32xf32>,
    %c1 = arith.constant 1 : index
    %c0_76 = arith.constant 0 : index
    %c0_77 = arith.constant 0 : index
    %c0_78 = arith.constant 0 : index
    %266 = vector.load %arg1[%c1, %c0_76, %c0_77, %c0_78] : memref<2x2x8x32xf32, #tpu.memory_space<vmem>>, vector<1x2x8x32xf32>
    %267 = vector.shape_cast %266 : vector<1x2x8x32xf32> to vector<2x8x32xf32>
    %268 = vector.extract_strided_slice %267 {offsets = [0, 0, 0], sizes = [1, 8, 32], strides = [1, 1, 1]} : vector<2x8x32xf32> to vector<1x8x32xf32>
    %269 = vector.shape_cast %268 : vector<1x8x32xf32> to vector<8x32xf32>
    %270 = vector.extract_strided_slice %262 {offsets = [0, 0], sizes = [8, 32], strides = [1, 1]} : vector<16x32xf32> to vector<8x32xf32>
    %271 = vector.extract_strided_slice %267 {offsets = [1, 0, 0], sizes = [1, 8, 32], strides = [1, 1, 1]} : vector<2x8x32xf32> to vector<1x8x32xf32>
    %272 = vector.shape_cast %271 : vector<1x8x32xf32> to vector<8x32xf32>
    %273 = vector.extract_strided_slice %262 {offsets = [8, 0], sizes = [8, 32], strides = [1, 1]} : vector<16x32xf32> to vector<8x32xf32>
    %274 = tpu.concatenate %269, %270, %272, %273 in 0 : vector<8x32xf32>, vector<8x32xf32>, vector<8x32xf32>, vector<8x32xf32> -> vector<32x32xf32>
    %c1_79 = arith.constant 1 : index
    %c0_80 = arith.constant 0 : index
    %c0_81 = arith.constant 0 : index
    %275 = vector.load %arg4[%c1_79, %c0_80, %c0_81] : memref<2x32x96xf32, #tpu.memory_space<vmem>>, vector<1x32x96xf32>
    %276 = vector.shape_cast %275 : vector<1x32x96xf32> to vector<32x96xf32>
    %cst_82 = arith.constant dense<0.000000e+00> : vector<32x96xf32>
    %277 = tpu.matmul %274, %276, %cst_82 {dimension_numbers = #tpu.dot_dimension_numbers<[1], [0], [0], [1], [0, 0, 1, 1], [], []>} : vector<32x32xf32>, vector<32x96xf32>, vector<32x96xf32> -> vector<32x96xf32>
    %c1_83 = arith.constant 1 : index
    %c0_84 = arith.constant 0 : index
    %c0_85 = arith.constant 0 : index
    %278 = vector.load %arg5[%c1_83, %c0_84, %c0_85] : memref<2x32x32xf32, #tpu.memory_space<vmem>>, vector<1x32x32xf32>
    %279 = vector.shape_cast %278 : vector<1x32x32xf32> to vector<32x32xf32>
    %cst_86 = arith.constant dense<0.000000e+00> : vector<16x32xf32>
    %280 = tpu.matmul %1, %279, %cst_86 {dimension_numbers = #tpu.dot_dimension_numbers<[1], [0], [0], [1], [0, 0, 1, 1], [], []>} : vector<16x32xf32>, vector<32x32xf32>, vector<16x32xf32> -> vector<16x32xf32>
    %281 = vector.extract_strided_slice %277 {offsets = [8, 0], sizes = [8, 32], strides = [1, 1]} : vector<32x96xf32> to vector<8x32xf32>
    %282 = vector.extract_strided_slice %277 {offsets = [24, 0], sizes = [8, 32], strides = [1, 1]} : vector<32x96xf32> to vector<8x32xf32>
    %283 = tpu.concatenate %281, %282 in 0 : vector<8x32xf32>, vector<8x32xf32> -> vector<16x32xf32>
    %cst_87 = arith.constant 0.353553385 : f32
    %284 = vector.broadcast %cst_87 : f32 to vector<16x32xf32>
    %285 = arith.mulf %283, %284 : vector<16x32xf32>
    %286 = vector.extract_strided_slice %277 {offsets = [0, 32], sizes = [32, 32], strides = [1, 1]} : vector<32x96xf32> to vector<32x32xf32>
    %287 = vector.extract_strided_slice %277 {offsets = [0, 64], sizes = [32, 32], strides = [1, 1]} : vector<32x96xf32> to vector<32x32xf32>
    %288 = vector.broadcast %6 : vector<1x32xf32> to vector<16x32xf32>
    %289 = arith.addf %285, %288 : vector<16x32xf32>
    %290 = vector.broadcast %7 : vector<1x32xf32> to vector<16x32xf32>
    %291 = arith.addf %285, %290 : vector<16x32xf32>
    %292 = vector.extract_strided_slice %289 {offsets = [0, 0], sizes = [16, 8], strides = [1, 1]} : vector<16x32xf32> to vector<16x8xf32>
    %293 = vector.extract_strided_slice %286 {offsets = [0, 0], sizes = [32, 8], strides = [1, 1]} : vector<32x32xf32> to vector<32x8xf32>
    %cst_88 = arith.constant dense<0.000000e+00> : vector<16x32xf32>
    %294 = tpu.matmul %292, %293, %cst_88 {dimension_numbers = #tpu.dot_dimension_numbers<[1], [1], [0], [0], [0, 0, 1, 0], [], []>} : vector<16x8xf32>, vector<32x8xf32>, vector<16x32xf32> -> vector<16x32xf32>
    %295 = vector.extract_strided_slice %291 {offsets = [0, 0], sizes = [16, 8], strides = [1, 1]} : vector<16x32xf32> to vector<16x8xf32>
    %296 = vector.extract_strided_slice %280 {offsets = [0, 0], sizes = [16, 8], strides = [1, 1]} : vector<16x32xf32> to vector<16x8xf32>
    %cst_89 = arith.constant dense<0.000000e+00> : vector<16x16xf32>
    %297 = tpu.matmul %295, %296, %cst_89 {dimension_numbers = #tpu.dot_dimension_numbers<[1], [1], [0], [0], [0, 0, 1, 0], [], []>} : vector<16x8xf32>, vector<16x8xf32>, vector<16x16xf32> -> vector<16x16xf32>
    %298 = vector.extract_strided_slice %297 {offsets = [0, 1], sizes = [16, 15], strides = [1, 1]} : vector<16x16xf32> to vector<16x15xf32>
    %299 = vector.extract_strided_slice %297 {offsets = [0, 0], sizes = [16, 1], strides = [1, 1]} : vector<16x16xf32> to vector<16x1xf32>
    %300 = tpu.concatenate %298, %299 in 1 : vector<16x15xf32>, vector<16x1xf32> -> vector<16x16xf32>
    %301 = arith.select %18, %300, %297 : vector<16x16xi1>, vector<16x16xf32>
    %302 = vector.extract_strided_slice %301 {offsets = [0, 2], sizes = [16, 14], strides = [1, 1]} : vector<16x16xf32> to vector<16x14xf32>
    %303 = vector.extract_strided_slice %301 {offsets = [0, 0], sizes = [16, 2], strides = [1, 1]} : vector<16x16xf32> to vector<16x2xf32>
    %304 = tpu.concatenate %302, %303 in 1 : vector<16x14xf32>, vector<16x2xf32> -> vector<16x16xf32>
    %305 = arith.select %24, %304, %301 : vector<16x16xi1>, vector<16x16xf32>
    %306 = vector.extract_strided_slice %305 {offsets = [0, 4], sizes = [16, 12], strides = [1, 1]} : vector<16x16xf32> to vector<16x12xf32>
    %307 = vector.extract_strided_slice %305 {offsets = [0, 0], sizes = [16, 4], strides = [1, 1]} : vector<16x16xf32> to vector<16x4xf32>
    %308 = tpu.concatenate %306, %307 in 1 : vector<16x12xf32>, vector<16x4xf32> -> vector<16x16xf32>
    %309 = arith.select %30, %308, %305 : vector<16x16xi1>, vector<16x16xf32>
    %310 = tpu.concatenate %309, %309 in 1 : vector<16x16xf32>, vector<16x16xf32> -> vector<16x32xf32>
    %311 = arith.addf %294, %310 : vector<16x32xf32>
    %312 = arith.addf %311, %2 : vector<16x32xf32>
    %cst_90 = arith.constant dense<0xFF800000> : vector<16xf32>
    %313 = vector.multi_reduction <maximumf>, %312, %cst_90 [1] : vector<16x32xf32> to vector<16xf32>
    %314 = vector.shape_cast %313 : vector<16xf32> to vector<16x1xf32>
    %315 = vector.broadcast %314 : vector<16x1xf32> to vector<16x32xf32>
    %316 = arith.subf %312, %315 : vector<16x32xf32>
    %317 = math.exp %316 : vector<16x32xf32>
    %cst_91 = arith.constant dense<0.000000e+00> : vector<16xf32>
    %318 = vector.multi_reduction <add>, %317, %cst_91 [1] : vector<16x32xf32> to vector<16xf32>
    %319 = vector.shape_cast %318 : vector<16xf32> to vector<16x1xf32>
    %320 = tpu.reciprocal %319 {approx = true} : vector<16x1xf32> -> vector<16x1xf32>
    %321 = vector.broadcast %320 : vector<16x1xf32> to vector<16x32xf32>
    %322 = arith.mulf %317, %321 : vector<16x32xf32>
    %323 = vector.extract_strided_slice %287 {offsets = [0, 0], sizes = [32, 8], strides = [1, 1]} : vector<32x32xf32> to vector<32x8xf32>
    %cst_92 = arith.constant dense<0.000000e+00> : vector<16x8xf32>
    %324 = tpu.matmul %322, %323, %cst_92 {dimension_numbers = #tpu.dot_dimension_numbers<[1], [0], [0], [1], [0, 0, 1, 1], [], []>} : vector<16x32xf32>, vector<32x8xf32>, vector<16x8xf32> -> vector<16x8xf32>
    %325 = vector.extract_strided_slice %289 {offsets = [0, 8], sizes = [16, 8], strides = [1, 1]} : vector<16x32xf32> to vector<16x8xf32>
    %326 = vector.extract_strided_slice %286 {offsets = [0, 8], sizes = [32, 8], strides = [1, 1]} : vector<32x32xf32> to vector<32x8xf32>
    %cst_93 = arith.constant dense<0.000000e+00> : vector<16x32xf32>
    %327 = tpu.matmul %325, %326, %cst_93 {dimension_numbers = #tpu.dot_dimension_numbers<[1], [1], [0], [0], [0, 0, 1, 0], [], []>} : vector<16x8xf32>, vector<32x8xf32>, vector<16x32xf32> -> vector<16x32xf32>
    %328 = vector.extract_strided_slice %291 {offsets = [0, 8], sizes = [16, 8], strides = [1, 1]} : vector<16x32xf32> to vector<16x8xf32>
    %329 = vector.extract_strided_slice %280 {offsets = [0, 8], sizes = [16, 8], strides = [1, 1]} : vector<16x32xf32> to vector<16x8xf32>
    %cst_94 = arith.constant dense<0.000000e+00> : vector<16x16xf32>
    %330 = tpu.matmul %328, %329, %cst_94 {dimension_numbers = #tpu.dot_dimension_numbers<[1], [1], [0], [0], [0, 0, 1, 0], [], []>} : vector<16x8xf32>, vector<16x8xf32>, vector<16x16xf32> -> vector<16x16xf32>
    %331 = vector.extract_strided_slice %330 {offsets = [0, 1], sizes = [16, 15], strides = [1, 1]} : vector<16x16xf32> to vector<16x15xf32>
    %332 = vector.extract_strided_slice %330 {offsets = [0, 0], sizes = [16, 1], strides = [1, 1]} : vector<16x16xf32> to vector<16x1xf32>
    %333 = tpu.concatenate %331, %332 in 1 : vector<16x15xf32>, vector<16x1xf32> -> vector<16x16xf32>
    %334 = arith.select %18, %333, %330 : vector<16x16xi1>, vector<16x16xf32>
    %335 = vector.extract_strided_slice %334 {offsets = [0, 2], sizes = [16, 14], strides = [1, 1]} : vector<16x16xf32> to vector<16x14xf32>
    %336 = vector.extract_strided_slice %334 {offsets = [0, 0], sizes = [16, 2], strides = [1, 1]} : vector<16x16xf32> to vector<16x2xf32>
    %337 = tpu.concatenate %335, %336 in 1 : vector<16x14xf32>, vector<16x2xf32> -> vector<16x16xf32>
    %338 = arith.select %24, %337, %334 : vector<16x16xi1>, vector<16x16xf32>
    %339 = vector.extract_strided_slice %338 {offsets = [0, 4], sizes = [16, 12], strides = [1, 1]} : vector<16x16xf32> to vector<16x12xf32>
    %340 = vector.extract_strided_slice %338 {offsets = [0, 0], sizes = [16, 4], strides = [1, 1]} : vector<16x16xf32> to vector<16x4xf32>
    %341 = tpu.concatenate %339, %340 in 1 : vector<16x12xf32>, vector<16x4xf32> -> vector<16x16xf32>
    %342 = arith.select %30, %341, %338 : vector<16x16xi1>, vector<16x16xf32>
    %343 = tpu.concatenate %342, %342 in 1 : vector<16x16xf32>, vector<16x16xf32> -> vector<16x32xf32>
    %344 = arith.addf %327, %343 : vector<16x32xf32>
    %345 = arith.addf %344, %2 : vector<16x32xf32>
    %cst_95 = arith.constant dense<0xFF800000> : vector<16xf32>
    %346 = vector.multi_reduction <maximumf>, %345, %cst_95 [1] : vector<16x32xf32> to vector<16xf32>
    %347 = vector.shape_cast %346 : vector<16xf32> to vector<16x1xf32>
    %348 = vector.broadcast %347 : vector<16x1xf32> to vector<16x32xf32>
    %349 = arith.subf %345, %348 : vector<16x32xf32>
    %350 = math.exp %349 : vector<16x32xf32>
    %cst_96 = arith.constant dense<0.000000e+00> : vector<16xf32>
    %351 = vector.multi_reduction <add>, %350, %cst_96 [1] : vector<16x32xf32> to vector<16xf32>
    %352 = vector.shape_cast %351 : vector<16xf32> to vector<16x1xf32>
    %353 = tpu.reciprocal %352 {approx = true} : vector<16x1xf32> -> vector<16x1xf32>
    %354 = vector.broadcast %353 : vector<16x1xf32> to vector<16x32xf32>
    %355 = arith.mulf %350, %354 : vector<16x32xf32>
    %356 = vector.extract_strided_slice %287 {offsets = [0, 8], sizes = [32, 8], strides = [1, 1]} : vector<32x32xf32> to vector<32x8xf32>
    %cst_97 = arith.constant dense<0.000000e+00> : vector<16x8xf32>
    %357 = tpu.matmul %355, %356, %cst_97 {dimension_numbers = #tpu.dot_dimension_numbers<[1], [0], [0], [1], [0, 0, 1, 1], [], []>} : vector<16x32xf32>, vector<32x8xf32>, vector<16x8xf32> -> vector<16x8xf32>
    %358 = vector.extract_strided_slice %289 {offsets = [0, 16], sizes = [16, 8], strides = [1, 1]} : vector<16x32xf32> to vector<16x8xf32>
    %359 = vector.extract_strided_slice %286 {offsets = [0, 16], sizes = [32, 8], strides = [1, 1]} : vector<32x32xf32> to vector<32x8xf32>
    %cst_98 = arith.constant dense<0.000000e+00> : vector<16x32xf32>
    %360 = tpu.matmul %358, %359, %cst_98 {dimension_numbers = #tpu.dot_dimension_numbers<[1], [1], [0], [0], [0, 0, 1, 0], [], []>} : vector<16x8xf32>, vector<32x8xf32>, vector<16x32xf32> -> vector<16x32xf32>
    %361 = vector.extract_strided_slice %291 {offsets = [0, 16], sizes = [16, 8], strides = [1, 1]} : vector<16x32xf32> to vector<16x8xf32>
    %362 = vector.extract_strided_slice %280 {offsets = [0, 16], sizes = [16, 8], strides = [1, 1]} : vector<16x32xf32> to vector<16x8xf32>
    %cst_99 = arith.constant dense<0.000000e+00> : vector<16x16xf32>
    %363 = tpu.matmul %361, %362, %cst_99 {dimension_numbers = #tpu.dot_dimension_numbers<[1], [1], [0], [0], [0, 0, 1, 0], [], []>} : vector<16x8xf32>, vector<16x8xf32>, vector<16x16xf32> -> vector<16x16xf32>
    %364 = vector.extract_strided_slice %363 {offsets = [0, 1], sizes = [16, 15], strides = [1, 1]} : vector<16x16xf32> to vector<16x15xf32>
    %365 = vector.extract_strided_slice %363 {offsets = [0, 0], sizes = [16, 1], strides = [1, 1]} : vector<16x16xf32> to vector<16x1xf32>
    %366 = tpu.concatenate %364, %365 in 1 : vector<16x15xf32>, vector<16x1xf32> -> vector<16x16xf32>
    %367 = arith.select %18, %366, %363 : vector<16x16xi1>, vector<16x16xf32>
    %368 = vector.extract_strided_slice %367 {offsets = [0, 2], sizes = [16, 14], strides = [1, 1]} : vector<16x16xf32> to vector<16x14xf32>
    %369 = vector.extract_strided_slice %367 {offsets = [0, 0], sizes = [16, 2], strides = [1, 1]} : vector<16x16xf32> to vector<16x2xf32>
    %370 = tpu.concatenate %368, %369 in 1 : vector<16x14xf32>, vector<16x2xf32> -> vector<16x16xf32>
    %371 = arith.select %24, %370, %367 : vector<16x16xi1>, vector<16x16xf32>
    %372 = vector.extract_strided_slice %371 {offsets = [0, 4], sizes = [16, 12], strides = [1, 1]} : vector<16x16xf32> to vector<16x12xf32>
    %373 = vector.extract_strided_slice %371 {offsets = [0, 0], sizes = [16, 4], strides = [1, 1]} : vector<16x16xf32> to vector<16x4xf32>
    %374 = tpu.concatenate %372, %373 in 1 : vector<16x12xf32>, vector<16x4xf32> -> vector<16x16xf32>
    %375 = arith.select %30, %374, %371 : vector<16x16xi1>, vector<16x16xf32>
    %376 = tpu.concatenate %375, %375 in 1 : vector<16x16xf32>, vector<16x16xf32> -> vector<16x32xf32>
    %377 = arith.addf %360, %376 : vector<16x32xf32>
    %378 = arith.addf %377, %2 : vector<16x32xf32>
    %cst_100 = arith.constant dense<0xFF800000> : vector<16xf32>
    %379 = vector.multi_reduction <maximumf>, %378, %cst_100 [1] : vector<16x32xf32> to vector<16xf32>
    %380 = vector.shape_cast %379 : vector<16xf32> to vector<16x1xf32>
    %381 = vector.broadcast %380 : vector<16x1xf32> to vector<16x32xf32>
    %382 = arith.subf %378, %381 : vector<16x32xf32>
    %383 = math.exp %382 : vector<16x32xf32>
    %cst_101 = arith.constant dense<0.000000e+00> : vector<16xf32>
    %384 = vector.multi_reduction <add>, %383, %cst_101 [1] : vector<16x32xf32> to vector<16xf32>
    %385 = vector.shape_cast %384 : vector<16xf32> to vector<16x1xf32>
    %386 = tpu.reciprocal %385 {approx = true} : vector<16x1xf32> -> vector<16x1xf32>
    %387 = vector.broadcast %386 : vector<16x1xf32> to vector<16x32xf32>
    %388 = arith.mulf %383, %387 : vector<16x32xf32>
    %389 = vector.extract_strided_slice %287 {offsets = [0, 16], sizes = [32, 8], strides = [1, 1]} : vector<32x32xf32> to vector<32x8xf32>
    %cst_102 = arith.constant dense<0.000000e+00> : vector<16x8xf32>
    %390 = tpu.matmul %388, %389, %cst_102 {dimension_numbers = #tpu.dot_dimension_numbers<[1], [0], [0], [1], [0, 0, 1, 1], [], []>} : vector<16x32xf32>, vector<32x8xf32>, vector<16x8xf32> -> vector<16x8xf32>
    %391 = vector.extract_strided_slice %289 {offsets = [0, 24], sizes = [16, 8], strides = [1, 1]} : vector<16x32xf32> to vector<16x8xf32>
    %392 = vector.extract_strided_slice %286 {offsets = [0, 24], sizes = [32, 8], strides = [1, 1]} : vector<32x32xf32> to vector<32x8xf32>
    %cst_103 = arith.constant dense<0.000000e+00> : vector<16x32xf32>
    %393 = tpu.matmul %391, %392, %cst_103 {dimension_numbers = #tpu.dot_dimension_numbers<[1], [1], [0], [0], [0, 0, 1, 0], [], []>} : vector<16x8xf32>, vector<32x8xf32>, vector<16x32xf32> -> vector<16x32xf32>
    %394 = vector.extract_strided_slice %291 {offsets = [0, 24], sizes = [16, 8], strides = [1, 1]} : vector<16x32xf32> to vector<16x8xf32>
    %395 = vector.extract_strided_slice %280 {offsets = [0, 24], sizes = [16, 8], strides = [1, 1]} : vector<16x32xf32> to vector<16x8xf32>
    %cst_104 = arith.constant dense<0.000000e+00> : vector<16x16xf32>
    %396 = tpu.matmul %394, %395, %cst_104 {dimension_numbers = #tpu.dot_dimension_numbers<[1], [1], [0], [0], [0, 0, 1, 0], [], []>} : vector<16x8xf32>, vector<16x8xf32>, vector<16x16xf32> -> vector<16x16xf32>
    %397 = vector.extract_strided_slice %396 {offsets = [0, 1], sizes = [16, 15], strides = [1, 1]} : vector<16x16xf32> to vector<16x15xf32>
    %398 = vector.extract_strided_slice %396 {offsets = [0, 0], sizes = [16, 1], strides = [1, 1]} : vector<16x16xf32> to vector<16x1xf32>
    %399 = tpu.concatenate %397, %398 in 1 : vector<16x15xf32>, vector<16x1xf32> -> vector<16x16xf32>
    %400 = arith.select %18, %399, %396 : vector<16x16xi1>, vector<16x16xf32>
    %401 = vector.extract_strided_slice %400 {offsets = [0, 2], sizes = [16, 14], strides = [1, 1]} : vector<16x16xf32> to vector<16x14xf32>
    %402 = vector.extract_strided_slice %400 {offsets = [0, 0], sizes = [16, 2], strides = [1, 1]} : vector<16x16xf32> to vector<16x2xf32>
    %403 = tpu.concatenate %401, %402 in 1 : vector<16x14xf32>, vector<16x2xf32> -> vector<16x16xf32>
    %404 = arith.select %24, %403, %400 : vector<16x16xi1>, vector<16x16xf32>
    %405 = vector.extract_strided_slice %404 {offsets = [0, 4], sizes = [16, 12], strides = [1, 1]} : vector<16x16xf32> to vector<16x12xf32>
    %406 = vector.extract_strided_slice %404 {offsets = [0, 0], sizes = [16, 4], strides = [1, 1]} : vector<16x16xf32> to vector<16x4xf32>
    %407 = tpu.concatenate %405, %406 in 1 : vector<16x12xf32>, vector<16x4xf32> -> vector<16x16xf32>
    %408 = arith.select %30, %407, %404 : vector<16x16xi1>, vector<16x16xf32>
    %409 = tpu.concatenate %408, %408 in 1 : vector<16x16xf32>, vector<16x16xf32> -> vector<16x32xf32>
    %410 = arith.addf %393, %409 : vector<16x32xf32>
    %411 = arith.addf %410, %2 : vector<16x32xf32>
    %cst_105 = arith.constant dense<0xFF800000> : vector<16xf32>
    %412 = vector.multi_reduction <maximumf>, %411, %cst_105 [1] : vector<16x32xf32> to vector<16xf32>
    %413 = vector.shape_cast %412 : vector<16xf32> to vector<16x1xf32>
    %414 = vector.broadcast %413 : vector<16x1xf32> to vector<16x32xf32>
    %415 = arith.subf %411, %414 : vector<16x32xf32>
    %416 = math.exp %415 : vector<16x32xf32>
    %cst_106 = arith.constant dense<0.000000e+00> : vector<16xf32>
    %417 = vector.multi_reduction <add>, %416, %cst_106 [1] : vector<16x32xf32> to vector<16xf32>
    %418 = vector.shape_cast %417 : vector<16xf32> to vector<16x1xf32>
    %419 = tpu.reciprocal %418 {approx = true} : vector<16x1xf32> -> vector<16x1xf32>
    %420 = vector.broadcast %419 : vector<16x1xf32> to vector<16x32xf32>
    %421 = arith.mulf %416, %420 : vector<16x32xf32>
    %422 = vector.extract_strided_slice %287 {offsets = [0, 24], sizes = [32, 8], strides = [1, 1]} : vector<32x32xf32> to vector<32x8xf32>
    %cst_107 = arith.constant dense<0.000000e+00> : vector<16x8xf32>
    %423 = tpu.matmul %421, %422, %cst_107 {dimension_numbers = #tpu.dot_dimension_numbers<[1], [0], [0], [1], [0, 0, 1, 1], [], []>} : vector<16x32xf32>, vector<32x8xf32>, vector<16x8xf32> -> vector<16x8xf32>
    %424 = tpu.concatenate %324, %357, %390, %423 in 1 : vector<16x8xf32>, vector<16x8xf32>, vector<16x8xf32>, vector<16x8xf32> -> vector<16x32xf32>
    %c1_108 = arith.constant 1 : index
    %c0_109 = arith.constant 0 : index
    %c0_110 = arith.constant 0 : index
    %425 = vector.load %arg6[%c1_108, %c0_109, %c0_110] : memref<2x32x32xf32, #tpu.memory_space<vmem>>, vector<1x32x32xf32>
    %426 = vector.shape_cast %425 : vector<1x32x32xf32> to vector<32x32xf32>
    %cst_111 = arith.constant dense<0.000000e+00> : vector<16x32xf32>
    %427 = tpu.matmul %424, %426, %cst_111 {dimension_numbers = #tpu.dot_dimension_numbers<[1], [0], [0], [1], [0, 0, 1, 1], [], []>} : vector<16x32xf32>, vector<32x32xf32>, vector<16x32xf32> -> vector<16x32xf32>
    %c1_112 = arith.constant 1 : index
    %c0_113 = arith.constant 0 : index
    %c0_114 = arith.constant 0 : index
    %428 = vector.load %arg9[%c1_112, %c0_113, %c0_114] : memref<2x6x64xf32, #tpu.memory_space<vmem>>, vector<1x6x64xf32>
    %429 = vector.shape_cast %428 : vector<1x6x64xf32> to vector<6x64xf32>
    %430 = vector.extract_strided_slice %429 {offsets = [0, 0], sizes = [1, 32], strides = [1, 1]} : vector<6x64xf32> to vector<1x32xf32>
    %431 = vector.extract_strided_slice %429 {offsets = [1, 0], sizes = [1, 32], strides = [1, 1]} : vector<6x64xf32> to vector<1x32xf32>
    %432 = vector.extract_strided_slice %429 {offsets = [2, 0], sizes = [1, 32], strides = [1, 1]} : vector<6x64xf32> to vector<1x32xf32>
    %433 = vector.extract_strided_slice %429 {offsets = [3, 0], sizes = [1, 32], strides = [1, 1]} : vector<6x64xf32> to vector<1x32xf32>
    %434 = vector.extract_strided_slice %429 {offsets = [4, 0], sizes = [1, 32], strides = [1, 1]} : vector<6x64xf32> to vector<1x32xf32>
    %435 = vector.extract_strided_slice %429 {offsets = [5, 0], sizes = [1, 64], strides = [1, 1]} : vector<6x64xf32> to vector<1x64xf32>
    %436 = arith.addf %262, %427 : vector<16x32xf32>
    %cst_115 = arith.constant dense<0.000000e+00> : vector<16xf32>
    %437 = vector.multi_reduction <add>, %436, %cst_115 [1] : vector<16x32xf32> to vector<16xf32>
    %438 = vector.shape_cast %437 : vector<16xf32> to vector<16x1xf32>
    %cst_116 = arith.constant 3.200000e+01 : f32
    %439 = vector.broadcast %cst_116 : f32 to vector<16x1xf32>
    %440 = arith.divf %438, %439 : vector<16x1xf32>
    %441 = vector.broadcast %440 : vector<16x1xf32> to vector<16x32xf32>
    %442 = arith.subf %436, %441 : vector<16x32xf32>
    %443 = vector.broadcast %440 : vector<16x1xf32> to vector<16x32xf32>
    %444 = arith.subf %436, %443 : vector<16x32xf32>
    %445 = arith.mulf %442, %444 : vector<16x32xf32>
    %cst_117 = arith.constant dense<0.000000e+00> : vector<16xf32>
    %446 = vector.multi_reduction <add>, %445, %cst_117 [1] : vector<16x32xf32> to vector<16xf32>
    %447 = vector.shape_cast %446 : vector<16xf32> to vector<16x1xf32>
    %cst_118 = arith.constant 3.200000e+01 : f32
    %448 = vector.broadcast %cst_118 : f32 to vector<16x1xf32>
    %449 = arith.divf %447, %448 : vector<16x1xf32>
    %450 = vector.broadcast %440 : vector<16x1xf32> to vector<16x32xf32>
    %451 = arith.subf %436, %450 : vector<16x32xf32>
    %cst_119 = arith.constant 9.99999974E-6 : f32
    %452 = vector.broadcast %cst_119 : f32 to vector<16x1xf32>
    %453 = arith.addf %449, %452 : vector<16x1xf32>
    %454 = math.rsqrt %453 : vector<16x1xf32>
    %455 = vector.broadcast %454 : vector<16x1xf32> to vector<16x32xf32>
    %456 = arith.mulf %451, %455 : vector<16x32xf32>
    %457 = vector.broadcast %430 : vector<1x32xf32> to vector<16x32xf32>
    %458 = arith.mulf %456, %457 : vector<16x32xf32>
    %459 = vector.broadcast %431 : vector<1x32xf32> to vector<16x32xf32>
    %460 = arith.addf %458, %459 : vector<16x32xf32>
    %c1_120 = arith.constant 1 : index
    %c0_121 = arith.constant 0 : index
    %c0_122 = arith.constant 0 : index
    %461 = vector.load %arg7[%c1_120, %c0_121, %c0_122] : memref<2x32x64xf32, #tpu.memory_space<vmem>>, vector<1x32x64xf32>
    %462 = vector.shape_cast %461 : vector<1x32x64xf32> to vector<32x64xf32>
    %cst_123 = arith.constant dense<0.000000e+00> : vector<16x64xf32>
    %463 = tpu.matmul %460, %462, %cst_123 {dimension_numbers = #tpu.dot_dimension_numbers<[1], [0], [0], [1], [0, 0, 1, 1], [], []>} : vector<16x32xf32>, vector<32x64xf32>, vector<16x64xf32> -> vector<16x64xf32>
    %464 = vector.broadcast %435 : vector<1x64xf32> to vector<16x64xf32>
    %465 = arith.addf %463, %464 : vector<16x64xf32>
    %cst_124 = arith.constant 0.000000e+00 : f32
    %466 = vector.broadcast %cst_124 : f32 to vector<16x64xf32>
    %467 = arith.maximumf %465, %466 : vector<16x64xf32>
    %c1_125 = arith.constant 1 : index
    %c0_126 = arith.constant 0 : index
    %c0_127 = arith.constant 0 : index
    %468 = vector.load %arg8[%c1_125, %c0_126, %c0_127] : memref<2x64x32xf32, #tpu.memory_space<vmem>>, vector<1x64x32xf32>
    %469 = vector.shape_cast %468 : vector<1x64x32xf32> to vector<64x32xf32>
    %cst_128 = arith.constant dense<0.000000e+00> : vector<16x32xf32>
    %470 = tpu.matmul %467, %469, %cst_128 {dimension_numbers = #tpu.dot_dimension_numbers<[1], [0], [0], [1], [0, 0, 1, 1], [], []>} : vector<16x64xf32>, vector<64x32xf32>, vector<16x32xf32> -> vector<16x32xf32>
    %471 = vector.broadcast %434 : vector<1x32xf32> to vector<16x32xf32>
    %472 = arith.addf %470, %471 : vector<16x32xf32>
    %473 = arith.addf %460, %472 : vector<16x32xf32>
    %cst_129 = arith.constant dense<0.000000e+00> : vector<16xf32>
    %474 = vector.multi_reduction <add>, %473, %cst_129 [1] : vector<16x32xf32> to vector<16xf32>
    %475 = vector.shape_cast %474 : vector<16xf32> to vector<16x1xf32>
    %cst_130 = arith.constant 3.200000e+01 : f32
    %476 = vector.broadcast %cst_130 : f32 to vector<16x1xf32>
    %477 = arith.divf %475, %476 : vector<16x1xf32>
    %478 = vector.broadcast %477 : vector<16x1xf32> to vector<16x32xf32>
    %479 = arith.subf %473, %478 : vector<16x32xf32>
    %480 = vector.broadcast %477 : vector<16x1xf32> to vector<16x32xf32>
    %481 = arith.subf %473, %480 : vector<16x32xf32>
    %482 = arith.mulf %479, %481 : vector<16x32xf32>
    %cst_131 = arith.constant dense<0.000000e+00> : vector<16xf32>
    %483 = vector.multi_reduction <add>, %482, %cst_131 [1] : vector<16x32xf32> to vector<16xf32>
    %484 = vector.shape_cast %483 : vector<16xf32> to vector<16x1xf32>
    %cst_132 = arith.constant 3.200000e+01 : f32
    %485 = vector.broadcast %cst_132 : f32 to vector<16x1xf32>
    %486 = arith.divf %484, %485 : vector<16x1xf32>
    %487 = vector.broadcast %477 : vector<16x1xf32> to vector<16x32xf32>
    %488 = arith.subf %473, %487 : vector<16x32xf32>
    %cst_133 = arith.constant 9.99999974E-6 : f32
    %489 = vector.broadcast %cst_133 : f32 to vector<16x1xf32>
    %490 = arith.addf %486, %489 : vector<16x1xf32>
    %491 = math.rsqrt %490 : vector<16x1xf32>
    %492 = vector.broadcast %491 : vector<16x1xf32> to vector<16x32xf32>
    %493 = arith.mulf %488, %492 : vector<16x32xf32>
    %494 = vector.broadcast %432 : vector<1x32xf32> to vector<16x32xf32>
    %495 = arith.mulf %493, %494 : vector<16x32xf32>
    %496 = vector.broadcast %433 : vector<1x32xf32> to vector<16x32xf32>
    %497 = arith.addf %495, %496 : vector<16x32xf32>
    %c1_134 = arith.constant 1 : index
    %c0_135 = arith.constant 0 : index
    %c0_136 = arith.constant 0 : index
    %498 = vector.load %arg11[%c1_134, %c0_135, %c0_136] : memref<2x16x32xf32, #tpu.memory_space<vmem>>, vector<1x16x32xf32>
    %499 = vector.shape_cast %498 : vector<1x16x32xf32> to vector<16x32xf32>
    %500 = vector.shape_cast %497 : vector<16x32xf32> to vector<1x16x32xf32>
    tpu.vector_store %arg11[%c1_134, %c0_135, %c0_136], %500 {strides = array<i32>} : memref<2x16x32xf32, #tpu.memory_space<vmem>>, vector<1x16x32xf32>,
    return
  }
}

</mosaic_0001>

<bundles_post_ra>
// kernel: tile.8
= control target key start
LH: loop header
LB: loop body
LE: loop exit
PB: predicated region body
PF: predicated region fallthrough
CT: control target
= control target key end

     0   :  { %s154_s0 = inlined_call_operand.vmem [shape: f32[8,16], index: 0, kind: input, shape index: {}]   ;;  %s155_s1 = inlined_call_operand.vmem [shape: f32[2,8,2,16], index: 1, kind: output, shape index: {}]  }
   0x1   :  { %v4_v0 = vld [vmem:[%s154_s0] ss:$0 sm:$0xff]  ;;  %v51_v1 = vld [vmem:[%s154_s0 + $0x1] ss:$0 sm:$0xff]  ;;  %v54_v2 = vld [vmem:[%s154_s0 + $0x2] ss:$0 sm:$0xff] }
   0x2   :  { %5 = vst [vmem:[%s155_s1] sm:$0x3] %v4_v0  ;;  %50 = vst [vmem:[%s155_s1 + $0x10] sm:$0x3] %v4_v0  ;;  %v57_v3 = vld [vmem:[%s154_s0 + $0x3] ss:$0 sm:$0xff] }
   0x3   :  { %52 = vst [vmem:[%s155_s1 + $0x2] sm:$0x3] %v51_v1  ;;  %53 = vst [vmem:[%s155_s1 + $0x12] sm:$0x3] %v51_v1  ;;  %v60_v4 = vld [vmem:[%s154_s0 + $0x4] ss:$0 sm:$0xff] }
   0x4   :  { %55 = vst [vmem:[%s155_s1 + $0x4] sm:$0x3] %v54_v2  ;;  %56 = vst [vmem:[%s155_s1 + $0x14] sm:$0x3] %v54_v2  ;;  %v63_v5 = vld [vmem:[%s154_s0 + $0x5] ss:$0 sm:$0xff] }
   0x5   :  { %58 = vst [vmem:[%s155_s1 + $0x6] sm:$0x3] %v57_v3  ;;  %59 = vst [vmem:[%s155_s1 + $0x16] sm:$0x3] %v57_v3  ;;  %v66_v6 = vld [vmem:[%s154_s0 + $0x6] ss:$0 sm:$0xff] }
   0x6   :  { %61 = vst [vmem:[%s155_s1 + $0x8] sm:$0x3] %v60_v4  ;;  %62 = vst [vmem:[%s155_s1 + $0x18] sm:$0x3] %v60_v4  ;;  %v69_v7 = vld [vmem:[%s154_s0 + $0x7] ss:$0 sm:$0xff] }
   0x7   :  { %64 = vst [vmem:[%s155_s1 + $0xa] sm:$0x3] %v63_v5  ;;  %65 = vst [vmem:[%s155_s1 + $0x1a] sm:$0x3] %v63_v5 }
   0x8   :  { %67 = vst [vmem:[%s155_s1 + $0xc] sm:$0x3] %v66_v6  ;;  %68 = vst [vmem:[%s155_s1 + $0x1c] sm:$0x3] %v66_v6 }
   0x9   :  { %70 = vst [vmem:[%s155_s1 + $0xe] sm:$0x3] %v69_v7  ;;  %71 = vst [vmem:[%s155_s1 + $0x1e] sm:$0x3] %v69_v7 }

// kernel: tile.9
= control target key start
LH: loop header
LB: loop body
LE: loop exit
PB: predicated region body
PF: predicated region fallthrough
CT: control target
= control target key end

     0   :  { %vm82_vm0 = vcmask 1047556   ;;  %vm84_vm1 = vcmask 130048   ;;  %vm103_vm2 = vcmask 261248   ;;  %s225_s0 = inlined_call_operand.vmem [shape: f32[2,8,2,16], index: 0, kind: input, shape index: {}]   ;;  %s226_s1 = inlined_call_operand.vmem [shape: f32[16,32], index: 1, kind: output, shape index: {}]  }
   0x1   :  { %v138_v0 = vld [vmem:[%s225_s0 + $0xe] sm:$0x3]  ;;  %v139_v1 = vld [vmem:[%s225_s0 + $0xc] sm:$0x3]  ;;  %v140_v2 = vld [vmem:[%s225_s0 + $0xa] sm:$0x3] }
   0x2   :  { %48 = vst [vmem:[#allocation0 + $0x38] sm:$0x3] %v138_v0  ;;  %53 = vst [vmem:[#allocation0 + $0x30] sm:$0x3] %v139_v1  ;;  %v141_v3 = vld [vmem:[%s225_s0 + $0x8] sm:$0x3] }
   0x3   :  { %58 = vst [vmem:[#allocation0 + $0x28] sm:$0x3] %v140_v2  ;;  %v142_v4 = vld [vmem:[%s225_s0 + $0x6] sm:$0x3]  ;;  %v143_v5 = vld [vmem:[%s225_s0 + $0x4] sm:$0x3] }
   0x4   :  { %63 = vst [vmem:[#allocation0 + $0x20] sm:$0x3] %v141_v3  ;;  %68 = vst [vmem:[#allocation0 + $0x18] sm:$0x3] %v142_v4  ;;  %v144_v6 = vld [vmem:[%s225_s0 + $0x2] sm:$0x3] }
   0x5   :  { %73 = vst [vmem:[#allocation0 + $0x10] sm:$0x3] %v143_v5  ;;  %v78_v7 = vld [vmem:[%s225_s0] sm:$0x3]  ;;  %77 = vst [vmem:[#allocation0 + $0x8] sm:$0x3] %v144_v6 }
   0x6   :  { %79 = vst [vmem:[#allocation0] sm:$0x3] %v78_v7  ;;  %v130_v8 = vld [vmem:[%s225_s0 + $0x1e] sm:$0x3]  ;;  %v131_v9 = vld [vmem:[%s225_s0 + $0x1c] sm:$0x3] }
   0x7   :  { %v132_v10 = vld [vmem:[%s225_s0 + $0x1a] sm:$0x3]  ;;  %8 = vst [vmem:[#allocation0 + $0x78] sm:$0x3] %v130_v8  ;;  %13 = vst [vmem:[#allocation0 + $0x70] sm:$0x3] %v131_v9 }
   0x8   :  { %18 = vst [vmem:[#allocation0 + $0x68] sm:$0x3] %v132_v10  ;;  %v133_v11 = vld [vmem:[%s225_s0 + $0x18] sm:$0x3]  ;;  %v134_v12 = vld [vmem:[%s225_s0 + $0x16] sm:$0x3] }
   0x9   :  { %v135_v13 = vld [vmem:[%s225_s0 + $0x14] sm:$0x3]  ;;  %23 = vst [vmem:[#allocation0 + $0x60] sm:$0x3] %v133_v11  ;;  %28 = vst [vmem:[#allocation0 + $0x58] sm:$0x3] %v134_v12 }
   0xa   :  { %33 = vst [vmem:[#allocation0 + $0x50] sm:$0x3] %v135_v13  ;;  %v136_v14 = vld [vmem:[%s225_s0 + $0x12] sm:$0x3]  ;;  %v137_v15 = vld [vmem:[%s225_s0 + $0x10] sm:$0x3] }
   0xb   :  { %38 = vst [vmem:[#allocation0 + $0x48] sm:$0x3] %v136_v14  ;;  %43 = vst [vmem:[#allocation0 + $0x40] sm:$0x3] %v137_v15  ;;  %s148_s0 = smov 16  }
   0xc   :  { %v98_v16 = vld [vmem:[#allocation0 + $0x1] ss:$8 sm:$0xf0]   ;;  %v81_v17 = vld [vmem:[#allocation0] ss:$8 sm:$0xf0]  }
   0xd   :  { %v96_v18 = vld [vmem:[#allocation0 + $0x1] ss:$8 sm:$0xf]   ;;  %v80_v19 = vld [vmem:[#allocation0] ss:$8 sm:$0xf]  }
   0xe   :  { %v100_v20 = vsel %vm82_vm0, %v98_v16, %v96_v18  ;;  %v83_v21 = vsel %vm82_vm0, %v81_v17, %v80_v19 }
   0xf   :  { %101 = vrot.lane.b32.xlu0 %v100_v20, %s148_s0  ;;  %85 = vst.msk [vmem:[%s226_s1] sm:$0xff] %vm84_vm1, %v83_v21  }
  0x10   :  { %v108_v22 = vld [vmem:[#allocation0 + $0x41] ss:$8 sm:$0xf0]   ;;  %v89_v23 = vld [vmem:[#allocation0 + $0x40] ss:$8 sm:$0xf0]  }
  0x12   :  { %v106_v24 = vld [vmem:[#allocation0 + $0x41] ss:$8 sm:$0xf]   ;;  %v87_v25 = vld [vmem:[#allocation0 + $0x40] ss:$8 sm:$0xf]  }
  0x13   :  { %v110_v26 = vsel %vm82_vm0, %v108_v22, %v106_v24  ;;  %v91_v27 = vsel %vm82_vm0, %v89_v23, %v87_v25 }
  0x14   :  { %145 = vst.msk [vmem:[%s226_s1 + $0x8] sm:$0xff] %vm84_vm1, %v91_v27   ;;  %111 = vrot.lane.b32.xlu0 %v110_v26, %s148_s0 }
  0x81   :  { %v102_v28 = vpop.permute.xlu0 %101  }
  0x82   :  { %104 = vst.msk [vmem:[%s226_s1] sm:$0xff] %vm103_vm2, %v102_v28  }
  0x86   :  { %v112_v29 = vpop.permute.xlu0 %111  }
  0x87   :  { %146 = vst.msk [vmem:[%s226_s1 + $0x8] sm:$0xff] %vm103_vm2, %v112_v29  }

// kernel: eq.11
= control target key start
LH: loop header
LB: loop body
LE: loop exit
PB: predicated region body
PF: predicated region fallthrough
CT: control target
= control target key end

     0   :  { %vm7_vm0 = vcmask 130048   ;;  %vm13_vm1 = vcmask 261248   ;;  %s39_s0 = inlined_call_operand.vmem [shape: s32[2,16], index: 0, kind: input, shape index: {}]   ;;  %s40_s1 = inlined_call_operand.vmem [shape: s32[32], index: 1, kind: output, shape index: {}]  }
   0x1   :  { %v4_v0 = vld [vmem:[%s39_s0] sm:$0x3]  ;;  %s22_s0 = smov 16  }
   0x2   :  { %5 = vst [vmem:[#allocation1] sm:$0x3] %v4_v0 }
   0x9   :  { %v10_v1 = vld [vmem:[#allocation1 + $0x1] sm:$0x1]   ;;  %v6_v2 = vld [vmem:[#allocation1] sm:$0x1]  }
   0xa   :  { %11 = vrot.lane.b32.xlu0 %v10_v1, %s22_s0  ;;  %8 = vst.msk [vmem:[#allocation0] sm:$0x1] %vm7_vm0, %v6_v2  }
  0x7c   :  { %v12_v3 = vpop.permute.xlu0 %11  }
  0x7d   :  { %14 = vst.msk [vmem:[#allocation0] sm:$0x1] %vm13_vm1, %v12_v3  }
  0x84   :  { %v18_v4 = vld [vmem:[#allocation0] sm:$0x1] }
  0x85   :  { %20 = vst [vmem:[%s40_s1] sm:$0x1] %v18_v4 }

// kernel: eq.8
= control target key start
LH: loop header
LB: loop body
LE: loop exit
PB: predicated region body
PF: predicated region fallthrough
CT: control target
= control target key end

     0   :  { %vm7_vm0 = vcmask 64512   ;;  %vm13_vm1 = vcmask 130112   ;;  %s39_s0 = inlined_call_operand.vmem [shape: s32[2,8], index: 0, kind: input, shape index: {}]   ;;  %s40_s1 = inlined_call_operand.vmem [shape: s32[16], index: 1, kind: output, shape index: {}]  }
   0x1   :  { %v4_v0 = vld [vmem:[%s39_s0] sm:$0x3]  ;;  %s22_s0 = smov 8  }
   0x2   :  { %5 = vst [vmem:[#allocation1] sm:$0x3] %v4_v0 }
   0x9   :  { %v10_v1 = vld [vmem:[#allocation1 + $0x1] sm:$0x1]   ;;  %v6_v2 = vld [vmem:[#allocation1] sm:$0x1]  }
   0xa   :  { %11 = vrot.lane.b32.xlu0 %v10_v1, %s22_s0  ;;  %8 = vst.msk [vmem:[#allocation0] sm:$0x1] %vm7_vm0, %v6_v2  }
  0x7c   :  { %v12_v3 = vpop.permute.xlu0 %11  }
  0x7d   :  { %14 = vst.msk [vmem:[#allocation0] sm:$0x1] %vm13_vm1, %v12_v3  }
  0x84   :  { %v18_v4 = vld [vmem:[#allocation0] sm:$0x1] }
  0x85   :  { %20 = vst [vmem:[%s40_s1] sm:$0x1] %v18_v4 }

// kernel: transformer_xl_forward.1
= control target key start
LH: loop header
LB: loop body
LE: loop exit
PB: predicated region body
PF: predicated region fallthrough
CT: control target
= control target key end

     0   :  { %vm75_vm0 = vcmask 261120   ;;  %v46_v18 = vlaneseq  ;;  %vm272_vm1 = vcmask 64512   ;;  %s5522_s28 = smov 127   ;;  %s5523_s29 = smov 15   ;;  %vm374_vm3 = vcmask 121856   ;;  %s6642_s4 = inlined_call_operand.vmem [shape: f32[2,32,96], index: 4, kind: input, shape index: {}]   ;;  %s6643_s1 = inlined_call_operand.vmem [shape: f32[2,2,8,32], index: 1, kind: input, shape index: {}]   ;;  %s6644_s5 = inlined_call_operand.vmem [shape: f32[2,32,32], index: 5, kind: input, shape index: {}]   ;;  %s6645_s0 = inlined_call_operand.vmem [shape: f32[16,32], index: 0, kind: input, shape index: {}]   ;;  %s6646_s2 = inlined_call_operand.vmem [shape: f32[16,32], index: 2, kind: input, shape index: {}]   ;;  %s6647_s10 = inlined_call_operand.vmem [shape: f32[2,32], index: 10, kind: input, shape index: {}]   ;;  %s6648_s3 = inlined_call_operand.vmem [shape: f32[16,32], index: 3, kind: input, shape index: {}]   ;;  %s6649_s6 = inlined_call_operand.vmem [shape: f32[2,32,32], index: 6, kind: input, shape index: {}]   ;;  %s6650_s7 = inlined_call_operand.vmem [shape: f32[2,32,64], index: 7, kind: input, shape index: {}]   ;;  %s6651_s8 = inlined_call_operand.vmem [shape: f32[2,64,32], index: 8, kind: input, shape index: {}]   ;;  %s6652_s9 = inlined_call_operand.vmem [shape: f32[2,6,64], index: 9, kind: input, shape index: {}]   ;;  %s6653_s11 = inlined_call_operand.vmem [shape: f32[2,16,32], index: 11, kind: output, shape index: {}]  }
   0x1   :  { %v71_v0 = vld [vmem:[%s6642_s4] sm:$0xff]  ;;  %v72_v1 = vld [vmem:[%s6642_s4 + $0x8] sm:$0xff]  ;;  %v73_v2 = vld [vmem:[%s6642_s4 + $0x10] sm:$0xff]  ;;  %s5524_s30 = smov 14   ;;  %s5525_s12 = smov 126   ;;  %vm393_vm6 = vcmask 113664  }
   0x2   :  { %v4921_v3 = vpack.c.bf16 %v72_v1, %v71_v0  ;;  %v74_v4 = vld [vmem:[%s6642_s4 + $0x18] sm:$0xff]  ;;  %v69_v5 = vld [vmem:[%s6643_s1] sm:$0xff]  ;;  %v174_v8 = vld [vmem:[%s6644_s5 + $0x8] sm:$0xff]  ;;  %v5649_v19 = vshrl.u32 %v46_v18, 7  ;;  %s5526_s13 = smov 12   ;;  %s5527_s14 = smov 124  }
   0x3   :  { %v4925_v6 = vpack.c.bf16 %v74_v4, %v73_v2  ;;  %4565 = vmatprep.mubr.msk.f32.mxu1 %vm75_vm0, %v69_v5  ;;  %v173_v7 = vld [vmem:[%s6644_s5] sm:$0xff]  ;;  %v175_v10 = vld [vmem:[%s6644_s5 + $0x10] sm:$0xff]  ;;  %v176_v11 = vld [vmem:[%s6644_s5 + $0x18] sm:$0xff]  ;;  %vm412_vm9 = vcmask 97280   ;;  %s5528_s15 = smov 16   ;;  %vm425_vm12 = vcmask 130048  }
   0x4   :  { %4922 = vmatprep.subr.bf16.mxu1 %v4921_v3  ;;  %v4929_v9 = vpack.c.bf16 %v174_v8, %v173_v7  ;;  %v38_v12 = vld [vmem:[%s6645_s0] sm:$0xff]  ;;  %v70_v13 = vld [vmem:[%s6643_s1 + $0x8] sm:$0xff]  ;;  %v4933_v14 = vpack.c.bf16 %v176_v11, %v175_v10  ;;  %v5655_v22 = vsub.s32 1, %v5649_v19  ;;  %v5658_v23 = vsub.s32 0, %v5649_v19  ;;  %vm5686_vm2 = vmpackc.low %vm272_vm1, %vm272_vm1  ;;  %s5529_s20 = smov 64   ;;  %s5530_s21 = smov 120  }
   0x5   :  { %4924 = vmatpush3.bf16.msra.mxu1 %v4921_v3  ;;  %v39_v15 = vld [vmem:[%s6645_s0 + $0x8] sm:$0xff]  ;;  %v40_v16 = vld [vmem:[%s6646_s2] sm:$0xff]  ;;  %v49_v53 = vand.u32 7, %v5649_v19  ;;  %v48_v54 = vadd.s32 8, %v5649_v19  ;;  %s5531_s22 = smov 88   ;;  %s6670_s23 = smov 56  }
   0x6   :  { %4926 = vmatprep.subr.bf16.mxu1 %v4925_v6  ;;  %v41_v17 = vld [vmem:[%s6646_s2 + $0x8] sm:$0xff]  ;;  %v44_v20 = vld [vmem:[%s6647_s10] sm:$0x3]  ;;  %s5521_s10 = smov 96   ;;  %s6666_s24 = smov 112   ;;  %vm1787_vm13 = vcmask 195584  }
   0x7   :  { %v45_v21 = vmul.f32 0.35355338, %v44_v20  ;;  %v51_v55 = vsub.s32 7, %v49_v53  ;;  %v50_v56 = vand.u32 7, %v48_v54  ;;  %s6664_s25 = smov 80   ;;  %s6662_s26 = smov 48  }
   0x8   :  { %s6660_s27 = smov 104   ;;  %s6658_s16 = smov 72   ;;  %vm2020_vm14 = vcmask 523264  }
   0x9   :  { %4928 = vmatpush3.bf16.msra.mxu1 %v4925_v6  ;;  %v5661_v24 = vrot.slane %v45_v21, %v5655_v22  ;;  %v5664_v25 = vrot.slane %v45_v21, %v5658_v23  ;;  %v53_v57 = vand.u32 1, %v51_v55  ;;  %v52_v58 = vsub.s32 7, %v50_v56  ;;  %s6656_s17 = smov 40   ;;  %s6654_s18 = smov 8  }
   0xa   :  { %4930 = vmatprep.subr.bf16.mxu1 %v4929_v9  ;;  %v57_v8 = vshra.s32 %v51_v55, 1  ;;  %v63_v21 = vshra.s32 %v51_v55, 2  ;;  %s6683_s19 = smov 72  }
   0xb   :  { %vm5722_vm4 = vcmp.eq.s32.totalorder %v53_v57, 1  ;;  %v54_v62 = vand.u32 1, %v52_v58  ;;  %v58_v10 = vshra.s32 %v52_v58, 1 }
   0xc   :  { %4566 = vmatmul.mubr.msk.f32.vlgmr.msra.gmra.mrb[0].mxu1 %vm75_vm0, %v38_v12 }
   0xd   :  { %4932 = vmatpush3.bf16.msra.mxu1 %v4929_v9  ;;  %4568 = vmatprep.mubr.msk.f32.mxu1 %vm75_vm0, %v70_v13  ;;  %vm5731_vm5 = vcmp.eq.s32.totalorder %v54_v62, 1  ;;  %v5740_v9 = vand.u32 1, %v57_v8  ;;  %v5743_v11 = vand.u32 1, %v58_v10 }
   0xe   :  { %4934 = vmatprep.subr.bf16.mxu1 %v4933_v14 }
   0xf   :  { %vm61_vm7 = vcmp.eq.s32.totalorder %v5740_v9, 1  ;;  %vm62_vm8 = vcmp.eq.s32.totalorder %v5743_v11, 1 }
  0x10   :  { %4569 = vmatmul.mubr.msk.f32.gmra.mrb[2].mxu1 %vm75_vm0, %v39_v15 }
  0x11   :  { %4936 = vmatpush3.bf16.msra.mxu1 %v4933_v14  ;;  %4579 = vmatprep.mubr.msk.f32.mxu1 %vm75_vm0, %v40_v16 }
  0x14   :  { %4580 = vmatmul.mubr.msk.f32.vlgmr.msra.gmra.mrb[4].mxu1 %vm75_vm0, %v41_v17 }
  0xdf   :  { %v4567_v26 = vpop.f32.mrb[0].mxu1 }
  0xe0   :  { %v154_v27 = vpop.f32.mrb[1].mxu1  ;;  %v258_v28 = vmul.f32 0.35355338, %v4567_v26 }
  0xe1   :  { %v5666_v29 = vpack.i.bf16 %v4567_v26, %v154_v27  ;;  %v5756_v26 = vand.u32 1, %v63_v21  ;;  %v64_v27 = vshra.s32 %v52_v58, 2 }
  0xe2   :  { %v5669_v30 = vadd.f32 %v5661_v24, %v258_v28  ;;  %v5672_v31 = vadd.f32 %v5664_v25, %v258_v28 }
  0xe3   :  { %5246 = vrot.lane.b32.xlu0 %v5666_v29, %s5521_s10  ;;  %v4570_v32 = vpop.f32.mrb[2].mxu1  ;;  %vm67_vm10 = vcmp.eq.s32.totalorder %v5756_v26, 1  ;;  %v5759_v28 = vand.u32 1, %v64_v27 }
  0xe4   :  { %v164_v33 = vpop.f32.mrb[3].mxu1  ;;  %4586 = vmatprep.mubr.msk.f32.mxu0 %vm272_vm1, %v5669_v30  ;;  %4597 = vmatprep.mubr.msk.f32.mxu1 %vm272_vm1, %v5672_v31  ;;  %v259_v40 = vmul.f32 0.35355338, %v4570_v32 }
  0xe5   :  { %v5680_v34 = vpack.i.bf16 %v4570_v32, %v164_v33  ;;  %vm68_vm11 = vcmp.eq.s32.totalorder %v5759_v28, 1 }
  0xe6   :  { %v5697_v41 = vadd.f32 %v5661_v24, %v259_v40  ;;  %v5710_v50 = vadd.f32 %v5664_v25, %v259_v40 }
  0xe7   :  { %5251 = vrot.lane.b32.xlu0 %v5680_v34, %s5521_s10  ;;  %v4581_v35 = vpop.f32.mrb[4].mxu1 }
  0xe8   :  { %v249_v36 = vpop.f32.mrb[5].mxu1 }
  0xe9   :  { %v4937_v38 = vpack.c.bf16 %v4581_v35, %v249_v36  ;;  %v5690_v39 = vpack.i.bf16 %v4581_v35, %v249_v36 }
  0xeb   :  { %4939 = vmatprep.subr.msk.bf16.mxu0 %vm5686_vm2, %v4937_v38 }
  0xec   :  { %4942 = vmatpush3.bf16.xpose.msk.msra.mxu0 %vm5686_vm2, %v4937_v38 }
  0xf3   :  { %4587 = vmatmul.mubr.msk.f32.vlgmr.msra.gmra.mrb[0].mxu0 %vm272_vm1, %v5697_v41 }
 0x155   :  { %v5247_v42 = vpop.permute.xlu0 %5246 }
 0x156   :  { %v5249_v43 = vunpack.i.h.bf16 %v5247_v42  ;;  %v5248_v44 = vunpack.i.l.bf16 %v5247_v42 }
 0x158   :  { %v4943_v45 = vpack.c.bf16 %v5249_v43, %v5248_v44 }
 0x159   :  { %v5252_v46 = vpop.permute.xlu0 %5251 }
 0x15a   :  { %v5254_v47 = vunpack.i.h.bf16 %v5252_v46  ;;  %v5253_v48 = vunpack.i.l.bf16 %v5252_v46  ;;  %4945 = vmatprep.subr.msk.bf16.mxu1 %vm5686_vm2, %v4943_v45  ;;  %v5774_v46 = vld [vmem:[%s6648_s3] sm:$0xff] }
 0x15b   :  { %4948 = vmatpush3.bf16.xpose.msk.msra.mxu1 %vm5686_vm2, %v4943_v45 }
 0x15c   :  { %v4949_v49 = vpack.c.bf16 %v5254_v47, %v5253_v48 }
 0x15e   :  { %4951 = vmatprep.subr.msk.bf16.mxu1 %vm5686_vm2, %v4949_v49 }
 0x163   :  { %4954 = vmatpush3.bf16.xpose.msk.msra.mxu1 %vm5686_vm2, %v4949_v49 }
 0x16a   :  { %4598 = vmatmul.mubr.msk.f32.vlgmr.msra.gmra.mrb[6].mxu1 %vm272_vm1, %v5710_v50 }
 0x1c6   :  { %v4588_v51 = vpop.f32.mrb[0].mxu0 }
 0x1c7   :  { %364 = vrot.lane.b32.xlu0 %v4588_v51, %s5522_s28  ;;  %v351_v52 = vpop.f32.mrb[1].mxu0 }
 0x1c8   :  { %362 = vrot.lane.b32.xlu1 %v351_v52, %s5522_s28 }
 0x1cc   :  { %368 = vrot.lane.b32.xlu1 %v351_v52, %s5523_s29 }
 0x1d0   :  { %370 = vrot.lane.b32.xlu1 %v4588_v51, %s5523_s29 }
 0x239   :  { %v365_v4 = vpop.permute.xlu0 %364 }
 0x23a   :  { %v363_v59 = vpop.permute.xlu1 %362 }
 0x23d   :  { %v5720_v60 = vpop.f32.mrb[6].mxu1 }
 0x23e   :  { %v520_v63 = vpop.f32.mrb[7].mxu1  ;;  %v369_v0 = vpop.permute.xlu1 %368 }
 0x23f   :  { %v375_v1 = vsel %vm374_vm3, %v363_v59, %v369_v0 }
 0x240   :  { %v377_v2 = vsel %vm5722_vm4, %v375_v1, %v351_v52  ;;  %v5781_v52 = vld [vmem:[%s6648_s3 + $0x8] sm:$0xff] }
 0x241   :  { %387 = vrot.lane.b32.xlu1 %v377_v2, %s5524_s30  ;;  %381 = vrot.lane.b32.xlu0 %v377_v2, %s5525_s12 }
 0x242   :  { %v371_v5 = vpop.permute.xlu1 %370 }
 0x243   :  { %v376_v6 = vsel %vm374_vm3, %v365_v4, %v371_v5 }
 0x244   :  { %v378_v7 = vsel %vm5731_vm5, %v376_v6, %v4588_v51 }
 0x245   :  { %389 = vrot.lane.b32.xlu1 %v378_v7, %s5524_s30  ;;  %383 = vrot.lane.b32.xlu0 %v378_v7, %s5525_s12 }
 0x2b3   :  { %v382_v12 = vpop.permute.xlu0 %381  ;;  %v388_v13 = vpop.permute.xlu1 %387 }
 0x2b4   :  { %v394_v14 = vsel %vm393_vm6, %v382_v12, %v388_v13 }
 0x2b5   :  { %v396_v15 = vsel %vm61_vm7, %v394_v14, %v377_v2 }
 0x2b6   :  { %406 = vrot.lane.b32.xlu1 %v396_v15, %s5526_s13  ;;  %400 = vrot.lane.b32.xlu0 %v396_v15, %s5527_s14 }
 0x2b7   :  { %v384_v16 = vpop.permute.xlu0 %383  ;;  %v390_v17 = vpop.permute.xlu1 %389 }
 0x2b8   :  { %v395_v18 = vsel %vm393_vm6, %v384_v16, %v390_v17 }
 0x2b9   :  { %v397_v20 = vsel %vm62_vm8, %v395_v18, %v378_v7 }
 0x2ba   :  { %408 = vrot.lane.b32.xlu1 %v397_v20, %s5526_s13  ;;  %402 = vrot.lane.b32.xlu0 %v397_v20, %s5527_s14 }
 0x328   :  { %v401_v32 = vpop.permute.xlu0 %400  ;;  %v407_v33 = vpop.permute.xlu1 %406 }
 0x329   :  { %v413_v35 = vsel %vm412_vm9, %v401_v32, %v407_v33 }
 0x32a   :  { %v415_v36 = vsel %vm67_vm10, %v413_v35, %v396_v15 }
 0x32b   :  { %419 = vrot.lane.b32.xlu0 %v415_v36, %s5528_s15 }
 0x32c   :  { %v403_v38 = vpop.permute.xlu0 %402  ;;  %v409_v40 = vpop.permute.xlu1 %408 }
 0x32d   :  { %v414_v42 = vsel %vm412_vm9, %v403_v38, %v409_v40 }
 0x32e   :  { %v416_v43 = vsel %vm68_vm11, %v414_v42, %v397_v20 }
 0x32f   :  { %421 = vrot.lane.b32.xlu1 %v416_v43, %s5528_s15 }
 0x39d   :  { %v420_v44 = vpop.permute.xlu0 %419 }
 0x39e   :  { %v426_v45 = vsel %vm425_vm12, %v415_v36, %v420_v44 }
 0x39f   :  { %v521_v47 = vadd.f32 %v520_v63, %v426_v45 }
 0x3a1   :  { %v422_v48 = vpop.permute.xlu1 %421  ;;  %v529_v49 = vadd.f32 %v521_v47, %v5774_v46 }
 0x3a2   :  { %v427_v51 = vsel %vm425_vm12, %v416_v43, %v422_v48 }
 0x3a3   :  { %v526_v53 = vadd.f32 %v5720_v60, %v427_v51  ;;  %v531_v54 = vsel %vm75_vm0, %v529_v49, -inf }
 0x3a4   :  { %532 = vmax.xlane.f32.xlu0 %v531_v54 }
 0x3a5   :  { %v530_v55 = vadd.f32 %v526_v53, %v5781_v52 }
 0x3a7   :  { %v534_v56 = vsel %vm75_vm0, %v530_v55, -inf }
 0x3a8   :  { %535 = vmax.xlane.f32.xlu1 %v534_v56 }
 0x3b9   :  { %5256 = vrot.lane.b32.xlu1 %v5666_v29, %s5529_s20 }
 0x3bd   :  { %5266 = vrot.lane.b32.xlu1 %v5690_v39, %s5530_s21 }
 0x3c1   :  { %646 = vrot.lane.b32.xlu1 %v5669_v30, %s5530_s21 }
 0x3c5   :  { %5271 = vrot.lane.b32.xlu1 %v5666_v29, %s5531_s22 }
 0x3c9   :  { %801 = vrot.lane.b32.xlu1 %v5672_v31, %s5530_s21 }
 0x431   :  { %v533_v57 = vpop.xlane.xlu0 %532 }
 0x432   :  { %v537_v58 = vsub.f32 %v529_v49, %v533_v57 }
 0x434   :  { %v539_v62 = vmul.f32 1.442695, %v537_v58 }
 0x435   :  { %v536_v59 = vpop.xlane.xlu1 %535 }
 0x436   :  { %v538_v60 = vsub.f32 %v530_v55, %v536_v59 }
 0x438   :  { %v541_v63 = vmul.f32 1.442695, %v538_v60 }
 0x439   :  { %v5257_v0 = vpop.permute.xlu1 %5256 }
 0x43a   :  { %5435 = vpow2.f32 %v541_v63  ;;  %v5259_v1 = vunpack.i.h.bf16 %v5257_v0  ;;  %v5258_v2 = vunpack.i.l.bf16 %v5257_v0 }
 0x43b   :  { %5437 = vpow2.f32 %v539_v62 }
 0x43c   :  { %v4955_v4 = vpack.c.bf16 %v5259_v1, %v5258_v2 }
 0x43d   :  { %v5267_v5 = vpop.permute.xlu1 %5266 }
 0x43e   :  { %4956 = vmatprep.subr.bf16.mxu0 %v4955_v4  ;;  %v5269_v27 = vunpack.i.h.bf16 %v5267_v5  ;;  %v5268_v32 = vunpack.i.l.bf16 %v5267_v5 }
 0x43f   :  { %4958 = vmatpush3.bf16.msra.mxu0 %v4955_v4 }
 0x440   :  { %v4963_v40 = vpack.c.bf16 %v5269_v27, %v5268_v32 }
 0x441   :  { %v647_v6 = vpop.permute.xlu1 %646 }
 0x444   :  { %v5436_v7 = vpop.eup %5435 }
 0x445   :  { %v5272_v8 = vpop.permute.xlu1 %5271  ;;  %v546_v10 = vsel %vm75_vm0, %v5436_v7, 0.0  ;;  %v5438_v12 = vpop.eup %5437 }
 0x446   :  { %v5274_v13 = vunpack.i.h.bf16 %v5272_v8  ;;  %v5273_v14 = vunpack.i.l.bf16 %v5272_v8  ;;  %547 = vadd.xlane.f32.xlu0 %v546_v10  ;;  %v543_v17 = vsel %vm75_vm0, %v5438_v12, 0.0 }
 0x448   :  { %v4969_v15 = vpack.c.bf16 %v5274_v13, %v5273_v14 }
 0x449   :  { %v802_v16 = vpop.permute.xlu1 %801 }
 0x44a   :  { %544 = vadd.xlane.f32.xlu0 %v543_v17  ;;  %4971 = vmatprep.subr.msk.bf16.mxu1 %vm5686_vm2, %v4969_v15 }
 0x44b   :  { %4626 = vmatprep.mubr.msk.f32.mxu1 %vm272_vm1, %v802_v16  ;;  %4974 = vmatpush3.bf16.xpose.msk.msra.mxu1 %vm5686_vm2, %v4969_v15 }
 0x460   :  { %5261 = vrot.lane.b32.xlu0 %v5680_v34, %s5529_s20 }
 0x464   :  { %648 = vrot.lane.b32.xlu0 %v5697_v41, %s5530_s21 }
 0x468   :  { %5276 = vrot.lane.b32.xlu0 %v5680_v34, %s5531_s22 }
 0x46c   :  { %803 = vrot.lane.b32.xlu0 %v5710_v50, %s5530_s21 }
 0x4d3   :  { %v548_v18 = vpop.xlane.xlu0 %547 }
 0x4d4   :  { %5439 = vrcp.f32 %v548_v18 }
 0x4d7   :  { %v545_v20 = vpop.xlane.xlu0 %544 }
 0x4d8   :  { %5441 = vrcp.f32 %v545_v20 }
 0x4db   :  { %v5262_v21 = vpop.permute.xlu0 %5261 }
 0x4dc   :  { %v5264_v33 = vunpack.i.h.bf16 %v5262_v21  ;;  %v5263_v35 = vunpack.i.l.bf16 %v5262_v21 }
 0x4de   :  { %v4959_v36 = vpack.c.bf16 %v5264_v33, %v5263_v35  ;;  %v5440_v42 = vpop.eup %5439 }
 0x4df   :  { %v649_v38 = vpop.permute.xlu0 %648  ;;  %v552_v49 = vmul.f32 %v5440_v42, %v5436_v7 }
 0x4e0   :  { %4960 = vmatprep.subr.bf16.mxu0 %v4959_v36 }
 0x4e1   :  { %4962 = vmatpush3.bf16.msra.mxu0 %v4959_v36 }
 0x4e2   :  { %v5442_v43 = vpop.eup %5441  ;;  %4965 = vmatprep.subr.msk.bf16.mxu0 %vm5686_vm2, %v4963_v40 }
 0x4e3   :  { %v5277_v44 = vpop.permute.xlu0 %5276  ;;  %v551_v45 = vmul.f32 %v5442_v43, %v5438_v12 }
 0x4e4   :  { %v5279_v47 = vunpack.i.h.bf16 %v5277_v44  ;;  %v5278_v48 = vunpack.i.l.bf16 %v5277_v44 }
 0x4e5   :  { %4608 = vmatprep.mubr.msk.f32.mxu0 %vm75_vm0, %v551_v45 }
 0x4e6   :  { %v4975_v51 = vpack.c.bf16 %v5279_v47, %v5278_v48  ;;  %4609 = vmatmul.mubr.msk.f32.vlgmr.msra.gmra.mrb[2].mxu0 %vm75_vm0, %v552_v49 }
 0x4e7   :  { %4615 = vmatprep.mubr.msk.f32.mxu0 %vm272_vm1, %v647_v6  ;;  %v804_v53 = vpop.permute.xlu0 %803 }
 0x4e8   :  { %4977 = vmatprep.subr.msk.bf16.mxu1 %vm5686_vm2, %v4975_v51 }
 0x4e9   :  { %4980 = vmatpush3.bf16.xpose.msk.msra.mxu1 %vm5686_vm2, %v4975_v51 }
 0x4ea   :  { %4968 = vmatpush3.bf16.xpose.msk.msra.mxu0 %vm5686_vm2, %v4963_v40 }
 0x4f0   :  { %4627 = vmatmul.mubr.msk.f32.vlgmr.msra.gmra.mrb[8].mxu1 %vm272_vm1, %v804_v53 }
 0x4f1   :  { %4616 = vmatmul.mubr.msk.f32.vlgmr.msra.gmra.mrb[4].mxu0 %vm272_vm1, %v649_v38 }
 0x5b9   :  { %v5825_v54 = vpop.f32.mrb[2].mxu0 }
 0x5ba   :  { %v5827_v55 = vpop.f32.mrb[3].mxu0 }
 0x5c3   :  { %v4628_v56 = vpop.f32.mrb[8].mxu1 }
 0x5c4   :  { %v4617_v57 = vpop.f32.mrb[4].mxu0  ;;  %v891_v58 = vpop.f32.mrb[9].mxu1 }
 0x5c5   :  { %v728_v59 = vpop.f32.mrb[5].mxu0 }
 0x5c6   :  { %745 = vrot.lane.b32.xlu0 %v728_v59, %s5523_s29  ;;  %739 = vrot.lane.b32.xlu1 %v728_v59, %s5522_s28 }
 0x5ca   :  { %747 = vrot.lane.b32.xlu0 %v4617_v57, %s5523_s29  ;;  %741 = vrot.lane.b32.xlu1 %v4617_v57, %s5522_s28 }
 0x638   :  { %v746_v60 = vpop.permute.xlu0 %745  ;;  %v740_v62 = vpop.permute.xlu1 %739 }
 0x639   :  { %v751_v63 = vsel %vm374_vm3, %v740_v62, %v746_v60 }
 0x63a   :  { %v753_v0 = vsel %vm5722_vm4, %v751_v63, %v728_v59 }
 0x63b   :  { %763 = vrot.lane.b32.xlu0 %v753_v0, %s5524_s30  ;;  %757 = vrot.lane.b32.xlu1 %v753_v0, %s5525_s12 }
 0x63c   :  { %v748_v1 = vpop.permute.xlu0 %747  ;;  %v742_v2 = vpop.permute.xlu1 %741 }
 0x63d   :  { %v752_v4 = vsel %vm374_vm3, %v742_v2, %v748_v1 }
 0x63e   :  { %v754_v5 = vsel %vm5731_vm5, %v752_v4, %v4617_v57 }
 0x63f   :  { %765 = vrot.lane.b32.xlu0 %v754_v5, %s5524_s30  ;;  %759 = vrot.lane.b32.xlu1 %v754_v5, %s5525_s12 }
 0x6ad   :  { %v764_v6 = vpop.permute.xlu0 %763  ;;  %v758_v7 = vpop.permute.xlu1 %757 }
 0x6ae   :  { %v769_v8 = vsel %vm393_vm6, %v758_v7, %v764_v6 }
 0x6af   :  { %v771_v10 = vsel %vm61_vm7, %v769_v8, %v753_v0 }
 0x6b0   :  { %781 = vrot.lane.b32.xlu0 %v771_v10, %s5526_s13  ;;  %775 = vrot.lane.b32.xlu1 %v771_v10, %s5527_s14 }
 0x6b1   :  { %v766_v12 = vpop.permute.xlu0 %765  ;;  %v760_v13 = vpop.permute.xlu1 %759 }
 0x6b2   :  { %v770_v14 = vsel %vm393_vm6, %v760_v13, %v766_v12 }
 0x6b3   :  { %v772_v15 = vsel %vm62_vm8, %v770_v14, %v754_v5 }
 0x6b4   :  { %783 = vrot.lane.b32.xlu0 %v772_v15, %s5526_s13  ;;  %777 = vrot.lane.b32.xlu1 %v772_v15, %s5527_s14 }
 0x722   :  { %v782_v16 = vpop.permute.xlu0 %781  ;;  %v776_v17 = vpop.permute.xlu1 %775 }
 0x723   :  { %v787_v18 = vsel %vm412_vm9, %v776_v17, %v782_v16 }
 0x724   :  { %v789_v20 = vsel %vm67_vm10, %v787_v18, %v771_v10 }
 0x725   :  { %793 = vrot.lane.b32.xlu1 %v789_v20, %s5528_s15 }
 0x726   :  { %v784_v21 = vpop.permute.xlu0 %783  ;;  %v778_v27 = vpop.permute.xlu1 %777 }
 0x727   :  { %v788_v32 = vsel %vm412_vm9, %v778_v27, %v784_v21 }
 0x728   :  { %v790_v33 = vsel %vm68_vm11, %v788_v32, %v772_v15 }
 0x729   :  { %795 = vrot.lane.b32.xlu0 %v790_v33, %s5528_s15 }
 0x797   :  { %v794_v35 = vpop.permute.xlu1 %793 }
 0x798   :  { %v799_v36 = vsel %vm425_vm12, %v789_v20, %v794_v35 }
 0x799   :  { %v892_v38 = vadd.f32 %v891_v58, %v799_v36 }
 0x79b   :  { %v796_v40 = vpop.permute.xlu0 %795  ;;  %v900_v42 = vadd.f32 %v892_v38, %v5774_v46 }
 0x79c   :  { %v800_v43 = vsel %vm425_vm12, %v790_v33, %v796_v40 }
 0x79d   :  { %v897_v44 = vadd.f32 %v4628_v56, %v800_v43  ;;  %v902_v45 = vsel %vm75_vm0, %v900_v42, -inf }
 0x79e   :  { %903 = vmax.xlane.f32.xlu1 %v902_v45 }
 0x79f   :  { %v901_v47 = vadd.f32 %v897_v44, %v5781_v52 }
 0x7a1   :  { %v905_v48 = vsel %vm75_vm0, %v901_v47, -inf }
 0x7a2   :  { %906 = vmax.xlane.f32.xlu0 %v905_v48 }
 0x82b   :  { %v904_v49 = vpop.xlane.xlu1 %903 }
 0x82c   :  { %v908_v51 = vsub.f32 %v900_v42, %v904_v49 }
 0x82e   :  { %v910_v53 = vmul.f32 1.442695, %v908_v51 }
 0x82f   :  { %v907_v57 = vpop.xlane.xlu0 %906 }
 0x830   :  { %5443 = vpow2.f32 %v910_v53  ;;  %v909_v58 = vsub.f32 %v901_v47, %v907_v57 }
 0x832   :  { %v912_v59 = vmul.f32 1.442695, %v909_v58 }
 0x834   :  { %5445 = vpow2.f32 %v912_v59 }
 0x83a   :  { %v5444_v60 = vpop.eup %5443 }
 0x83b   :  { %v914_v62 = vsel %vm75_vm0, %v5444_v60, 0.0 }
 0x83c   :  { %915 = vadd.xlane.f32.xlu0 %v914_v62 }
 0x83e   :  { %v5446_v56 = vpop.eup %5445 }
 0x83f   :  { %v917_v63 = vsel %vm75_vm0, %v5446_v56, 0.0 }
 0x840   :  { %918 = vadd.xlane.f32.xlu1 %v917_v63 }
 0x851   :  { %5286 = vrot.lane.b32.xlu1 %v5680_v34, %s6670_s23 }
 0x852   :  { %5281 = vrot.lane.b32.xlu0 %v5666_v29, %s6670_s23 }
 0x855   :  { %5291 = vrot.lane.b32.xlu1 %v5690_v39, %s6666_s24 }
 0x856   :  { %1017 = vrot.lane.b32.xlu0 %v5669_v30, %s6666_s24 }
 0x859   :  { %1019 = vrot.lane.b32.xlu1 %v5697_v41, %s6666_s24 }
 0x85a   :  { %5296 = vrot.lane.b32.xlu0 %v5666_v29, %s6664_s25 }
 0x85d   :  { %5301 = vrot.lane.b32.xlu1 %v5680_v34, %s6664_s25 }
 0x85e   :  { %1172 = vrot.lane.b32.xlu0 %v5672_v31, %s6666_s24 }
 0x861   :  { %1174 = vrot.lane.b32.xlu1 %v5710_v50, %s6666_s24 }
 0x8c9   :  { %v916_v0 = vpop.xlane.xlu0 %915 }
 0x8ca   :  { %5447 = vrcp.f32 %v916_v0 }
 0x8cd   :  { %v5282_v1 = vpop.permute.xlu0 %5281  ;;  %v919_v2 = vpop.xlane.xlu1 %918 }
 0x8ce   :  { %v5284_v4 = vunpack.i.h.bf16 %v5282_v1  ;;  %v5283_v5 = vunpack.i.l.bf16 %v5282_v1  ;;  %5449 = vrcp.f32 %v919_v2 }
 0x8d0   :  { %v4981_v6 = vpack.c.bf16 %v5284_v4, %v5283_v5 }
 0x8d1   :  { %v1018_v7 = vpop.permute.xlu0 %1017  ;;  %v5287_v8 = vpop.permute.xlu1 %5286 }
 0x8d2   :  { %v5289_v10 = vunpack.i.h.bf16 %v5287_v8  ;;  %v5288_v12 = vunpack.i.l.bf16 %v5287_v8  ;;  %4982 = vmatprep.subr.bf16.mxu0 %v4981_v6 }
 0x8d3   :  { %4984 = vmatpush3.bf16.msra.mxu0 %v4981_v6 }
 0x8d4   :  { %v5448_v13 = vpop.eup %5447  ;;  %v4985_v14 = vpack.c.bf16 %v5289_v10, %v5288_v12 }
 0x8d5   :  { %v5297_v15 = vpop.permute.xlu0 %5296  ;;  %v5292_v16 = vpop.permute.xlu1 %5291  ;;  %v922_v17 = vmul.f32 %v5448_v13, %v5444_v60 }
 0x8d6   :  { %v5299_v18 = vunpack.i.h.bf16 %v5297_v15  ;;  %v5298_v20 = vunpack.i.l.bf16 %v5297_v15  ;;  %v5294_v21 = vunpack.i.h.bf16 %v5292_v16  ;;  %v5293_v27 = vunpack.i.l.bf16 %v5292_v16  ;;  %4986 = vmatprep.subr.bf16.mxu0 %v4985_v14 }
 0x8d7   :  { %4988 = vmatpush3.bf16.msra.mxu0 %v4985_v14  ;;  %4637 = vmatprep.mubr.msk.f32.mxu0 %vm75_vm0, %v922_v17 }
 0x8d8   :  { %v5450_v32 = vpop.eup %5449  ;;  %v4995_v33 = vpack.c.bf16 %v5299_v18, %v5298_v20  ;;  %v4989_v35 = vpack.c.bf16 %v5294_v21, %v5293_v27 }
 0x8d9   :  { %v1173_v36 = vpop.permute.xlu0 %1172  ;;  %v1020_v38 = vpop.permute.xlu1 %1019  ;;  %v923_v40 = vmul.f32 %v5450_v32, %v5446_v56 }
 0x8da   :  { %4991 = vmatprep.subr.msk.bf16.mxu0 %vm5686_vm2, %v4989_v35  ;;  %4997 = vmatprep.subr.msk.bf16.mxu1 %vm5686_vm2, %v4995_v33 }
 0x8db   :  { %4655 = vmatprep.mubr.msk.f32.mxu1 %vm272_vm1, %v1173_v36  ;;  %4638 = vmatmul.mubr.msk.f32.vlgmr.msra.gmra.mrb[6].mxu0 %vm75_vm0, %v923_v40 }
 0x8dc   :  { %5000 = vmatpush3.bf16.xpose.msk.msra.mxu1 %vm5686_vm2, %v4995_v33  ;;  %4644 = vmatprep.mubr.msk.f32.mxu0 %vm272_vm1, %v1018_v7 }
 0x8dd   :  { %v5302_v42 = vpop.permute.xlu1 %5301 }
 0x8de   :  { %v5304_v43 = vunpack.i.h.bf16 %v5302_v42  ;;  %v5303_v44 = vunpack.i.l.bf16 %v5302_v42 }
 0x8e0   :  { %v5001_v45 = vpack.c.bf16 %v5304_v43, %v5303_v44  ;;  %4994 = vmatpush3.bf16.xpose.msk.msra.mxu0 %vm5686_vm2, %v4989_v35 }
 0x8e1   :  { %v1175_v47 = vpop.permute.xlu1 %1174 }
 0x8e2   :  { %5003 = vmatprep.subr.msk.bf16.mxu1 %vm5686_vm2, %v5001_v45 }
 0x8e4   :  { %5006 = vmatpush3.bf16.xpose.msk.msra.mxu1 %vm5686_vm2, %v5001_v45 }
 0x8e7   :  { %4645 = vmatmul.mubr.msk.f32.vlgmr.msra.gmra.mrb[8].mxu0 %vm272_vm1, %v1020_v38 }
 0x8eb   :  { %4656 = vmatmul.mubr.msk.f32.vlgmr.msra.gmra.mrb[10].mxu1 %vm272_vm1, %v1175_v47 }
 0x9ae   :  { %v5905_v48 = vpop.f32.mrb[6].mxu0 }
 0x9af   :  { %v5907_v49 = vpop.f32.mrb[7].mxu0 }
 0x9ba   :  { %v4646_v51 = vpop.f32.mrb[8].mxu0 }
 0x9bb   :  { %v1099_v53 = vpop.f32.mrb[9].mxu0 }
 0x9bc   :  { %1116 = vrot.lane.b32.xlu1 %v1099_v53, %s5523_s29  ;;  %1110 = vrot.lane.b32.xlu0 %v1099_v53, %s5522_s28 }
 0x9be   :  { %v4657_v57 = vpop.f32.mrb[10].mxu1 }
 0x9bf   :  { %v1262_v58 = vpop.f32.mrb[11].mxu1 }
 0x9c0   :  { %1118 = vrot.lane.b32.xlu1 %v4646_v51, %s5523_s29  ;;  %1112 = vrot.lane.b32.xlu0 %v4646_v51, %s5522_s28 }
 0xa2e   :  { %v1117_v59 = vpop.permute.xlu1 %1116  ;;  %v1111_v60 = vpop.permute.xlu0 %1110 }
 0xa2f   :  { %v1122_v62 = vsel %vm374_vm3, %v1111_v60, %v1117_v59 }
 0xa30   :  { %v1124_v56 = vsel %vm5722_vm4, %v1122_v62, %v1099_v53 }
 0xa31   :  { %1134 = vrot.lane.b32.xlu1 %v1124_v56, %s5524_s30  ;;  %1128 = vrot.lane.b32.xlu0 %v1124_v56, %s5525_s12 }
 0xa32   :  { %v1119_v63 = vpop.permute.xlu1 %1118  ;;  %v1113_v0 = vpop.permute.xlu0 %1112 }
 0xa33   :  { %v1123_v1 = vsel %vm374_vm3, %v1113_v0, %v1119_v63 }
 0xa34   :  { %v1125_v2 = vsel %vm5731_vm5, %v1123_v1, %v4646_v51 }
 0xa35   :  { %1136 = vrot.lane.b32.xlu1 %v1125_v2, %s5524_s30  ;;  %1130 = vrot.lane.b32.xlu0 %v1125_v2, %s5525_s12 }
 0xaa3   :  { %v1135_v4 = vpop.permute.xlu1 %1134  ;;  %v1129_v5 = vpop.permute.xlu0 %1128 }
 0xaa4   :  { %v1140_v6 = vsel %vm393_vm6, %v1129_v5, %v1135_v4 }
 0xaa5   :  { %v1142_v7 = vsel %vm61_vm7, %v1140_v6, %v1124_v56 }
 0xaa6   :  { %1152 = vrot.lane.b32.xlu1 %v1142_v7, %s5526_s13  ;;  %1146 = vrot.lane.b32.xlu0 %v1142_v7, %s5527_s14 }
 0xaa7   :  { %v1137_v8 = vpop.permute.xlu1 %1136  ;;  %v1131_v10 = vpop.permute.xlu0 %1130 }
 0xaa8   :  { %v1141_v12 = vsel %vm393_vm6, %v1131_v10, %v1137_v8 }
 0xaa9   :  { %v1143_v13 = vsel %vm62_vm8, %v1141_v12, %v1125_v2 }
 0xaaa   :  { %1154 = vrot.lane.b32.xlu1 %v1143_v13, %s5526_s13  ;;  %1148 = vrot.lane.b32.xlu0 %v1143_v13, %s5527_s14 }
 0xb18   :  { %v1153_v14 = vpop.permute.xlu1 %1152  ;;  %v1147_v15 = vpop.permute.xlu0 %1146 }
 0xb19   :  { %v1158_v16 = vsel %vm412_vm9, %v1147_v15, %v1153_v14 }
 0xb1a   :  { %v1160_v17 = vsel %vm67_vm10, %v1158_v16, %v1142_v7 }
 0xb1b   :  { %1164 = vrot.lane.b32.xlu0 %v1160_v17, %s5528_s15 }
 0xb1c   :  { %v1155_v18 = vpop.permute.xlu1 %1154  ;;  %v1149_v20 = vpop.permute.xlu0 %1148 }
 0xb1d   :  { %v1159_v21 = vsel %vm412_vm9, %v1149_v20, %v1155_v18 }
 0xb1e   :  { %v1161_v27 = vsel %vm68_vm11, %v1159_v21, %v1143_v13 }
 0xb1f   :  { %1166 = vrot.lane.b32.xlu1 %v1161_v27, %s5528_s15 }
 0xb8d   :  { %v1165_v32 = vpop.permute.xlu0 %1164 }
 0xb8e   :  { %v1170_v33 = vsel %vm425_vm12, %v1160_v17, %v1165_v32 }
 0xb8f   :  { %v1263_v35 = vadd.f32 %v1262_v58, %v1170_v33 }
 0xb91   :  { %v1167_v36 = vpop.permute.xlu1 %1166  ;;  %v1271_v38 = vadd.f32 %v1263_v35, %v5774_v46 }
 0xb92   :  { %v1171_v40 = vsel %vm425_vm12, %v1161_v27, %v1167_v36 }
 0xb93   :  { %v1268_v42 = vadd.f32 %v4657_v57, %v1171_v40  ;;  %v1273_v43 = vsel %vm75_vm0, %v1271_v38, -inf }
 0xb94   :  { %1274 = vmax.xlane.f32.xlu0 %v1273_v43 }
 0xb95   :  { %v1272_v44 = vadd.f32 %v1268_v42, %v5781_v52 }
 0xb97   :  { %v1276_v45 = vsel %vm75_vm0, %v1272_v44, -inf }
 0xb98   :  { %1277 = vmax.xlane.f32.xlu1 %v1276_v45 }
 0xba9   :  { %5306 = vrot.lane.b32.xlu1 %v5666_v29, %s6662_s26 }
 0xbad   :  { %5316 = vrot.lane.b32.xlu1 %v5690_v39, %s6660_s27 }
 0xbb1   :  { %1388 = vrot.lane.b32.xlu1 %v5669_v30, %s6660_s27 }
 0xbb5   :  { %5321 = vrot.lane.b32.xlu1 %v5666_v29, %s6658_s16 }
 0xbb9   :  { %1543 = vrot.lane.b32.xlu1 %v5672_v31, %s6660_s27 }
 0xc21   :  { %v1275_v47 = vpop.xlane.xlu0 %1274 }
 0xc22   :  { %v1279_v51 = vsub.f32 %v1271_v38, %v1275_v47 }
 0xc24   :  { %v1281_v59 = vmul.f32 1.442695, %v1279_v51 }
 0xc25   :  { %v1278_v53 = vpop.xlane.xlu1 %1277 }
 0xc26   :  { %v1280_v57 = vsub.f32 %v1272_v44, %v1278_v53 }
 0xc28   :  { %v1283_v58 = vmul.f32 1.442695, %v1280_v57 }
 0xc29   :  { %v5307_v60 = vpop.permute.xlu1 %5306 }
 0xc2a   :  { %5451 = vpow2.f32 %v1283_v58  ;;  %v5309_v62 = vunpack.i.h.bf16 %v5307_v60  ;;  %v5308_v39 = vunpack.i.l.bf16 %v5307_v60 }
 0xc2b   :  { %5453 = vpow2.f32 %v1281_v59 }
 0xc2c   :  { %v5007_v56 = vpack.c.bf16 %v5309_v62, %v5308_v39 }
 0xc2d   :  { %v5317_v30 = vpop.permute.xlu1 %5316 }
 0xc2e   :  { %5008 = vmatprep.subr.bf16.mxu0 %v5007_v56  ;;  %v5319_v14 = vunpack.i.h.bf16 %v5317_v30  ;;  %v5318_v15 = vunpack.i.l.bf16 %v5317_v30 }
 0xc2f   :  { %5010 = vmatpush3.bf16.msra.mxu0 %v5007_v56 }
 0xc30   :  { %v5015_v21 = vpack.c.bf16 %v5319_v14, %v5318_v15 }
 0xc31   :  { %v1389_v63 = vpop.permute.xlu1 %1388 }
 0xc34   :  { %v5452_v0 = vpop.eup %5451 }
 0xc35   :  { %v5322_v1 = vpop.permute.xlu1 %5321  ;;  %v1288_v31 = vsel %vm75_vm0, %v5452_v0, 0.0  ;;  %v5454_v5 = vpop.eup %5453 }
 0xc36   :  { %v5324_v2 = vunpack.i.h.bf16 %v5322_v1  ;;  %v5323_v4 = vunpack.i.l.bf16 %v5322_v1  ;;  %1289 = vadd.xlane.f32.xlu0 %v1288_v31  ;;  %v1285_v8 = vsel %vm75_vm0, %v5454_v5, 0.0 }
 0xc38   :  { %v5021_v6 = vpack.c.bf16 %v5324_v2, %v5323_v4 }
 0xc39   :  { %v1544_v7 = vpop.permute.xlu1 %1543 }
 0xc3a   :  { %5023 = vmatprep.subr.msk.bf16.mxu1 %vm5686_vm2, %v5021_v6  ;;  %4684 = vmatprep.mubr.msk.f32.mxu1 %vm272_vm1, %v1544_v7 }
 0xc3b   :  { %1286 = vadd.xlane.f32.xlu0 %v1285_v8  ;;  %5026 = vmatpush3.bf16.xpose.msk.msra.mxu1 %vm5686_vm2, %v5021_v6 }
 0xc51   :  { %5311 = vrot.lane.b32.xlu0 %v5680_v34, %s6662_s26 }
 0xc55   :  { %1390 = vrot.lane.b32.xlu0 %v5697_v41, %s6660_s27 }
 0xc59   :  { %5326 = vrot.lane.b32.xlu0 %v5680_v34, %s6658_s16 }
 0xc5d   :  { %1545 = vrot.lane.b32.xlu0 %v5710_v50, %s6660_s27 }
 0xcc3   :  { %v1290_v10 = vpop.xlane.xlu0 %1289 }
 0xcc4   :  { %5455 = vrcp.f32 %v1290_v10 }
 0xcc8   :  { %v1287_v12 = vpop.xlane.xlu0 %1286 }
 0xcc9   :  { %5457 = vrcp.f32 %v1287_v12 }
 0xccc   :  { %v5312_v13 = vpop.permute.xlu0 %5311 }
 0xccd   :  { %v5314_v16 = vunpack.i.h.bf16 %v5312_v13  ;;  %v5313_v17 = vunpack.i.l.bf16 %v5312_v13 }
 0xcce   :  { %v5456_v41 = vpop.eup %5455 }
 0xccf   :  { %v5011_v18 = vpack.c.bf16 %v5314_v16, %v5313_v17  ;;  %v1294_v36 = vmul.f32 %v5456_v41, %v5452_v0 }
 0xcd0   :  { %v1391_v20 = vpop.permute.xlu0 %1390 }
 0xcd1   :  { %5012 = vmatprep.subr.bf16.mxu0 %v5011_v18 }
 0xcd2   :  { %5014 = vmatpush3.bf16.msra.mxu0 %v5011_v18 }
 0xcd3   :  { %v5458_v27 = vpop.eup %5457  ;;  %5017 = vmatprep.subr.msk.bf16.mxu0 %vm5686_vm2, %v5015_v21 }
 0xcd4   :  { %v5327_v50 = vpop.permute.xlu0 %5326  ;;  %v1293_v32 = vmul.f32 %v5458_v27, %v5454_v5 }
 0xcd5   :  { %v5329_v33 = vunpack.i.h.bf16 %v5327_v50  ;;  %v5328_v35 = vunpack.i.l.bf16 %v5327_v50 }
 0xcd6   :  { %4666 = vmatprep.mubr.msk.f32.mxu0 %vm75_vm0, %v1293_v32 }
 0xcd7   :  { %v5027_v38 = vpack.c.bf16 %v5329_v33, %v5328_v35  ;;  %4667 = vmatmul.mubr.msk.f32.vlgmr.msra.gmra.mrb[10].mxu0 %vm75_vm0, %v1294_v36 }
 0xcd8   :  { %4673 = vmatprep.mubr.msk.f32.mxu0 %vm272_vm1, %v1389_v63  ;;  %v1546_v40 = vpop.permute.xlu0 %1545 }
 0xcd9   :  { %5029 = vmatprep.subr.msk.bf16.mxu1 %vm5686_vm2, %v5027_v38 }
 0xcda   :  { %5032 = vmatpush3.bf16.xpose.msk.msra.mxu1 %vm5686_vm2, %v5027_v38 }
 0xcdb   :  { %5020 = vmatpush3.bf16.xpose.msk.msra.mxu0 %vm5686_vm2, %v5015_v21 }
 0xce1   :  { %4685 = vmatmul.mubr.msk.f32.vlgmr.msra.gmra.mrb[12].mxu1 %vm272_vm1, %v1546_v40 }
 0xce2   :  { %4674 = vmatmul.mubr.msk.f32.vlgmr.msra.gmra.mrb[12].mxu0 %vm272_vm1, %v1391_v20 }
 0xdaa   :  { %v5985_v42 = vpop.f32.mrb[10].mxu0 }
 0xdab   :  { %v5987_v43 = vpop.f32.mrb[11].mxu0 }
 0xdb4   :  { %v4686_v44 = vpop.f32.mrb[12].mxu1 }
 0xdb5   :  { %v4675_v45 = vpop.f32.mrb[12].mxu0  ;;  %v1633_v47 = vpop.f32.mrb[13].mxu1 }
 0xdb6   :  { %v1470_v51 = vpop.f32.mrb[13].mxu0 }
 0xdb7   :  { %1487 = vrot.lane.b32.xlu0 %v1470_v51, %s5523_s29  ;;  %1481 = vrot.lane.b32.xlu1 %v1470_v51, %s5522_s28 }
 0xdbb   :  { %1489 = vrot.lane.b32.xlu0 %v4675_v45, %s5523_s29  ;;  %1483 = vrot.lane.b32.xlu1 %v4675_v45, %s5522_s28 }
 0xe29   :  { %v1488_v53 = vpop.permute.xlu0 %1487  ;;  %v1482_v57 = vpop.permute.xlu1 %1481 }
 0xe2a   :  { %v1493_v58 = vsel %vm374_vm3, %v1482_v57, %v1488_v53 }
 0xe2b   :  { %v1495_v59 = vsel %vm5722_vm4, %v1493_v58, %v1470_v51 }
 0xe2c   :  { %1505 = vrot.lane.b32.xlu0 %v1495_v59, %s5524_s30  ;;  %1499 = vrot.lane.b32.xlu1 %v1495_v59, %s5525_s12 }
 0xe2d   :  { %v1490_v60 = vpop.permute.xlu0 %1489  ;;  %v1484_v62 = vpop.permute.xlu1 %1483 }
 0xe2e   :  { %v1494_v39 = vsel %vm374_vm3, %v1484_v62, %v1490_v60 }
 0xe2f   :  { %v1496_v56 = vsel %vm5731_vm5, %v1494_v39, %v4675_v45 }
 0xe30   :  { %1507 = vrot.lane.b32.xlu0 %v1496_v56, %s5524_s30  ;;  %1501 = vrot.lane.b32.xlu1 %v1496_v56, %s5525_s12 }
 0xe9e   :  { %v1506_v30 = vpop.permute.xlu0 %1505  ;;  %v1500_v63 = vpop.permute.xlu1 %1499 }
 0xe9f   :  { %v1511_v0 = vsel %vm393_vm6, %v1500_v63, %v1506_v30  ;;  %v1790_v30 = vld [vmem:[%s6649_s6] sm:$0xff]  ;;  %v1791_v63 = vld [vmem:[%s6649_s6 + $0x8] sm:$0xff] }
 0xea0   :  { %v1513_v1 = vsel %vm61_vm7, %v1511_v0, %v1495_v59  ;;  %v1792_v0 = vld [vmem:[%s6649_s6 + $0x10] sm:$0xff] }
 0xea1   :  { %1523 = vrot.lane.b32.xlu0 %v1513_v1, %s5526_s13  ;;  %1517 = vrot.lane.b32.xlu1 %v1513_v1, %s5527_s14 }
 0xea2   :  { %v1508_v31 = vpop.permute.xlu0 %1507  ;;  %v1502_v2 = vpop.permute.xlu1 %1501 }
 0xea3   :  { %v1512_v4 = vsel %vm393_vm6, %v1502_v2, %v1508_v31  ;;  %v1793_v31 = vld [vmem:[%s6649_s6 + $0x18] sm:$0xff] }
 0xea4   :  { %v1514_v5 = vsel %vm62_vm8, %v1512_v4, %v1496_v56  ;;  %v5045_v2 = vpack.c.bf16 %v1793_v31, %v1792_v0 }
 0xea5   :  { %1525 = vrot.lane.b32.xlu0 %v1514_v5, %s5526_s13  ;;  %1519 = vrot.lane.b32.xlu1 %v1514_v5, %s5527_s14 }
 0xf13   :  { %v1524_v6 = vpop.permute.xlu0 %1523  ;;  %v1518_v7 = vpop.permute.xlu1 %1517 }
 0xf14   :  { %v1529_v8 = vsel %vm412_vm9, %v1518_v7, %v1524_v6 }
 0xf15   :  { %v1531_v10 = vsel %vm67_vm10, %v1529_v8, %v1513_v1  ;;  %v5041_v1 = vpack.c.bf16 %v1791_v63, %v1790_v30 }
 0xf16   :  { %1535 = vrot.lane.b32.xlu1 %v1531_v10, %s5528_s15 }
 0xf17   :  { %v1526_v12 = vpop.permute.xlu0 %1525  ;;  %v1520_v13 = vpop.permute.xlu1 %1519 }
 0xf18   :  { %v1530_v14 = vsel %vm412_vm9, %v1520_v13, %v1526_v12 }
 0xf19   :  { %v1532_v15 = vsel %vm68_vm11, %v1530_v14, %v1514_v5 }
 0xf1a   :  { %1537 = vrot.lane.b32.xlu0 %v1532_v15, %s5528_s15 }
 0xf88   :  { %v1536_v16 = vpop.permute.xlu1 %1535 }
 0xf89   :  { %v1541_v17 = vsel %vm425_vm12, %v1531_v10, %v1536_v16 }
 0xf8a   :  { %v1634_v18 = vadd.f32 %v1633_v47, %v1541_v17 }
 0xf8c   :  { %v1538_v20 = vpop.permute.xlu0 %1537  ;;  %v1642_v21 = vadd.f32 %v1634_v18, %v5774_v46 }
 0xf8d   :  { %v1542_v41 = vsel %vm425_vm12, %v1532_v15, %v1538_v20 }
 0xf8e   :  { %v1639_v27 = vadd.f32 %v4686_v44, %v1542_v41  ;;  %v1644_v50 = vsel %vm75_vm0, %v1642_v21, -inf }
 0xf8f   :  { %1645 = vmax.xlane.f32.xlu1 %v1644_v50 }
 0xf90   :  { %v1643_v32 = vadd.f32 %v1639_v27, %v5781_v52  ;;  %v5516_v27 = vld [vmem:[%s6645_s0] sm:$0xff] }
 0xf92   :  { %v1647_v33 = vsel %vm75_vm0, %v1643_v32, -inf }
 0xf93   :  { %1648 = vmax.xlane.f32.xlu0 %v1647_v33 }
0x101c   :  { %v1646_v35 = vpop.xlane.xlu1 %1645 }
0x101d   :  { %v1650_v36 = vsub.f32 %v1642_v21, %v1646_v35 }
0x101f   :  { %v1652_v38 = vmul.f32 1.442695, %v1650_v36 }
0x1020   :  { %v1649_v40 = vpop.xlane.xlu0 %1648 }
0x1021   :  { %5459 = vpow2.f32 %v1652_v38  ;;  %v1651_v45 = vsub.f32 %v1643_v32, %v1649_v40 }
0x1023   :  { %v1654_v47 = vmul.f32 1.442695, %v1651_v45 }
0x1025   :  { %5461 = vpow2.f32 %v1654_v47 }
0x102b   :  { %v5460_v46 = vpop.eup %5459 }
0x102c   :  { %v1656_v51 = vsel %vm75_vm0, %v5460_v46, 0.0 }
0x102d   :  { %1657 = vadd.xlane.f32.xlu0 %v1656_v51 }
0x102f   :  { %v5462_v44 = vpop.eup %5461 }
0x1030   :  { %v1659_v53 = vsel %vm75_vm0, %v5462_v44, 0.0 }
0x1031   :  { %1660 = vadd.xlane.f32.xlu1 %v1659_v53 }
0x1042   :  { %5336 = vrot.lane.b32.xlu1 %v5680_v34, %s6656_s17 }
0x1043   :  { %5331 = vrot.lane.b32.xlu0 %v5666_v29, %s6656_s17  ;;  %s6682_s17 = smov 104  }
0x1046   :  { %1761 = vrot.lane.b32.xlu1 %v5907_v49, %s6654_s18 }
0x1047   :  { %1763 = vrot.lane.b32.xlu0 %v5905_v48, %s6654_s18  ;;  %s6668_s18 = smov 24  }
0x104a   :  { %1769 = vrot.lane.b32.xlu1 %v5987_v43, %s5528_s15 }
0x104b   :  { %1771 = vrot.lane.b32.xlu0 %v5985_v42, %s5528_s15 }
0x10ba   :  { %v1658_v52 = vpop.xlane.xlu0 %1657 }
0x10bb   :  { %5463 = vrcp.f32 %v1658_v52  ;;  %v1917_v52 = vld [vmem:[%s6650_s7] sm:$0xff] }
0x10be   :  { %v5332_v57 = vpop.permute.xlu0 %5331  ;;  %v1661_v34 = vpop.xlane.xlu1 %1660 }
0x10bf   :  { %v5334_v58 = vunpack.i.h.bf16 %v5332_v57  ;;  %v5333_v59 = vunpack.i.l.bf16 %v5332_v57  ;;  %5465 = vrcp.f32 %v1661_v34  ;;  %v1918_v57 = vld [vmem:[%s6650_s7 + $0x8] sm:$0xff] }
0x10c0   :  { %v5049_v34 = vpack.c.bf16 %v1918_v57, %v1917_v52 }
0x10c1   :  { %v5033_v29 = vpack.c.bf16 %v5334_v58, %v5333_v59  ;;  %v1919_v58 = vld [vmem:[%s6650_s7 + $0x10] sm:$0xff]  ;;  %v1920_v59 = vld [vmem:[%s6650_s7 + $0x18] sm:$0xff] }
0x10c2   :  { %v5337_v60 = vpop.permute.xlu1 %5336  ;;  %v1764_v6 = vpop.permute.xlu0 %1763  ;;  %5050 = vmatprep.subr.bf16.mxu1 %v5049_v34 }
0x10c3   :  { %v5339_v62 = vunpack.i.h.bf16 %v5337_v60  ;;  %v5338_v49 = vunpack.i.l.bf16 %v5337_v60  ;;  %5034 = vmatprep.subr.bf16.mxu0 %v5033_v29  ;;  %v1784_v14 = vsel %vm272_vm1, %v5825_v54, %v1764_v6  ;;  %5052 = vmatpush3.bf16.msra.mxu1 %v5049_v34  ;;  %v2008_v60 = vld [vmem:[%s6651_s8] sm:$0xff] }
0x10c4   :  { %5036 = vmatpush3.bf16.msra.mxu0 %v5033_v29  ;;  %v5053_v29 = vpack.c.bf16 %v1920_v59, %v1919_v58 }
0x10c5   :  { %v5464_v48 = vpop.eup %5463  ;;  %v5037_v39 = vpack.c.bf16 %v5339_v62, %v5338_v49  ;;  %v2009_v62 = vld [vmem:[%s6651_s8 + $0x8] sm:$0xff]  ;;  %v2010_v49 = vld [vmem:[%s6651_s8 + $0x10] sm:$0xff] }
0x10c6   :  { %v1664_v56 = vmul.f32 %v5464_v48, %v5460_v46  ;;  %v1762_v7 = vpop.permute.xlu1 %1761  ;;  %v1772_v8 = vpop.permute.xlu0 %1771  ;;  %5054 = vmatprep.subr.bf16.mxu1 %v5053_v29  ;;  %v5057_v48 = vpack.c.bf16 %v2009_v62, %v2008_v60 }
0x10c7   :  { %5038 = vmatprep.subr.bf16.mxu0 %v5037_v39  ;;  %v1783_v12 = vsel %vm272_vm1, %v5827_v55, %v1762_v7  ;;  %v1786_v17 = vsel %vm425_vm12, %v1784_v14, %v1772_v8  ;;  %v5515_v55 = vld [vmem:[%s6645_s0 + $0x8] sm:$0xff]  ;;  %5056 = vmatpush3.bf16.msra.mxu1 %v5053_v29 }
0x10c8   :  { %5040 = vmatpush3.bf16.msra.mxu0 %v5037_v39  ;;  %4695 = vmatprep.mubr.msk.f32.mxu0 %vm75_vm0, %v1664_v56  ;;  %v2011_v39 = vld [vmem:[%s6651_s8 + $0x18] sm:$0xff] }
0x10c9   :  { %v5466_v42 = vpop.eup %5465  ;;  %5042 = vmatprep.subr.bf16.mxu0 %v5041_v1  ;;  %v5061_v56 = vpack.c.bf16 %v2011_v39, %v2010_v49 }
0x10ca   :  { %v1665_v43 = vmul.f32 %v5466_v42, %v5462_v44  ;;  %v1770_v10 = vpop.permute.xlu1 %1769  ;;  %v2012_v42 = vld [vmem:[%s6651_s8 + $0x20] sm:$0xff] }
0x10cb   :  { %v1785_v15 = vsel %vm425_vm12, %v1783_v12, %v1770_v10 }
0x10cc   :  { %4696 = vmatmul.mubr.msk.f32.vlgmr.msra.gmra.mrb[14].mxu0 %vm75_vm0, %v1665_v43  ;;  %v2013_v43 = vld [vmem:[%s6651_s8 + $0x28] sm:$0xff] }
0x10cd   :  { %5044 = vmatpush3.bf16.msra.mxu0 %v5041_v1  ;;  %v5065_v30 = vpack.c.bf16 %v2013_v43, %v2012_v42  ;;  %v4271_v42 = vld [vmem:[%s6642_s4 + $0x28] sm:$0xff] }
0x10ce   :  { %5046 = vmatprep.subr.bf16.mxu0 %v5045_v2 }
0x10d1   :  { %5048 = vmatpush3.bf16.msra.mxu0 %v5045_v2 }
0x10d2   :  { %5058 = vmatprep.subr.bf16.mxu0 %v5057_v48 }
0x119f   :  { %v4697_v4 = vpop.f32.mrb[14].mxu0 }
0x11a0   :  { %1779 = vrot.lane.b32.xlu0 %v4697_v4, %s6668_s18  ;;  %v1750_v5 = vpop.f32.mrb[15].mxu0 }
0x11a1   :  { %1777 = vrot.lane.b32.xlu1 %v1750_v5, %s6668_s18  ;;  %v6110_v5 = vld [vmem:[%s6652_s9] sm:$0x3f] }
0x11a2   :  { %v1908_v6 = vrot.slane %v6110_v5, %v5658_v23 }
0x1212   :  { %v1780_v13 = vpop.permute.xlu0 %1779 }
0x1213   :  { %v1778_v16 = vpop.permute.xlu1 %1777  ;;  %v1789_v20 = vsel %vm1787_vm13, %v1786_v17, %v1780_v13  ;;  %v1914_v13 = vrot.slane %v6110_v5, %v5655_v22 }
0x1214   :  { %v1788_v18 = vsel %vm1787_vm13, %v1785_v15, %v1778_v16 }
0x1215   :  { %4706 = vmatprep.mubr.msk.f32.mxu0 %vm75_vm0, %v1788_v18  ;;  %v2014_v18 = vld [vmem:[%s6651_s8 + $0x30] sm:$0xff] }
0x1216   :  { %4707 = vmatmul.mubr.msk.f32.vlgmr.msra.gmra.mrb[16].mxu0 %vm75_vm0, %v1789_v20  ;;  %v2015_v20 = vld [vmem:[%s6651_s8 + $0x38] sm:$0xff] }
0x1217   :  { %5060 = vmatpush3.bf16.msra.mxu0 %v5057_v48 }
0x1218   :  { %5062 = vmatprep.subr.bf16.mxu0 %v5061_v56 }
0x121b   :  { %5064 = vmatpush3.bf16.msra.mxu0 %v5061_v56  ;;  %v4270_v56 = vld [vmem:[%s6642_s4 + $0x20] sm:$0xff] }
0x121c   :  { %5066 = vmatprep.subr.bf16.mxu0 %v5065_v30  ;;  %v5073_v43 = vpack.c.bf16 %v4271_v42, %v4270_v56 }
0x121e   :  { %5074 = vmatprep.subr.bf16.mxu1 %v5073_v43 }
0x121f   :  { %5068 = vmatpush3.bf16.msra.mxu0 %v5065_v30  ;;  %v4272_v30 = vld [vmem:[%s6642_s4 + $0x30] sm:$0xff] }
0x12e9   :  { %v4708_v21 = vpop.f32.mrb[16].mxu0 }
0x12ea   :  { %v1877_v41 = vadd.f32 %v5515_v55, %v4708_v21  ;;  %v1866_v54 = vpop.f32.mrb[17].mxu0  ;;  %v5069_v21 = vpack.c.bf16 %v2015_v20, %v2014_v18  ;;  %v1923_v55 = vsub.s32 5, %v5649_v19 }
0x12eb   :  { %v1876_v50 = vadd.f32 %v5516_v27, %v1866_v54 }
0x12ec   :  { %v1881_v32 = vsel %vm75_vm0, %v1877_v41, 0.0  ;;  %5070 = vmatprep.subr.bf16.mxu0 %v5069_v21 }
0x12ed   :  { %1882 = vadd.xlane.f32.xlu0 %v1881_v32  ;;  %v1878_v33 = vsel %vm75_vm0, %v1876_v50, 0.0  ;;  %5072 = vmatpush3.bf16.msra.mxu0 %v5069_v21 }
0x12ee   :  { %1879 = vadd.xlane.f32.xlu1 %v1878_v33 }
0x137a   :  { %v1883_v35 = vpop.xlane.xlu0 %1882 }
0x137b   :  { %v1886_v36 = vmul.f32 0.03125, %v1883_v35  ;;  %v1880_v38 = vpop.xlane.xlu1 %1879 }
0x137c   :  { %v1885_v40 = vmul.f32 0.03125, %v1880_v38 }
0x137d   :  { %v1888_v45 = vsub.f32 %v1877_v41, %v1886_v36  ;;  %v1924_v41 = vrot.slane %v6110_v5, %v1923_v55  ;;  %v2018_v36 = vsub.s32 4, %v5649_v19 }
0x137e   :  { %v1887_v47 = vsub.f32 %v1876_v50, %v1885_v40 }
0x137f   :  { %v1890_v46 = vmul.f32 %v1888_v45, %v1888_v45  ;;  %v2019_v38 = vrot.slane %v6110_v5, %v2018_v36 }
0x1380   :  { %v1889_v51 = vmul.f32 %v1887_v47, %v1887_v47 }
0x1381   :  { %v1894_v44 = vsel %vm75_vm0, %v1890_v46, 0.0 }
0x1382   :  { %1895 = vadd.xlane.f32.xlu1 %v1894_v44  ;;  %v1891_v53 = vsel %vm75_vm0, %v1889_v51, 0.0 }
0x1383   :  { %1892 = vadd.xlane.f32.xlu0 %v1891_v53 }
0x140f   :  { %v1896_v63 = vpop.xlane.xlu1 %1895 }
0x1410   :  { %v1898_v0 = vmul.f32 0.03125, %v1896_v63  ;;  %v1893_v1 = vpop.xlane.xlu0 %1892  ;;  %v4273_v63 = vld [vmem:[%s6642_s4 + $0x38] sm:$0xff] }
0x1411   :  { %v1897_v31 = vmul.f32 0.03125, %v1893_v1  ;;  %v5077_v1 = vpack.c.bf16 %v4273_v63, %v4272_v30 }
0x1412   :  { %v1900_v2 = vadd.f32 1e-05, %v1898_v0  ;;  %v4268_v0 = vld [vmem:[%s6643_s1 + $0x10] sm:$0xff] }
0x1413   :  { %v1899_v4 = vadd.f32 1e-05, %v1897_v31  ;;  %v4278_v31 = vld [vmem:[%s6644_s5 + $0x20] sm:$0xff] }
0x1414   :  { %5467 = vrsqrt.f32 %v1900_v2  ;;  %v4279_v2 = vld [vmem:[%s6644_s5 + $0x28] sm:$0xff] }
0x1415   :  { %5469 = vrsqrt.f32 %v1899_v4  ;;  %v5081_v4 = vpack.c.bf16 %v4279_v2, %v4278_v31 }
0x141e   :  { %v5468_v7 = vpop.eup %5467 }
0x141f   :  { %v5470_v8 = vpop.eup %5469  ;;  %v1904_v10 = vmul.f32 %v5468_v7, %v1888_v45 }
0x1420   :  { %v1903_v12 = vmul.f32 %v5470_v8, %v1887_v47 }
0x1421   :  { %v1910_v14 = vmul.f32 %v1908_v6, %v1904_v10 }
0x1422   :  { %v1909_v15 = vmul.f32 %v1908_v6, %v1903_v12 }
0x1423   :  { %v1916_v17 = vadd.f32 %v1914_v13, %v1910_v14  ;;  %v2132_v14 = vsub.s32 2, %v5649_v19 }
0x1424   :  { %v1915_v16 = vadd.f32 %v1914_v13, %v1909_v15  ;;  %v2138_v15 = vsub.s32 3, %v5649_v19 }
0x1426   :  { %4717 = vmatprep.mubr.msk.f32.mxu1 %vm75_vm0, %v1915_v16  ;;  %v2139_v20 = vrot.slane %v6110_v5, %v2138_v15 }
0x1427   :  { %4718 = vmatmul.mubr.msk.f32.vlgmr.msra.gmra.mrb[14].mxu1 %vm75_vm0, %v1916_v17 }
0x1428   :  { %5076 = vmatpush3.bf16.msra.mxu1 %v5073_v43  ;;  %4747 = vmatprep.mubr.msk.f32.mxu1 %vm75_vm0, %v4268_v0 }
0x1429   :  { %5078 = vmatprep.subr.bf16.mxu1 %v5077_v1 }
0x142c   :  { %5080 = vmatpush3.bf16.msra.mxu1 %v5077_v1 }
0x142d   :  { %5082 = vmatprep.subr.bf16.mxu1 %v5081_v4 }
0x14fa   :  { %v4719_v54 = vpop.f32.mrb[14].mxu1 }
0x14fb   :  { %v2003_v27 = vadd.f32 %v4719_v54, %v1924_v41  ;;  %v1997_v50 = vpop.f32.mrb[15].mxu1 }
0x14fc   :  { %v1998_v32 = vadd.f32 %v1997_v50, %v1924_v41  ;;  %v4281_v50 = vld [vmem:[%s6644_s5 + $0x38] sm:$0xff] }
0x14fd   :  { %v2007_v35 = vmax.f32 %v2003_v27, 0.0  ;;  %v4280_v27 = vld [vmem:[%s6644_s5 + $0x30] sm:$0xff]  ;;  %s6686_s5 = smov 24  }
0x14fe   :  { %v2006_v33 = vmax.f32 %v1998_v32, 0.0 }
0x1500   :  { %4736 = vmatprep.mubr.msk.f32.mxu0 %vm2020_vm14, %v2006_v33 }
0x1501   :  { %4737 = vmatmul.mubr.msk.f32.vlgmr.msra.gmra.mrb[18].mxu0 %vm2020_vm14, %v2007_v35 }
0x15d4   :  { %v4738_v40 = vpop.f32.mrb[18].mxu0 }
0x15d5   :  { %v2099_v45 = vadd.f32 %v4738_v40, %v2019_v38  ;;  %v2093_v47 = vpop.f32.mrb[19].mxu0  ;;  %v5517_v40 = vld [vmem:[%s6646_s2] sm:$0xff] }
0x15d6   :  { %v2094_v46 = vadd.f32 %v2093_v47, %v2019_v38  ;;  %v5085_v38 = vpack.c.bf16 %v4281_v50, %v4280_v27 }
0x15d7   :  { %v2103_v51 = vadd.f32 %v2099_v45, %v1916_v17  ;;  %v5518_v45 = vld [vmem:[%s6646_s2 + $0x8] sm:$0xff] }
0x15d8   :  { %v2102_v44 = vadd.f32 %v2094_v46, %v1915_v16  ;;  %v2133_v16 = vrot.slane %v6110_v5, %v2132_v14  ;;  %v4269_v5 = vld [vmem:[%s6643_s1 + $0x18] sm:$0xff] }
0x15d9   :  { %v2107_v53 = vsel %vm75_vm0, %v2103_v51, 0.0 }
0x15da   :  { %2108 = vadd.xlane.f32.xlu1 %v2107_v53  ;;  %v2104_v52 = vsel %vm75_vm0, %v2102_v44, 0.0 }
0x15db   :  { %2105 = vadd.xlane.f32.xlu0 %v2104_v52 }
0x1667   :  { %v2109_v57 = vpop.xlane.xlu1 %2108 }
0x1668   :  { %v2111_v34 = vmul.f32 0.03125, %v2109_v57  ;;  %v2106_v58 = vpop.xlane.xlu0 %2105 }
0x1669   :  { %v2110_v59 = vmul.f32 0.03125, %v2106_v58 }
0x166a   :  { %v2113_v29 = vsub.f32 %v2103_v51, %v2111_v34 }
0x166b   :  { %v2112_v60 = vsub.f32 %v2102_v44, %v2110_v59 }
0x166c   :  { %v2115_v62 = vmul.f32 %v2113_v29, %v2113_v29 }
0x166d   :  { %v2114_v49 = vmul.f32 %v2112_v60, %v2112_v60 }
0x166e   :  { %v2119_v48 = vsel %vm75_vm0, %v2115_v62, 0.0 }
0x166f   :  { %2120 = vadd.xlane.f32.xlu1 %v2119_v48  ;;  %v2116_v39 = vsel %vm75_vm0, %v2114_v49, 0.0 }
0x1670   :  { %2117 = vadd.xlane.f32.xlu0 %v2116_v39 }
0x16fc   :  { %v2121_v6 = vpop.xlane.xlu1 %2120 }
0x16fd   :  { %v2123_v7 = vmul.f32 0.03125, %v2121_v6  ;;  %v2118_v8 = vpop.xlane.xlu0 %2117 }
0x16fe   :  { %v2122_v10 = vmul.f32 0.03125, %v2118_v8 }
0x16ff   :  { %v2125_v12 = vadd.f32 1e-05, %v2123_v7 }
0x1700   :  { %v2124_v13 = vadd.f32 1e-05, %v2122_v10 }
0x1701   :  { %5471 = vrsqrt.f32 %v2125_v12 }
0x1702   :  { %5473 = vrsqrt.f32 %v2124_v13 }
0x170b   :  { %v5472_v17 = vpop.eup %5471 }
0x170c   :  { %v5474_v18 = vpop.eup %5473  ;;  %v2129_v21 = vmul.f32 %v5472_v17, %v2113_v29 }
0x170d   :  { %v2128_v41 = vmul.f32 %v5474_v18, %v2112_v60 }
0x170e   :  { %v2135_v54 = vmul.f32 %v2133_v16, %v2129_v21 }
0x170f   :  { %v2134_v32 = vmul.f32 %v2133_v16, %v2128_v41 }
0x1710   :  { %v6174_v33 = vadd.f32 %v2139_v20, %v2135_v54 }
0x1711   :  { %v6176_v35 = vadd.f32 %v2139_v20, %v2134_v32 }
0x1712   :  { %2143 = vst.msk [vmem:[%s6653_s11 + $0x8] sm:$0xff] %vm75_vm0, %v6174_v33 }
0x1713   :  { %4748 = vmatmul.mubr.msk.f32.vlgmr.msra.gmra.mrb[16].mxu1 %vm75_vm0, %v6176_v35  ;;  %2142 = vst.msk [vmem:[%s6653_s11] sm:$0xff] %vm75_vm0, %v6176_v35 }
0x1714   :  { %5084 = vmatpush3.bf16.msra.mxu1 %v5081_v4  ;;  %4750 = vmatprep.mubr.msk.f32.mxu1 %vm75_vm0, %v4269_v5 }
0x1715   :  { %5086 = vmatprep.subr.bf16.mxu1 %v5085_v38 }
0x1717   :  { %4751 = vmatmul.mubr.msk.f32.gmra.mrb[18].mxu1 %vm75_vm0, %v6174_v33 }
0x1718   :  { %5088 = vmatpush3.bf16.msra.mxu1 %v5085_v38  ;;  %4761 = vmatprep.mubr.msk.f32.mxu1 %vm75_vm0, %v5517_v40 }
0x171b   :  { %4762 = vmatmul.mubr.msk.f32.vlgmr.msra.gmra.mrb[20].mxu1 %vm75_vm0, %v5518_v45 }
0x17e6   :  { %v4749_v47 = vpop.f32.mrb[16].mxu1 }
0x17e7   :  { %v2230_v46 = vpop.f32.mrb[17].mxu1  ;;  %v2329_v51 = vmul.f32 0.35355338, %v4749_v47 }
0x17e8   :  { %v6204_v44 = vpack.i.bf16 %v4749_v47, %v2230_v46 }
0x17e9   :  { %v6207_v53 = vadd.f32 %v2329_v51, %v5661_v24  ;;  %v6210_v52 = vadd.f32 %v2329_v51, %v5664_v25 }
0x17ea   :  { %5341 = vrot.lane.b32.xlu0 %v6204_v44, %s5521_s10  ;;  %v4752_v57 = vpop.f32.mrb[18].mxu1 }
0x17eb   :  { %v2240_v34 = vpop.f32.mrb[19].mxu1  ;;  %4768 = vmatprep.mubr.msk.f32.mxu0 %vm272_vm1, %v6207_v53  ;;  %4779 = vmatprep.mubr.msk.f32.mxu1 %vm272_vm1, %v6210_v52  ;;  %v2330_v49 = vmul.f32 0.35355338, %v4752_v57 }
0x17ec   :  { %v6218_v58 = vpack.i.bf16 %v4752_v57, %v2240_v34 }
0x17ed   :  { %v6229_v48 = vadd.f32 %v2330_v49, %v5661_v24  ;;  %v6242_v24 = vadd.f32 %v2330_v49, %v5664_v25 }
0x17ee   :  { %5346 = vrot.lane.b32.xlu1 %v6218_v58, %s5521_s10  ;;  %v4763_v59 = vpop.f32.mrb[20].mxu1 }
0x17ef   :  { %v2320_v29 = vpop.f32.mrb[21].mxu1 }
0x17f0   :  { %v6222_v60 = vpack.i.bf16 %v4763_v59, %v2320_v29  ;;  %v5089_v62 = vpack.c.bf16 %v4763_v59, %v2320_v29 }
0x17f2   :  { %5091 = vmatprep.subr.msk.bf16.mxu0 %vm5686_vm2, %v5089_v62 }
0x17f3   :  { %5094 = vmatpush3.bf16.xpose.msk.msra.mxu0 %vm5686_vm2, %v5089_v62  ;;  %v6282_v62 = vld [vmem:[%s6648_s3] sm:$0xff] }
0x17fa   :  { %4769 = vmatmul.mubr.msk.f32.vlgmr.msra.gmra.mrb[20].mxu0 %vm272_vm1, %v6229_v48 }
0x185c   :  { %v5342_v39 = vpop.permute.xlu0 %5341 }
0x185d   :  { %v5344_v56 = vunpack.i.h.bf16 %v5342_v39  ;;  %v5343_v42 = vunpack.i.l.bf16 %v5342_v39 }
0x185f   :  { %v5095_v43 = vpack.c.bf16 %v5344_v56, %v5343_v42 }
0x1860   :  { %v5347_v30 = vpop.permute.xlu1 %5346 }
0x1861   :  { %v5349_v63 = vunpack.i.h.bf16 %v5347_v30  ;;  %v5348_v0 = vunpack.i.l.bf16 %v5347_v30  ;;  %5097 = vmatprep.subr.msk.bf16.mxu1 %vm5686_vm2, %v5095_v43  ;;  %v6290_v30 = vld [vmem:[%s6648_s3 + $0x8] sm:$0xff]  ;;  %s6678_s3 = smov 56  }
0x1862   :  { %5100 = vmatpush3.bf16.xpose.msk.msra.mxu1 %vm5686_vm2, %v5095_v43 }
0x1863   :  { %v5101_v1 = vpack.c.bf16 %v5349_v63, %v5348_v0 }
0x1865   :  { %5103 = vmatprep.subr.msk.bf16.mxu1 %vm5686_vm2, %v5101_v1 }
0x186a   :  { %5106 = vmatpush3.bf16.xpose.msk.msra.mxu1 %vm5686_vm2, %v5101_v1 }
0x1871   :  { %4780 = vmatmul.mubr.msk.f32.vlgmr.msra.gmra.mrb[22].mxu1 %vm272_vm1, %v6242_v24 }
0x18cd   :  { %v4770_v31 = vpop.f32.mrb[20].mxu0 }
0x18ce   :  { %v2413_v2 = vpop.f32.mrb[21].mxu0 }
0x18cf   :  { %2430 = vrot.lane.b32.xlu0 %v2413_v2, %s5523_s29  ;;  %2424 = vrot.lane.b32.xlu1 %v2413_v2, %s5522_s28 }
0x18d3   :  { %2432 = vrot.lane.b32.xlu0 %v4770_v31, %s5523_s29  ;;  %2426 = vrot.lane.b32.xlu1 %v4770_v31, %s5522_s28 }
0x1941   :  { %v2431_v4 = vpop.permute.xlu0 %2430  ;;  %v2425_v6 = vpop.permute.xlu1 %2424 }
0x1942   :  { %v2436_v7 = vsel %vm374_vm3, %v2425_v6, %v2431_v4 }
0x1943   :  { %v2438_v25 = vsel %vm5722_vm4, %v2436_v7, %v2413_v2 }
0x1944   :  { %v4781_v8 = vpop.f32.mrb[22].mxu1  ;;  %2448 = vrot.lane.b32.xlu0 %v2438_v25, %s5524_s30  ;;  %2442 = vrot.lane.b32.xlu1 %v2438_v25, %s5525_s12 }
0x1945   :  { %v2578_v10 = vpop.f32.mrb[23].mxu1  ;;  %v2433_v12 = vpop.permute.xlu0 %2432 }
0x1946   :  { %v2427_v13 = vpop.permute.xlu1 %2426 }
0x1947   :  { %v2437_v16 = vsel %vm374_vm3, %v2427_v13, %v2433_v12 }
0x1948   :  { %v2439_v17 = vsel %vm5731_vm5, %v2437_v16, %v4770_v31 }
0x1949   :  { %2450 = vrot.lane.b32.xlu0 %v2439_v17, %s5524_s30  ;;  %2444 = vrot.lane.b32.xlu1 %v2439_v17, %s5525_s12 }
0x19b6   :  { %v2449_v18 = vpop.permute.xlu0 %2448  ;;  %v2443_v20 = vpop.permute.xlu1 %2442 }
0x19b7   :  { %v2454_v21 = vsel %vm393_vm6, %v2443_v20, %v2449_v18 }
0x19b8   :  { %v2456_v41 = vsel %vm61_vm7, %v2454_v21, %v2438_v25 }
0x19b9   :  { %2466 = vrot.lane.b32.xlu0 %v2456_v41, %s5526_s13  ;;  %2460 = vrot.lane.b32.xlu1 %v2456_v41, %s5527_s14 }
0x19bb   :  { %v2451_v54 = vpop.permute.xlu0 %2450  ;;  %v2445_v27 = vpop.permute.xlu1 %2444 }
0x19bc   :  { %v2455_v50 = vsel %vm393_vm6, %v2445_v27, %v2451_v54 }
0x19bd   :  { %v2457_v32 = vsel %vm62_vm8, %v2455_v50, %v2439_v17 }
0x19be   :  { %2468 = vrot.lane.b32.xlu0 %v2457_v32, %s5526_s13  ;;  %2462 = vrot.lane.b32.xlu1 %v2457_v32, %s5527_s14 }
0x1a2b   :  { %v2467_v5 = vpop.permute.xlu0 %2466  ;;  %v2461_v38 = vpop.permute.xlu1 %2460 }
0x1a2c   :  { %v2472_v40 = vsel %vm412_vm9, %v2461_v38, %v2467_v5 }
0x1a2d   :  { %v2474_v45 = vsel %vm67_vm10, %v2472_v40, %v2456_v41 }
0x1a2e   :  { %2478 = vrot.lane.b32.xlu1 %v2474_v45, %s5528_s15 }
0x1a30   :  { %v2469_v47 = vpop.permute.xlu0 %2468  ;;  %v2463_v46 = vpop.permute.xlu1 %2462 }
0x1a31   :  { %v2473_v51 = vsel %vm412_vm9, %v2463_v46, %v2469_v47 }
0x1a32   :  { %v2475_v57 = vsel %vm68_vm11, %v2473_v51, %v2457_v32 }
0x1a33   :  { %2480 = vrot.lane.b32.xlu0 %v2475_v57, %s5528_s15 }
0x1aa0   :  { %v2479_v34 = vpop.permute.xlu1 %2478 }
0x1aa1   :  { %v2484_v59 = vsel %vm425_vm12, %v2474_v45, %v2479_v34 }
0x1aa2   :  { %v2579_v29 = vadd.f32 %v2578_v10, %v2484_v59 }
0x1aa4   :  { %v2587_v49 = vadd.f32 %v6282_v62, %v2579_v29 }
0x1aa5   :  { %v2481_v39 = vpop.permute.xlu0 %2480 }
0x1aa6   :  { %v2485_v56 = vsel %vm425_vm12, %v2475_v57, %v2481_v39  ;;  %v2589_v42 = vsel %vm75_vm0, %v2587_v49, -inf }
0x1aa7   :  { %v2584_v43 = vadd.f32 %v4781_v8, %v2485_v56  ;;  %2590 = vmax.xlane.f32.xlu1 %v2589_v42 }
0x1aa9   :  { %v2588_v63 = vadd.f32 %v6290_v30, %v2584_v43 }
0x1aab   :  { %v2592_v0 = vsel %vm75_vm0, %v2588_v63, -inf }
0x1aac   :  { %2593 = vmax.xlane.f32.xlu0 %v2592_v0 }
0x1b34   :  { %v2591_v1 = vpop.xlane.xlu1 %2590 }
0x1b35   :  { %v2595_v31 = vsub.f32 %v2587_v49, %v2591_v1 }
0x1b37   :  { %v2597_v2 = vmul.f32 1.442695, %v2595_v31 }
0x1b39   :  { %5475 = vpow2.f32 %v2597_v2  ;;  %v2594_v4 = vpop.xlane.xlu0 %2593 }
0x1b3a   :  { %v2596_v6 = vsub.f32 %v2588_v63, %v2594_v4 }
0x1b3c   :  { %v2599_v7 = vmul.f32 1.442695, %v2596_v6 }
0x1b3e   :  { %5477 = vpow2.f32 %v2599_v7 }
0x1b43   :  { %v5476_v25 = vpop.eup %5475 }
0x1b44   :  { %v2601_v8 = vsel %vm75_vm0, %v5476_v25, 0.0 }
0x1b45   :  { %2602 = vadd.xlane.f32.xlu0 %v2601_v8 }
0x1b48   :  { %v5478_v10 = vpop.eup %5477 }
0x1b49   :  { %v2604_v12 = vsel %vm75_vm0, %v5478_v10, 0.0 }
0x1b4a   :  { %2605 = vadd.xlane.f32.xlu1 %v2604_v12 }
0x1b5b   :  { %5356 = vrot.lane.b32.xlu1 %v6218_v58, %s5529_s20  ;;  %5351 = vrot.lane.b32.xlu0 %v6204_v44, %s5529_s20  ;;  %s6679_s20 = smov 112  }
0x1b5f   :  { %5361 = vrot.lane.b32.xlu1 %v6222_v60, %s5530_s21  ;;  %2704 = vrot.lane.b32.xlu0 %v6207_v53, %s5530_s21 }
0x1b63   :  { %2706 = vrot.lane.b32.xlu1 %v6229_v48, %s5530_s21  ;;  %5366 = vrot.lane.b32.xlu0 %v6204_v44, %s5531_s22 }
0x1b67   :  { %5371 = vrot.lane.b32.xlu1 %v6218_v58, %s5531_s22  ;;  %2859 = vrot.lane.b32.xlu0 %v6210_v52, %s5530_s21  ;;  %s6681_s22 = smov 48  }
0x1b6b   :  { %2861 = vrot.lane.b32.xlu1 %v6242_v24, %s5530_s21  ;;  %s6680_s21 = smov 80  }
0x1bd2   :  { %v2603_v13 = vpop.xlane.xlu0 %2602 }
0x1bd3   :  { %5479 = vrcp.f32 %v2603_v13 }
0x1bd6   :  { %v5352_v16 = vpop.permute.xlu0 %5351 }
0x1bd7   :  { %v5354_v17 = vunpack.i.h.bf16 %v5352_v16  ;;  %v5353_v18 = vunpack.i.l.bf16 %v5352_v16  ;;  %v2606_v20 = vpop.xlane.xlu1 %2605 }
0x1bd8   :  { %5481 = vrcp.f32 %v2606_v20 }
0x1bd9   :  { %v5107_v21 = vpack.c.bf16 %v5354_v17, %v5353_v18 }
0x1bda   :  { %v2705_v41 = vpop.permute.xlu0 %2704 }
0x1bdb   :  { %v5357_v54 = vpop.permute.xlu1 %5356  ;;  %5108 = vmatprep.subr.bf16.mxu0 %v5107_v21 }
0x1bdc   :  { %v5359_v27 = vunpack.i.h.bf16 %v5357_v54  ;;  %v5358_v50 = vunpack.i.l.bf16 %v5357_v54  ;;  %5110 = vmatpush3.bf16.msra.mxu0 %v5107_v21 }
0x1bdd   :  { %v5480_v32 = vpop.eup %5479 }
0x1bde   :  { %v5111_v5 = vpack.c.bf16 %v5359_v27, %v5358_v50  ;;  %v5367_v38 = vpop.permute.xlu0 %5366  ;;  %v2609_v40 = vmul.f32 %v5480_v32, %v5476_v25 }
0x1bdf   :  { %v5369_v45 = vunpack.i.h.bf16 %v5367_v38  ;;  %v5368_v47 = vunpack.i.l.bf16 %v5367_v38  ;;  %v5362_v46 = vpop.permute.xlu1 %5361 }
0x1be0   :  { %v5364_v51 = vunpack.i.h.bf16 %v5362_v46  ;;  %v5363_v57 = vunpack.i.l.bf16 %v5362_v46  ;;  %5112 = vmatprep.subr.bf16.mxu0 %v5111_v5  ;;  %4790 = vmatprep.mubr.msk.f32.mxu0 %vm75_vm0, %v2609_v40 }
0x1be1   :  { %v5121_v34 = vpack.c.bf16 %v5369_v45, %v5368_v47  ;;  %5114 = vmatpush3.bf16.msra.mxu0 %v5111_v5 }
0x1be2   :  { %v5482_v59 = vpop.eup %5481  ;;  %v5115_v29 = vpack.c.bf16 %v5364_v51, %v5363_v57  ;;  %v2860_v49 = vpop.permute.xlu0 %2859 }
0x1be3   :  { %v2610_v39 = vmul.f32 %v5482_v59, %v5478_v10  ;;  %v2707_v56 = vpop.permute.xlu1 %2706  ;;  %5123 = vmatprep.subr.msk.bf16.mxu1 %vm5686_vm2, %v5121_v34  ;;  %4808 = vmatprep.mubr.msk.f32.mxu1 %vm272_vm1, %v2860_v49 }
0x1be4   :  { %5117 = vmatprep.subr.msk.bf16.mxu0 %vm5686_vm2, %v5115_v29  ;;  %5126 = vmatpush3.bf16.xpose.msk.msra.mxu1 %vm5686_vm2, %v5121_v34 }
0x1be5   :  { %4791 = vmatmul.mubr.msk.f32.vlgmr.msra.gmra.mrb[22].mxu0 %vm75_vm0, %v2610_v39 }
0x1be6   :  { %4797 = vmatprep.mubr.msk.f32.mxu0 %vm272_vm1, %v2705_v41 }
0x1be7   :  { %v5372_v42 = vpop.permute.xlu1 %5371 }
0x1be8   :  { %v5374_v43 = vunpack.i.h.bf16 %v5372_v42  ;;  %v5373_v63 = vunpack.i.l.bf16 %v5372_v42 }
0x1bea   :  { %v5127_v0 = vpack.c.bf16 %v5374_v43, %v5373_v63  ;;  %5120 = vmatpush3.bf16.xpose.msk.msra.mxu0 %vm5686_vm2, %v5115_v29 }
0x1beb   :  { %v2862_v1 = vpop.permute.xlu1 %2861 }
0x1bec   :  { %5129 = vmatprep.subr.msk.bf16.mxu1 %vm5686_vm2, %v5127_v0 }
0x1bed   :  { %5132 = vmatpush3.bf16.xpose.msk.msra.mxu1 %vm5686_vm2, %v5127_v0 }
0x1bf1   :  { %4798 = vmatmul.mubr.msk.f32.vlgmr.msra.gmra.mrb[24].mxu0 %vm272_vm1, %v2707_v56 }
0x1bf4   :  { %4809 = vmatmul.mubr.msk.f32.vlgmr.msra.gmra.mrb[24].mxu1 %vm272_vm1, %v2862_v1 }
0x1cb8   :  { %v6332_v31 = vpop.f32.mrb[22].mxu0 }
0x1cb9   :  { %v6334_v2 = vpop.f32.mrb[23].mxu0 }
0x1cc4   :  { %v4799_v4 = vpop.f32.mrb[24].mxu0 }
0x1cc5   :  { %v2786_v6 = vpop.f32.mrb[25].mxu0 }
0x1cc6   :  { %2803 = vrot.lane.b32.xlu1 %v2786_v6, %s5523_s29  ;;  %2797 = vrot.lane.b32.xlu0 %v2786_v6, %s5522_s28 }
0x1cc7   :  { %v4810_v7 = vpop.f32.mrb[24].mxu1 }
0x1cc8   :  { %v2949_v25 = vpop.f32.mrb[25].mxu1 }
0x1cca   :  { %2805 = vrot.lane.b32.xlu1 %v4799_v4, %s5523_s29  ;;  %2799 = vrot.lane.b32.xlu0 %v4799_v4, %s5522_s28 }
0x1d38   :  { %v2804_v8 = vpop.permute.xlu1 %2803  ;;  %v2798_v10 = vpop.permute.xlu0 %2797 }
0x1d39   :  { %v2809_v12 = vsel %vm374_vm3, %v2798_v10, %v2804_v8 }
0x1d3a   :  { %v2811_v13 = vsel %vm5722_vm4, %v2809_v12, %v2786_v6 }
0x1d3b   :  { %2821 = vrot.lane.b32.xlu1 %v2811_v13, %s5524_s30  ;;  %2815 = vrot.lane.b32.xlu0 %v2811_v13, %s5525_s12 }
0x1d3c   :  { %v2806_v16 = vpop.permute.xlu1 %2805  ;;  %v2800_v17 = vpop.permute.xlu0 %2799 }
0x1d3d   :  { %v2810_v18 = vsel %vm374_vm3, %v2800_v17, %v2806_v16 }
0x1d3e   :  { %v2812_v20 = vsel %vm5731_vm5, %v2810_v18, %v4799_v4 }
0x1d3f   :  { %2823 = vrot.lane.b32.xlu1 %v2812_v20, %s5524_s30  ;;  %2817 = vrot.lane.b32.xlu0 %v2812_v20, %s5525_s12 }
0x1dad   :  { %v2822_v21 = vpop.permute.xlu1 %2821  ;;  %v2816_v41 = vpop.permute.xlu0 %2815 }
0x1dae   :  { %v2827_v54 = vsel %vm393_vm6, %v2816_v41, %v2822_v21 }
0x1daf   :  { %v2829_v27 = vsel %vm61_vm7, %v2827_v54, %v2811_v13 }
0x1db0   :  { %2839 = vrot.lane.b32.xlu1 %v2829_v27, %s5526_s13  ;;  %2833 = vrot.lane.b32.xlu0 %v2829_v27, %s5527_s14 }
0x1db1   :  { %v2824_v50 = vpop.permute.xlu1 %2823  ;;  %v2818_v32 = vpop.permute.xlu0 %2817 }
0x1db2   :  { %v2828_v5 = vsel %vm393_vm6, %v2818_v32, %v2824_v50 }
0x1db3   :  { %v2830_v38 = vsel %vm62_vm8, %v2828_v5, %v2812_v20 }
0x1db4   :  { %2841 = vrot.lane.b32.xlu1 %v2830_v38, %s5526_s13  ;;  %2835 = vrot.lane.b32.xlu0 %v2830_v38, %s5527_s14 }
0x1e22   :  { %v2840_v40 = vpop.permute.xlu1 %2839  ;;  %v2834_v45 = vpop.permute.xlu0 %2833 }
0x1e23   :  { %v2845_v47 = vsel %vm412_vm9, %v2834_v45, %v2840_v40 }
0x1e24   :  { %v2847_v46 = vsel %vm67_vm10, %v2845_v47, %v2829_v27 }
0x1e25   :  { %2851 = vrot.lane.b32.xlu0 %v2847_v46, %s5528_s15 }
0x1e26   :  { %v2842_v51 = vpop.permute.xlu1 %2841  ;;  %v2836_v57 = vpop.permute.xlu0 %2835 }
0x1e27   :  { %v2846_v34 = vsel %vm412_vm9, %v2836_v57, %v2842_v51 }
0x1e28   :  { %v2848_v59 = vsel %vm68_vm11, %v2846_v34, %v2830_v38 }
0x1e29   :  { %2853 = vrot.lane.b32.xlu1 %v2848_v59, %s5528_s15 }
0x1e97   :  { %v2852_v29 = vpop.permute.xlu0 %2851 }
0x1e98   :  { %v2857_v49 = vsel %vm425_vm12, %v2847_v46, %v2852_v29 }
0x1e99   :  { %v2950_v39 = vadd.f32 %v2949_v25, %v2857_v49 }
0x1e9b   :  { %v2854_v56 = vpop.permute.xlu1 %2853  ;;  %v2958_v42 = vadd.f32 %v6282_v62, %v2950_v39 }
0x1e9c   :  { %v2858_v43 = vsel %vm425_vm12, %v2848_v59, %v2854_v56 }
0x1e9d   :  { %v2955_v63 = vadd.f32 %v4810_v7, %v2858_v43  ;;  %v2960_v0 = vsel %vm75_vm0, %v2958_v42, -inf }
0x1e9e   :  { %2961 = vmax.xlane.f32.xlu0 %v2960_v0 }
0x1e9f   :  { %v2959_v1 = vadd.f32 %v6290_v30, %v2955_v63 }
0x1ea1   :  { %v2963_v4 = vsel %vm75_vm0, %v2959_v1, -inf }
0x1ea2   :  { %2964 = vmax.xlane.f32.xlu1 %v2963_v4 }
0x1eb3   :  { %5376 = vrot.lane.b32.xlu1 %v6204_v44, %s6678_s3 }
0x1eb7   :  { %5386 = vrot.lane.b32.xlu1 %v6222_v60, %s6679_s20 }
0x1ebb   :  { %3075 = vrot.lane.b32.xlu1 %v6207_v53, %s6679_s20 }
0x1ebf   :  { %5391 = vrot.lane.b32.xlu1 %v6204_v44, %s6680_s21 }
0x1ec3   :  { %3230 = vrot.lane.b32.xlu1 %v6210_v52, %s6679_s20 }
0x1f2b   :  { %v2962_v6 = vpop.xlane.xlu0 %2961 }
0x1f2c   :  { %v2966_v7 = vsub.f32 %v2958_v42, %v2962_v6 }
0x1f2e   :  { %v2968_v12 = vmul.f32 1.442695, %v2966_v7 }
0x1f2f   :  { %v2965_v25 = vpop.xlane.xlu1 %2964 }
0x1f30   :  { %v2967_v8 = vsub.f32 %v2959_v1, %v2965_v25 }
0x1f32   :  { %v2970_v10 = vmul.f32 1.442695, %v2967_v8 }
0x1f33   :  { %v5377_v13 = vpop.permute.xlu1 %5376 }
0x1f34   :  { %5483 = vpow2.f32 %v2970_v10  ;;  %v5379_v16 = vunpack.i.h.bf16 %v5377_v13  ;;  %v5378_v17 = vunpack.i.l.bf16 %v5377_v13 }
0x1f35   :  { %5485 = vpow2.f32 %v2968_v12 }
0x1f36   :  { %v5133_v18 = vpack.c.bf16 %v5379_v16, %v5378_v17 }
0x1f37   :  { %v5387_v20 = vpop.permute.xlu1 %5386 }
0x1f38   :  { %5134 = vmatprep.subr.bf16.mxu0 %v5133_v18  ;;  %v5389_v57 = vunpack.i.h.bf16 %v5387_v20  ;;  %v5388_v34 = vunpack.i.l.bf16 %v5387_v20 }
0x1f39   :  { %5136 = vmatpush3.bf16.msra.mxu0 %v5133_v18 }
0x1f3a   :  { %v5141_v56 = vpack.c.bf16 %v5389_v57, %v5388_v34 }
0x1f3b   :  { %v3076_v21 = vpop.permute.xlu1 %3075 }
0x1f3e   :  { %v5484_v41 = vpop.eup %5483 }
0x1f3f   :  { %v5392_v54 = vpop.permute.xlu1 %5391  ;;  %v2975_v27 = vsel %vm75_vm0, %v5484_v41, 0.0  ;;  %v5486_v5 = vpop.eup %5485 }
0x1f40   :  { %v5394_v50 = vunpack.i.h.bf16 %v5392_v54  ;;  %v5393_v32 = vunpack.i.l.bf16 %v5392_v54  ;;  %2976 = vadd.xlane.f32.xlu0 %v2975_v27  ;;  %v2972_v45 = vsel %vm75_vm0, %v5486_v5, 0.0 }
0x1f42   :  { %v5147_v38 = vpack.c.bf16 %v5394_v50, %v5393_v32 }
0x1f43   :  { %v3231_v40 = vpop.permute.xlu1 %3230 }
0x1f44   :  { %5149 = vmatprep.subr.msk.bf16.mxu1 %vm5686_vm2, %v5147_v38  ;;  %4837 = vmatprep.mubr.msk.f32.mxu1 %vm272_vm1, %v3231_v40 }
0x1f45   :  { %2973 = vadd.xlane.f32.xlu0 %v2972_v45  ;;  %5152 = vmatpush3.bf16.xpose.msk.msra.mxu1 %vm5686_vm2, %v5147_v38 }
0x1f5b   :  { %5381 = vrot.lane.b32.xlu0 %v6218_v58, %s6678_s3 }
0x1f5f   :  { %3077 = vrot.lane.b32.xlu0 %v6229_v48, %s6679_s20 }
0x1f63   :  { %5396 = vrot.lane.b32.xlu0 %v6218_v58, %s6680_s21 }
0x1f67   :  { %3232 = vrot.lane.b32.xlu0 %v6242_v24, %s6679_s20 }
0x1fcd   :  { %v2977_v47 = vpop.xlane.xlu0 %2976 }
0x1fce   :  { %5487 = vrcp.f32 %v2977_v47 }
0x1fd2   :  { %v2974_v46 = vpop.xlane.xlu0 %2973 }
0x1fd3   :  { %5489 = vrcp.f32 %v2974_v46 }
0x1fd6   :  { %v5382_v51 = vpop.permute.xlu0 %5381 }
0x1fd7   :  { %v5384_v59 = vunpack.i.h.bf16 %v5382_v51  ;;  %v5383_v29 = vunpack.i.l.bf16 %v5382_v51 }
0x1fd8   :  { %v5488_v42 = vpop.eup %5487 }
0x1fd9   :  { %v5137_v49 = vpack.c.bf16 %v5384_v59, %v5383_v29  ;;  %v2981_v1 = vmul.f32 %v5488_v42, %v5484_v41 }
0x1fda   :  { %v3078_v39 = vpop.permute.xlu0 %3077 }
0x1fdb   :  { %5138 = vmatprep.subr.bf16.mxu0 %v5137_v49 }
0x1fdc   :  { %5140 = vmatpush3.bf16.msra.mxu0 %v5137_v49 }
0x1fdd   :  { %v5490_v43 = vpop.eup %5489  ;;  %5143 = vmatprep.subr.msk.bf16.mxu0 %vm5686_vm2, %v5141_v56 }
0x1fde   :  { %v5397_v63 = vpop.permute.xlu0 %5396  ;;  %v2980_v0 = vmul.f32 %v5490_v43, %v5486_v5 }
0x1fdf   :  { %v5399_v4 = vunpack.i.h.bf16 %v5397_v63  ;;  %v5398_v6 = vunpack.i.l.bf16 %v5397_v63 }
0x1fe0   :  { %4819 = vmatprep.mubr.msk.f32.mxu0 %vm75_vm0, %v2980_v0 }
0x1fe1   :  { %v5153_v7 = vpack.c.bf16 %v5399_v4, %v5398_v6  ;;  %4820 = vmatmul.mubr.msk.f32.vlgmr.msra.gmra.mrb[26].mxu0 %vm75_vm0, %v2981_v1 }
0x1fe2   :  { %4826 = vmatprep.mubr.msk.f32.mxu0 %vm272_vm1, %v3076_v21  ;;  %v3233_v25 = vpop.permute.xlu0 %3232 }
0x1fe3   :  { %5155 = vmatprep.subr.msk.bf16.mxu1 %vm5686_vm2, %v5153_v7 }
0x1fe4   :  { %5158 = vmatpush3.bf16.xpose.msk.msra.mxu1 %vm5686_vm2, %v5153_v7 }
0x1fe5   :  { %5146 = vmatpush3.bf16.xpose.msk.msra.mxu0 %vm5686_vm2, %v5141_v56 }
0x1feb   :  { %4838 = vmatmul.mubr.msk.f32.vlgmr.msra.gmra.mrb[26].mxu1 %vm272_vm1, %v3233_v25 }
0x1fec   :  { %4827 = vmatmul.mubr.msk.f32.vlgmr.msra.gmra.mrb[28].mxu0 %vm272_vm1, %v3078_v39 }
0x20b4   :  { %v6412_v8 = vpop.f32.mrb[26].mxu0 }
0x20b5   :  { %v6414_v10 = vpop.f32.mrb[27].mxu0 }
0x20be   :  { %v4839_v12 = vpop.f32.mrb[26].mxu1 }
0x20bf   :  { %v4828_v13 = vpop.f32.mrb[28].mxu0  ;;  %v3320_v16 = vpop.f32.mrb[27].mxu1 }
0x20c0   :  { %v3157_v17 = vpop.f32.mrb[29].mxu0 }
0x20c1   :  { %3174 = vrot.lane.b32.xlu0 %v3157_v17, %s5523_s29  ;;  %3168 = vrot.lane.b32.xlu1 %v3157_v17, %s5522_s28 }
0x20c5   :  { %3176 = vrot.lane.b32.xlu0 %v4828_v13, %s5523_s29  ;;  %3170 = vrot.lane.b32.xlu1 %v4828_v13, %s5522_s28 }
0x2133   :  { %v3175_v18 = vpop.permute.xlu0 %3174  ;;  %v3169_v20 = vpop.permute.xlu1 %3168 }
0x2134   :  { %v3180_v21 = vsel %vm374_vm3, %v3169_v20, %v3175_v18 }
0x2135   :  { %v3182_v41 = vsel %vm5722_vm4, %v3180_v21, %v3157_v17 }
0x2136   :  { %3192 = vrot.lane.b32.xlu0 %v3182_v41, %s5524_s30  ;;  %3186 = vrot.lane.b32.xlu1 %v3182_v41, %s5525_s12 }
0x2137   :  { %v3177_v54 = vpop.permute.xlu0 %3176  ;;  %v3171_v27 = vpop.permute.xlu1 %3170 }
0x2138   :  { %v3181_v50 = vsel %vm374_vm3, %v3171_v27, %v3177_v54 }
0x2139   :  { %v3183_v32 = vsel %vm5731_vm5, %v3181_v50, %v4828_v13 }
0x213a   :  { %3194 = vrot.lane.b32.xlu0 %v3183_v32, %s5524_s30  ;;  %3188 = vrot.lane.b32.xlu1 %v3183_v32, %s5525_s12 }
0x21a8   :  { %v3193_v5 = vpop.permute.xlu0 %3192  ;;  %v3187_v38 = vpop.permute.xlu1 %3186 }
0x21a9   :  { %v3198_v40 = vsel %vm393_vm6, %v3187_v38, %v3193_v5 }
0x21aa   :  { %v3200_v45 = vsel %vm61_vm7, %v3198_v40, %v3182_v41 }
0x21ab   :  { %3210 = vrot.lane.b32.xlu0 %v3200_v45, %s5526_s13  ;;  %3204 = vrot.lane.b32.xlu1 %v3200_v45, %s5527_s14 }
0x21ac   :  { %v3195_v47 = vpop.permute.xlu0 %3194  ;;  %v3189_v46 = vpop.permute.xlu1 %3188 }
0x21ad   :  { %v3199_v51 = vsel %vm393_vm6, %v3189_v46, %v3195_v47 }
0x21ae   :  { %v3201_v57 = vsel %vm62_vm8, %v3199_v51, %v3183_v32 }
0x21af   :  { %3212 = vrot.lane.b32.xlu0 %v3201_v57, %s5526_s13  ;;  %3206 = vrot.lane.b32.xlu1 %v3201_v57, %s5527_s14 }
0x221d   :  { %v3211_v34 = vpop.permute.xlu0 %3210  ;;  %v3205_v59 = vpop.permute.xlu1 %3204 }
0x221e   :  { %v3216_v29 = vsel %vm412_vm9, %v3205_v59, %v3211_v34 }
0x221f   :  { %v3218_v49 = vsel %vm67_vm10, %v3216_v29, %v3200_v45 }
0x2220   :  { %3222 = vrot.lane.b32.xlu1 %v3218_v49, %s5528_s15 }
0x2221   :  { %v3213_v39 = vpop.permute.xlu0 %3212  ;;  %v3207_v56 = vpop.permute.xlu1 %3206 }
0x2222   :  { %v3217_v42 = vsel %vm412_vm9, %v3207_v56, %v3213_v39 }
0x2223   :  { %v3219_v43 = vsel %vm68_vm11, %v3217_v42, %v3201_v57 }
0x2224   :  { %3224 = vrot.lane.b32.xlu0 %v3219_v43, %s5528_s15 }
0x2292   :  { %v3223_v63 = vpop.permute.xlu1 %3222 }
0x2293   :  { %v3228_v0 = vsel %vm425_vm12, %v3218_v49, %v3223_v63 }
0x2294   :  { %v3321_v1 = vadd.f32 %v3320_v16, %v3228_v0 }
0x2296   :  { %v3225_v4 = vpop.permute.xlu0 %3224  ;;  %v3329_v6 = vadd.f32 %v6282_v62, %v3321_v1 }
0x2297   :  { %v3229_v7 = vsel %vm425_vm12, %v3219_v43, %v3225_v4 }
0x2298   :  { %v3326_v25 = vadd.f32 %v4839_v12, %v3229_v7  ;;  %v3331_v13 = vsel %vm75_vm0, %v3329_v6, -inf }
0x2299   :  { %3332 = vmax.xlane.f32.xlu1 %v3331_v13 }
0x229a   :  { %v3330_v17 = vadd.f32 %v6290_v30, %v3326_v25 }
0x229c   :  { %v3334_v18 = vsel %vm75_vm0, %v3330_v17, -inf }
0x229d   :  { %3335 = vmax.xlane.f32.xlu0 %v3334_v18 }
0x2326   :  { %v3333_v20 = vpop.xlane.xlu1 %3332 }
0x2327   :  { %v3337_v21 = vsub.f32 %v3329_v6, %v3333_v20 }
0x2329   :  { %v3339_v41 = vmul.f32 1.442695, %v3337_v21 }
0x232a   :  { %v3336_v54 = vpop.xlane.xlu0 %3335 }
0x232b   :  { %5491 = vpow2.f32 %v3339_v41  ;;  %v3338_v16 = vsub.f32 %v3330_v17, %v3336_v54 }
0x232d   :  { %v3341_v27 = vmul.f32 1.442695, %v3338_v16 }
0x232f   :  { %5493 = vpow2.f32 %v3341_v27 }
0x2335   :  { %v5492_v50 = vpop.eup %5491 }
0x2336   :  { %v3343_v32 = vsel %vm75_vm0, %v5492_v50, 0.0 }
0x2337   :  { %3344 = vadd.xlane.f32.xlu0 %v3343_v32 }
0x2339   :  { %v5494_v12 = vpop.eup %5493 }
0x233a   :  { %v3346_v5 = vsel %vm75_vm0, %v5494_v12, 0.0 }
0x233b   :  { %3347 = vadd.xlane.f32.xlu1 %v3346_v5 }
0x234c   :  { %5406 = vrot.lane.b32.xlu1 %v6218_v58, %s6681_s22 }
0x234d   :  { %5401 = vrot.lane.b32.xlu0 %v6204_v44, %s6681_s22 }
0x2350   :  { %5411 = vrot.lane.b32.xlu1 %v6222_v60, %s6682_s17 }
0x2351   :  { %3446 = vrot.lane.b32.xlu0 %v6207_v53, %s6682_s17 }
0x2354   :  { %3448 = vrot.lane.b32.xlu1 %v6229_v48, %s6682_s17 }
0x2355   :  { %5416 = vrot.lane.b32.xlu0 %v6204_v44, %s6683_s19 }
0x2358   :  { %5421 = vrot.lane.b32.xlu1 %v6218_v58, %s6683_s19 }
0x2359   :  { %3601 = vrot.lane.b32.xlu0 %v6210_v52, %s6682_s17 }
0x235c   :  { %3603 = vrot.lane.b32.xlu1 %v6242_v24, %s6682_s17 }
0x23c4   :  { %v3345_v38 = vpop.xlane.xlu0 %3344 }
0x23c5   :  { %5495 = vrcp.f32 %v3345_v38 }
0x23c8   :  { %v5402_v60 = vpop.permute.xlu0 %5401  ;;  %v3348_v40 = vpop.xlane.xlu1 %3347 }
0x23c9   :  { %v5404_v53 = vunpack.i.h.bf16 %v5402_v60  ;;  %v5403_v45 = vunpack.i.l.bf16 %v5402_v60  ;;  %5497 = vrcp.f32 %v3348_v40 }
0x23cb   :  { %v5159_v48 = vpack.c.bf16 %v5404_v53, %v5403_v45 }
0x23cc   :  { %v3447_v47 = vpop.permute.xlu0 %3446  ;;  %v5407_v46 = vpop.permute.xlu1 %5406 }
0x23cd   :  { %v5409_v51 = vunpack.i.h.bf16 %v5407_v46  ;;  %v5408_v57 = vunpack.i.l.bf16 %v5407_v46  ;;  %5160 = vmatprep.subr.bf16.mxu0 %v5159_v48 }
0x23ce   :  { %5162 = vmatpush3.bf16.msra.mxu0 %v5159_v48 }
0x23cf   :  { %v5496_v34 = vpop.eup %5495  ;;  %v5163_v59 = vpack.c.bf16 %v5409_v51, %v5408_v57 }
0x23d0   :  { %v5417_v52 = vpop.permute.xlu0 %5416  ;;  %v5412_v29 = vpop.permute.xlu1 %5411  ;;  %v3351_v49 = vmul.f32 %v5496_v34, %v5492_v50 }
0x23d1   :  { %v5419_v24 = vunpack.i.h.bf16 %v5417_v52  ;;  %v5418_v39 = vunpack.i.l.bf16 %v5417_v52  ;;  %v5414_v56 = vunpack.i.h.bf16 %v5412_v29  ;;  %v5413_v42 = vunpack.i.l.bf16 %v5412_v29  ;;  %5164 = vmatprep.subr.bf16.mxu0 %v5163_v59 }
0x23d2   :  { %5166 = vmatpush3.bf16.msra.mxu0 %v5163_v59  ;;  %4848 = vmatprep.mubr.msk.f32.mxu0 %vm75_vm0, %v3351_v49 }
0x23d3   :  { %v5498_v43 = vpop.eup %5497  ;;  %v5173_v63 = vpack.c.bf16 %v5419_v24, %v5418_v39  ;;  %v5167_v0 = vpack.c.bf16 %v5414_v56, %v5413_v42 }
0x23d4   :  { %v3352_v1 = vmul.f32 %v5498_v43, %v5494_v12  ;;  %v3602_v4 = vpop.permute.xlu0 %3601  ;;  %v3449_v6 = vpop.permute.xlu1 %3448 }
0x23d5   :  { %5169 = vmatprep.subr.msk.bf16.mxu0 %vm5686_vm2, %v5167_v0  ;;  %5175 = vmatprep.subr.msk.bf16.mxu1 %vm5686_vm2, %v5173_v63 }
0x23d6   :  { %4866 = vmatprep.mubr.msk.f32.mxu1 %vm272_vm1, %v3602_v4  ;;  %4849 = vmatmul.mubr.msk.f32.vlgmr.msra.gmra.mrb[30].mxu0 %vm75_vm0, %v3352_v1 }
0x23d7   :  { %5178 = vmatpush3.bf16.xpose.msk.msra.mxu1 %vm5686_vm2, %v5173_v63  ;;  %4855 = vmatprep.mubr.msk.f32.mxu0 %vm272_vm1, %v3447_v47 }
0x23d8   :  { %v5422_v7 = vpop.permute.xlu1 %5421 }
0x23d9   :  { %v5424_v25 = vunpack.i.h.bf16 %v5422_v7  ;;  %v5423_v13 = vunpack.i.l.bf16 %v5422_v7 }
0x23db   :  { %v5179_v17 = vpack.c.bf16 %v5424_v25, %v5423_v13  ;;  %5172 = vmatpush3.bf16.xpose.msk.msra.mxu0 %vm5686_vm2, %v5167_v0 }
0x23dc   :  { %v3604_v18 = vpop.permute.xlu1 %3603 }
0x23dd   :  { %5181 = vmatprep.subr.msk.bf16.mxu1 %vm5686_vm2, %v5179_v17 }
0x23df   :  { %5184 = vmatpush3.bf16.xpose.msk.msra.mxu1 %vm5686_vm2, %v5179_v17 }
0x23e2   :  { %4856 = vmatmul.mubr.msk.f32.vlgmr.msra.gmra.mrb[32].mxu0 %vm272_vm1, %v3449_v6 }
0x23e6   :  { %4867 = vmatmul.mubr.msk.f32.vlgmr.msra.gmra.mrb[28].mxu1 %vm272_vm1, %v3604_v18 }
0x24a9   :  { %v4850_v20 = vpop.f32.mrb[30].mxu0 }
0x24aa   :  { %v6492_v21 = vpop.f32.mrb[31].mxu0 }
0x24b5   :  { %v4857_v41 = vpop.f32.mrb[32].mxu0 }
0x24b6   :  { %v3528_v54 = vpop.f32.mrb[33].mxu0 }
0x24b7   :  { %3545 = vrot.lane.b32.xlu1 %v3528_v54, %s5523_s29  ;;  %3539 = vrot.lane.b32.xlu0 %v3528_v54, %s5522_s28 }
0x24b9   :  { %v4868_v16 = vpop.f32.mrb[28].mxu1 }
0x24ba   :  { %v3691_v27 = vpop.f32.mrb[29].mxu1 }
0x24bb   :  { %3547 = vrot.lane.b32.xlu1 %v4857_v41, %s5523_s29  ;;  %3541 = vrot.lane.b32.xlu0 %v4857_v41, %s5522_s28  ;;  %s6684_s28 = smov 40   ;;  %s6685_s29 = smov 8  }
0x2529   :  { %v3546_v37 = vpop.permute.xlu1 %3545  ;;  %v3540_v50 = vpop.permute.xlu0 %3539 }
0x252a   :  { %v3551_v32 = vsel %vm374_vm3, %v3540_v50, %v3546_v37 }
0x252b   :  { %v3553_v12 = vsel %vm5722_vm4, %v3551_v32, %v3528_v54 }
0x252c   :  { %3563 = vrot.lane.b32.xlu1 %v3553_v12, %s5524_s30  ;;  %3557 = vrot.lane.b32.xlu0 %v3553_v12, %s5525_s12 }
0x252d   :  { %v3548_v5 = vpop.permute.xlu1 %3547  ;;  %v3542_v38 = vpop.permute.xlu0 %3541 }
0x252e   :  { %v3552_v60 = vsel %vm374_vm3, %v3542_v38, %v3548_v5 }
0x252f   :  { %v3554_v40 = vsel %vm5731_vm5, %v3552_v60, %v4857_v41 }
0x2530   :  { %3565 = vrot.lane.b32.xlu1 %v3554_v40, %s5524_s30  ;;  %3559 = vrot.lane.b32.xlu0 %v3554_v40, %s5525_s12 }
0x259e   :  { %v3564_v53 = vpop.permute.xlu1 %3563  ;;  %v3558_v45 = vpop.permute.xlu0 %3557 }
0x259f   :  { %v3569_v61 = vsel %vm393_vm6, %v3558_v45, %v3564_v53  ;;  %v4335_v45 = vld [vmem:[%s6649_s6 + $0x38] sm:$0xff] }
0x25a0   :  { %v3571_v48 = vsel %vm61_vm7, %v3569_v61, %v3553_v12 }
0x25a1   :  { %3581 = vrot.lane.b32.xlu1 %v3571_v48, %s5526_s13  ;;  %3575 = vrot.lane.b32.xlu0 %v3571_v48, %s5527_s14 }
0x25a2   :  { %v3566_v47 = vpop.permute.xlu1 %3565  ;;  %v3560_v46 = vpop.permute.xlu0 %3559 }
0x25a3   :  { %v3570_v3 = vsel %vm393_vm6, %v3560_v46, %v3566_v47 }
0x25a4   :  { %v3572_v51 = vsel %vm62_vm8, %v3570_v3, %v3554_v40  ;;  %v4334_v40 = vld [vmem:[%s6649_s6 + $0x30] sm:$0xff] }
0x25a5   :  { %3583 = vrot.lane.b32.xlu1 %v3572_v51, %s5526_s13  ;;  %3577 = vrot.lane.b32.xlu0 %v3572_v51, %s5527_s14  ;;  %v5197_v61 = vpack.c.bf16 %v4335_v45, %v4334_v40 }
0x2613   :  { %v3582_v57 = vpop.permute.xlu1 %3581  ;;  %v3576_v34 = vpop.permute.xlu0 %3575 }
0x2614   :  { %v3587_v9 = vsel %vm412_vm9, %v3576_v34, %v3582_v57 }
0x2615   :  { %v3589_v59 = vsel %vm67_vm10, %v3587_v9, %v3571_v48 }
0x2616   :  { %3593 = vrot.lane.b32.xlu0 %v3589_v59, %s5528_s15 }
0x2617   :  { %v3584_v52 = vpop.permute.xlu1 %3583  ;;  %v3578_v29 = vpop.permute.xlu0 %3577 }
0x2618   :  { %v3588_v49 = vsel %vm412_vm9, %v3578_v29, %v3584_v52 }
0x2619   :  { %v3590_v11 = vsel %vm68_vm11, %v3588_v49, %v3572_v51 }
0x261a   :  { %3595 = vrot.lane.b32.xlu1 %v3590_v11, %s5528_s15 }
0x2688   :  { %v3594_v24 = vpop.permute.xlu0 %3593 }
0x2689   :  { %v3599_v39 = vsel %vm425_vm12, %v3589_v59, %v3594_v24 }
0x268a   :  { %v3692_v56 = vadd.f32 %v3691_v27, %v3599_v39 }
0x268c   :  { %v3596_v42 = vpop.permute.xlu1 %3595  ;;  %v3700_v43 = vadd.f32 %v6282_v62, %v3692_v56 }
0x268d   :  { %v3600_v26 = vsel %vm425_vm12, %v3590_v11, %v3596_v42 }
0x268e   :  { %v3697_v63 = vadd.f32 %v4868_v16, %v3600_v26  ;;  %v3702_v0 = vsel %vm75_vm0, %v3700_v43, -inf }
0x268f   :  { %3703 = vmax.xlane.f32.xlu0 %v3702_v0 }
0x2690   :  { %v3701_v1 = vadd.f32 %v6290_v30, %v3697_v63 }
0x2692   :  { %v3705_v28 = vsel %vm75_vm0, %v3701_v1, -inf }
0x2693   :  { %3706 = vmax.xlane.f32.xlu1 %v3705_v28 }
0x26a4   :  { %5426 = vrot.lane.b32.xlu1 %v6204_v44, %s6684_s28 }
0x26a8   :  { %3819 = vrot.lane.b32.xlu1 %v6414_v10, %s6685_s29 }
0x26ac   :  { %3821 = vrot.lane.b32.xlu1 %v6412_v8, %s6685_s29 }
0x26b0   :  { %3829 = vrot.lane.b32.xlu1 %v4850_v20, %s5528_s15 }
0x271c   :  { %v3704_v62 = vpop.xlane.xlu0 %3703 }
0x271d   :  { %v3708_v4 = vsub.f32 %v3700_v43, %v3704_v62 }
0x271f   :  { %v3710_v25 = vmul.f32 1.442695, %v3708_v4 }
0x2720   :  { %v3707_v6 = vpop.xlane.xlu1 %3706 }
0x2721   :  { %v3709_v7 = vsub.f32 %v3701_v1, %v3707_v6 }
0x2723   :  { %v3712_v30 = vmul.f32 1.442695, %v3709_v7 }
0x2724   :  { %v5427_v13 = vpop.permute.xlu1 %5426 }
0x2725   :  { %5499 = vpow2.f32 %v3712_v30  ;;  %v5429_v17 = vunpack.i.h.bf16 %v5427_v13  ;;  %v5428_v18 = vunpack.i.l.bf16 %v5427_v13  ;;  %v4341_v13 = vld [vmem:[%s6650_s7 + $0x30] sm:$0xff] }
0x2726   :  { %5501 = vpow2.f32 %v3710_v25  ;;  %v4340_v25 = vld [vmem:[%s6650_s7 + $0x28] sm:$0xff] }
0x2727   :  { %v5185_v44 = vpack.c.bf16 %v5429_v17, %v5428_v18  ;;  %v4342_v17 = vld [vmem:[%s6650_s7 + $0x38] sm:$0xff] }
0x2728   :  { %v3820_v46 = vpop.permute.xlu1 %3819  ;;  %v5205_v18 = vpack.c.bf16 %v4342_v17, %v4341_v13 }
0x2729   :  { %5186 = vmatprep.subr.bf16.mxu0 %v5185_v44  ;;  %v3841_v34 = vsel %vm272_vm1, %v6334_v2, %v3820_v46 }
0x272a   :  { %5188 = vmatpush3.bf16.msra.mxu0 %v5185_v44  ;;  %v4345_v44 = vld [vmem:[%s6651_s8 + $0x40] sm:$0xff] }
0x272c   :  { %v3822_v3 = vpop.permute.xlu1 %3821 }
0x272d   :  { %v3842_v59 = vsel %vm272_vm1, %v6332_v31, %v3822_v3 }
0x272f   :  { %v5500_v10 = vpop.eup %5499 }
0x2730   :  { %v3717_v41 = vsel %vm75_vm0, %v5500_v10, 0.0  ;;  %v5502_v8 = vpop.eup %5501  ;;  %v3830_v51 = vpop.permute.xlu1 %3829 }
0x2731   :  { %3718 = vadd.xlane.f32.xlu0 %v3717_v41  ;;  %v3714_v20 = vsel %vm75_vm0, %v5502_v8, 0.0  ;;  %v3844_v49 = vsel %vm425_vm12, %v3842_v59, %v3830_v51  ;;  %v4347_v41 = vld [vmem:[%s6651_s8 + $0x50] sm:$0xff] }
0x2735   :  { %3715 = vadd.xlane.f32.xlu0 %v3714_v20  ;;  %v4348_v20 = vld [vmem:[%s6651_s8 + $0x58] sm:$0xff] }
0x274b   :  { %5431 = vrot.lane.b32.xlu0 %v6218_v58, %s6684_s28  ;;  %v4332_v58 = vld [vmem:[%s6649_s6 + $0x20] sm:$0xff] }
0x274f   :  { %3827 = vrot.lane.b32.xlu0 %v6492_v21, %s5528_s15  ;;  %v4333_v21 = vld [vmem:[%s6649_s6 + $0x28] sm:$0xff] }
0x2750   :  { %v5193_v53 = vpack.c.bf16 %v4333_v21, %v4332_v58  ;;  %v4338_v58 = vld [vmem:[%s6652_s9 + $0x8] sm:$0x3f] }
0x2751   :  { %v3966_v21 = vrot.slane %v4338_v58, %v5658_v23  ;;  %v3972_v45 = vrot.slane %v4338_v58, %v5655_v22  ;;  %v4352_v23 = vld [vmem:[%s6651_s8 + $0x78] sm:$0xff]  ;;  %v3983_v22 = vrot.slane %v4338_v58, %v1923_v55 }
0x27be   :  { %v3719_v54 = vpop.xlane.xlu0 %3718 }
0x27bf   :  { %5503 = vrcp.f32 %v3719_v54  ;;  %v5213_v54 = vpack.c.bf16 %v4348_v20, %v4347_v41 }
0x27c2   :  { %v3716_v16 = vpop.xlane.xlu0 %3715 }
0x27c3   :  { %5505 = vrcp.f32 %v3716_v16  ;;  %v4349_v16 = vld [vmem:[%s6651_s8 + $0x60] sm:$0xff] }
0x27c6   :  { %v5432_v27 = vpop.permute.xlu0 %5431 }
0x27c7   :  { %v5434_v37 = vunpack.i.h.bf16 %v5432_v27  ;;  %v5433_v50 = vunpack.i.l.bf16 %v5432_v27  ;;  %v4350_v27 = vld [vmem:[%s6651_s8 + $0x68] sm:$0xff] }
0x27c9   :  { %v5189_v32 = vpack.c.bf16 %v5434_v37, %v5433_v50  ;;  %v5504_v12 = vpop.eup %5503  ;;  %v5217_v37 = vpack.c.bf16 %v4350_v27, %v4349_v16 }
0x27ca   :  { %v3723_v60 = vmul.f32 %v5504_v12, %v5500_v10  ;;  %v3828_v57 = vpop.permute.xlu0 %3827  ;;  %v4346_v10 = vld [vmem:[%s6651_s8 + $0x48] sm:$0xff] }
0x27cb   :  { %5190 = vmatprep.subr.bf16.mxu0 %v5189_v32  ;;  %v3843_v52 = vsel %vm425_vm12, %v3841_v34, %v3828_v57  ;;  %v4351_v57 = vld [vmem:[%s6651_s8 + $0x70] sm:$0xff] }
0x27cc   :  { %5192 = vmatpush3.bf16.msra.mxu0 %v5189_v32  ;;  %v5221_v34 = vpack.c.bf16 %v4352_v23, %v4351_v57 }
0x27cd   :  { %v5506_v5 = vpop.eup %5505  ;;  %5194 = vmatprep.subr.bf16.mxu0 %v5193_v53 }
0x27ce   :  { %v3722_v38 = vmul.f32 %v5506_v5, %v5502_v8  ;;  %v5209_v8 = vpack.c.bf16 %v4346_v10, %v4345_v44  ;;  %v4192_v44 = vrot.slane %v4338_v58, %v2132_v14 }
0x27d0   :  { %4877 = vmatprep.mubr.msk.f32.mxu0 %vm75_vm0, %v3722_v38 }
0x27d1   :  { %4878 = vmatmul.mubr.msk.f32.vlgmr.msra.gmra.mrb[34].mxu0 %vm75_vm0, %v3723_v60 }
0x27d2   :  { %5196 = vmatpush3.bf16.msra.mxu0 %v5193_v53 }
0x27d3   :  { %5198 = vmatprep.subr.bf16.mxu0 %v5197_v61 }
0x27d6   :  { %5200 = vmatpush3.bf16.msra.mxu0 %v5197_v61 }
0x27d7   :  { %5210 = vmatprep.subr.bf16.mxu0 %v5209_v8 }
0x28a4   :  { %v4879_v48 = vpop.f32.mrb[34].mxu0 }
0x28a5   :  { %3837 = vrot.lane.b32.xlu1 %v4879_v48, %s6686_s5  ;;  %v3808_v47 = vpop.f32.mrb[35].mxu0 }
0x28a6   :  { %3835 = vrot.lane.b32.xlu0 %v3808_v47, %s6686_s5 }
0x2917   :  { %v3838_v9 = vpop.permute.xlu1 %3837 }
0x2918   :  { %v3836_v29 = vpop.permute.xlu0 %3835  ;;  %v3846_v24 = vsel %vm1787_vm13, %v3844_v49, %v3838_v9 }
0x2919   :  { %v3845_v11 = vsel %vm1787_vm13, %v3843_v52, %v3836_v29 }
0x291a   :  { %4888 = vmatprep.mubr.msk.f32.mxu0 %vm75_vm0, %v3845_v11 }
0x291b   :  { %4889 = vmatmul.mubr.msk.f32.vlgmr.msra.gmra.mrb[36].mxu0 %vm75_vm0, %v3846_v24  ;;  %v4079_v24 = vrot.slane %v4338_v58, %v2018_v36 }
0x291c   :  { %5212 = vmatpush3.bf16.msra.mxu0 %v5209_v8  ;;  %v4198_v8 = vrot.slane %v4338_v58, %v2138_v15 }
0x291d   :  { %5214 = vmatprep.subr.bf16.mxu0 %v5213_v54 }
0x2920   :  { %5216 = vmatpush3.bf16.msra.mxu0 %v5213_v54 }
0x2921   :  { %5218 = vmatprep.subr.bf16.mxu0 %v5217_v37 }
0x2924   :  { %5220 = vmatpush3.bf16.msra.mxu0 %v5217_v37 }
0x2925   :  { %5222 = vmatprep.subr.bf16.mxu0 %v5221_v34 }
0x2928   :  { %5224 = vmatpush3.bf16.msra.mxu0 %v5221_v34 }
0x29ee   :  { %v4890_v39 = vpop.f32.mrb[36].mxu0 }
0x29ef   :  { %v3936_v2 = vadd.f32 %v4890_v39, %v6174_v33  ;;  %v3924_v56 = vpop.f32.mrb[37].mxu0 }
0x29f0   :  { %v3935_v42 = vadd.f32 %v3924_v56, %v6176_v35  ;;  %v4339_v35 = vld [vmem:[%s6650_s7 + $0x20] sm:$0xff] }
0x29f1   :  { %v3940_v31 = vsel %vm75_vm0, %v3936_v2, 0.0  ;;  %v5201_v30 = vpack.c.bf16 %v4340_v25, %v4339_v35 }
0x29f2   :  { %3941 = vadd.xlane.f32.xlu1 %v3940_v31  ;;  %v3937_v43 = vsel %vm75_vm0, %v3935_v42, 0.0 }
0x29f3   :  { %3938 = vadd.xlane.f32.xlu0 %v3937_v43  ;;  %5202 = vmatprep.subr.bf16.mxu1 %v5201_v30 }
0x29f4   :  { %5204 = vmatpush3.bf16.msra.mxu1 %v5201_v30 }
0x29f5   :  { %5206 = vmatprep.subr.bf16.mxu1 %v5205_v18 }
0x29f8   :  { %5208 = vmatpush3.bf16.msra.mxu1 %v5205_v18 }
0x2a7f   :  { %v3942_v26 = vpop.xlane.xlu1 %3941 }
0x2a80   :  { %v3944_v63 = vmul.f32 0.03125, %v3942_v26  ;;  %v3939_v0 = vpop.xlane.xlu0 %3938 }
0x2a81   :  { %v3943_v1 = vmul.f32 0.03125, %v3939_v0 }
0x2a82   :  { %v3946_v28 = vsub.f32 %v3936_v2, %v3944_v63 }
0x2a83   :  { %v3945_v62 = vsub.f32 %v3935_v42, %v3943_v1 }
0x2a84   :  { %v3948_v7 = vmul.f32 %v3946_v28, %v3946_v28 }
0x2a85   :  { %v3947_v4 = vmul.f32 %v3945_v62, %v3945_v62 }
0x2a86   :  { %v3952_v33 = vsel %vm75_vm0, %v3948_v7, 0.0 }
0x2a87   :  { %v3949_v6 = vsel %vm75_vm0, %v3947_v4, 0.0 }
0x2a88   :  { %3950 = vadd.xlane.f32.xlu0 %v3949_v6 }
0x2a8c   :  { %3953 = vadd.xlane.f32.xlu0 %v3952_v33 }
0x2b15   :  { %v3951_v50 = vpop.xlane.xlu0 %3950 }
0x2b16   :  { %v3955_v32 = vmul.f32 0.03125, %v3951_v50 }
0x2b18   :  { %v3957_v12 = vadd.f32 1e-05, %v3955_v32 }
0x2b19   :  { %v3954_v5 = vpop.xlane.xlu0 %3953 }
0x2b1a   :  { %5507 = vrsqrt.f32 %v3957_v12  ;;  %v3956_v38 = vmul.f32 0.03125, %v3954_v5 }
0x2b1c   :  { %v3958_v60 = vadd.f32 1e-05, %v3956_v38 }
0x2b1e   :  { %5509 = vrsqrt.f32 %v3958_v60 }
0x2b24   :  { %v5508_v40 = vpop.eup %5507 }
0x2b25   :  { %v3961_v53 = vmul.f32 %v5508_v40, %v3945_v62 }
0x2b27   :  { %v3967_v61 = vmul.f32 %v3966_v21, %v3961_v53 }
0x2b28   :  { %v5510_v48 = vpop.eup %5509 }
0x2b29   :  { %v3962_v47 = vmul.f32 %v5510_v48, %v3946_v28  ;;  %v3973_v46 = vadd.f32 %v3972_v45, %v3967_v61 }
0x2b2b   :  { %v3968_v3 = vmul.f32 %v3966_v21, %v3962_v47  ;;  %4899 = vmatprep.mubr.msk.f32.mxu1 %vm75_vm0, %v3973_v46 }
0x2b2d   :  { %v3974_v51 = vadd.f32 %v3972_v45, %v3968_v3 }
0x2b2f   :  { %4900 = vmatmul.mubr.msk.f32.vlgmr.msra.gmra.mrb[30].mxu1 %vm75_vm0, %v3974_v51 }
0x2c02   :  { %v4901_v9 = vpop.f32.mrb[30].mxu1 }
0x2c03   :  { %v4062_v59 = vadd.f32 %v4901_v9, %v3983_v22  ;;  %v4056_v52 = vpop.f32.mrb[31].mxu1 }
0x2c04   :  { %v4057_v29 = vadd.f32 %v4056_v52, %v3983_v22 }
0x2c05   :  { %v4066_v11 = vmax.f32 %v4062_v59, 0.0 }
0x2c06   :  { %v4065_v49 = vmax.f32 %v4057_v29, 0.0 }
0x2c08   :  { %4918 = vmatprep.mubr.msk.f32.mxu0 %vm2020_vm14, %v4065_v49 }
0x2c09   :  { %4919 = vmatmul.mubr.msk.f32.vlgmr.msra.gmra.mrb[38].mxu0 %vm2020_vm14, %v4066_v11 }
0x2cdc   :  { %v4920_v39 = vpop.f32.mrb[38].mxu0 }
0x2cdd   :  { %v4158_v2 = vadd.f32 %v4920_v39, %v4079_v24  ;;  %v4152_v56 = vpop.f32.mrb[39].mxu0 }
0x2cde   :  { %v4153_v42 = vadd.f32 %v4152_v56, %v4079_v24 }
0x2cdf   :  { %v4162_v31 = vadd.f32 %v4158_v2, %v3974_v51 }
0x2ce0   :  { %v4161_v43 = vadd.f32 %v4153_v42, %v3973_v46 }
0x2ce1   :  { %v4166_v55 = vsel %vm75_vm0, %v4162_v31, 0.0 }
0x2ce2   :  { %4167 = vadd.xlane.f32.xlu0 %v4166_v55  ;;  %v4163_v26 = vsel %vm75_vm0, %v4161_v43, 0.0 }
0x2ce3   :  { %4164 = vadd.xlane.f32.xlu1 %v4163_v26 }
0x2d6f   :  { %v4168_v63 = vpop.xlane.xlu0 %4167 }
0x2d70   :  { %v4170_v0 = vmul.f32 0.03125, %v4168_v63  ;;  %v4165_v1 = vpop.xlane.xlu1 %4164 }
0x2d71   :  { %v4169_v28 = vmul.f32 0.03125, %v4165_v1 }
0x2d72   :  { %v4172_v62 = vsub.f32 %v4162_v31, %v4170_v0 }
0x2d73   :  { %v4171_v4 = vsub.f32 %v4161_v43, %v4169_v28 }
0x2d74   :  { %v4174_v6 = vmul.f32 %v4172_v62, %v4172_v62 }
0x2d75   :  { %v4173_v36 = vmul.f32 %v4171_v4, %v4171_v4 }
0x2d76   :  { %v4178_v7 = vsel %vm75_vm0, %v4174_v6, 0.0 }
0x2d77   :  { %4179 = vadd.xlane.f32.xlu0 %v4178_v7  ;;  %v4175_v33 = vsel %vm75_vm0, %v4173_v36, 0.0 }
0x2d78   :  { %4176 = vadd.xlane.f32.xlu1 %v4175_v33 }
0x2e04   :  { %v4180_v35 = vpop.xlane.xlu0 %4179 }
0x2e05   :  { %v4182_v25 = vmul.f32 0.03125, %v4180_v35  ;;  %v4177_v30 = vpop.xlane.xlu1 %4176 }
0x2e06   :  { %v4181_v13 = vmul.f32 0.03125, %v4177_v30 }
0x2e07   :  { %v4184_v17 = vadd.f32 1e-05, %v4182_v25 }
0x2e08   :  { %v4183_v18 = vadd.f32 1e-05, %v4181_v13 }
0x2e09   :  { %5511 = vrsqrt.f32 %v4184_v17 }
0x2e0a   :  { %5513 = vrsqrt.f32 %v4183_v18 }
0x2e13   :  { %v5512_v10 = vpop.eup %5511 }
0x2e14   :  { %v5514_v41 = vpop.eup %5513  ;;  %v4188_v20 = vmul.f32 %v5512_v10, %v4172_v62 }
0x2e15   :  { %v4187_v54 = vmul.f32 %v5514_v41, %v4171_v4 }
0x2e16   :  { %v4194_v16 = vmul.f32 %v4192_v44, %v4188_v20 }
0x2e17   :  { %v4193_v27 = vmul.f32 %v4192_v44, %v4187_v54 }
0x2e18   :  { %v4200_v37 = vadd.f32 %v4198_v8, %v4194_v16 }
0x2e19   :  { %v4199_v50 = vadd.f32 %v4198_v8, %v4193_v27 }
0x2e1a   :  { %4356 = vst.msk [vmem:[%s6653_s11 + $0x18] sm:$0xff] %vm75_vm0, %v4200_v37 }
0x2e1b   :  { %4355 = vst.msk [vmem:[%s6653_s11 + $0x10] sm:$0xff] %vm75_vm0, %v4199_v50 }

</bundles_post_ra>
